<compile_context>
chip_gen: v5e
topology: v5e:2x2
jax: 0.10.0
libtpu: 0.0.40
codegen_flags: <defaults>
</compile_context>

<pallas_src>
import jax
import jax.numpy as jnp
import numpy as np
from jax.experimental import pallas as pl
from jax.experimental.pallas import tpu as pltpu


HIDDEN = 32
PACK = 128 // HIDDEN          # rows packed per 128-lane output row


# ----------------------------------------------------------------------------
# small in-kernel / wrapper helpers
# ----------------------------------------------------------------------------
def _pack_rows_to_lanes(x):
    """[R, H] -> [R//PACK, PACK*H]; row-chunk j lands in lanes [j*H,(j+1)*H).

    Uses static sublane slices + a lane-axis concatenate (both cheap and well
    supported by Mosaic) instead of a lane<->sublane reshape, so the output
    store is a dense unmasked 128-lane store instead of a masked 32-lane one.
    """
    r = x.shape[0] // PACK
    return jnp.concatenate(
        [x[j * r:(j + 1) * r, :] for j in range(PACK)], axis=-1)


def _unpack_lanes(packed, total_rows, block_rows):
    """Wrapper-side inverse of _pack_rows_to_lanes (per grid block)."""
    nb = total_rows // block_rows
    r = block_rows // PACK
    return (packed.reshape(nb, r, PACK, HIDDEN)
                  .transpose(0, 2, 1, 3)
                  .reshape(total_rows, HIDDEN))


def _pick_block(n, cap, *, step=8 * PACK):
    """Largest block that divides n, is a multiple of `step` (keeps the packed
    output block 8-sublane aligned), fits `cap`, and leaves >= 2 grid steps
    when n allows it (megacore / v7x).  Falls back to a single full block."""
    target = min(cap, n)
    if n >= 2 * step:
        target = min(target, n // 2)
    b = (target // step) * step
    while b >= step and n % b:
        b -= step
    return b if b >= step else n


def _rep_spec(shape):
    """Full-array block replicated across the 1-D grid (weights / kc|vc)."""
    nd = len(shape)
    return pl.BlockSpec(shape, lambda i, _nd=nd: (0,) * _nd)


# ----------------------------------------------------------------------------
# Pallas kernels
# ----------------------------------------------------------------------------
def map_encoder_kernel(pt_ref, w1_ref, b1_ref, wqkv_ref, bqkv_ref, xpl_ref):
    """Fused point MLP + per-polygon self-attention + mean pooling."""
    TP, N, DIN = pt_ref.shape
    H = HIDDEN

    # point MLP: merge (polygon, point) into the matmul M dimension
    pt2d = pt_ref[...].reshape(TP * N, DIN)                          # bf16
    h1 = jnp.maximum(
        jnp.dot(pt2d, w1_ref[...], preferred_element_type=jnp.float32)
        + b1_ref[...], 0.0)                                          # [TP*N, H]

    # second MLP layer (w2, b2) is folded into wqkv / bqkv at prep time
    qkv = (jnp.dot(h1.astype(jnp.bfloat16), wqkv_ref[...],
                   preferred_element_type=jnp.float32)
           + bqkv_ref[...])                                          # [TP*N, 3H]
    qkv = qkv.reshape(TP, N, 3 * H)
    q = qkv[..., 0 * H:1 * H]            # 1/sqrt(H) pre-folded into q columns
    k = qkv[..., 1 * H:2 * H]
    v = qkv[..., 2 * H:3 * H]

    # per-polygon self-attention over points
    s = jnp.einsum('pnh,pmh->pnm',
                   q.astype(jnp.bfloat16), k.astype(jnp.bfloat16),
                   preferred_element_type=jnp.float32)               # [TP, N, N]
    s = s - jnp.max(s, axis=-1, keepdims=True)
    p = jnp.exp(s)
    a = p * pl.reciprocal(jnp.sum(p, axis=-1, keepdims=True), approx=True)
    o = jnp.einsum('pnm,pmh->pnh',
                   a.astype(jnp.bfloat16), v.astype(jnp.bfloat16),
                   preferred_element_type=jnp.float32)               # [TP, N, H]

    # TODO(synk): no validity mask — real QCNet inputs carry per-point masks.
    pooled = jnp.mean(o, axis=1)                                     # [TP, H]
    xpl_ref[...] = _pack_rows_to_lanes(pooled).astype(xpl_ref.dtype)


def kv_proj_kernel(xpl_ref, wkvc_ref, kcvc_ref):
    """One-shot polygon K|V projection (hoisted out of the agent-block loop)."""
    kcvc_ref[...] = jnp.dot(
        xpl_ref[...], wkvc_ref[...],
        preferred_element_type=jnp.float32).astype(kcvc_ref.dtype)


def agent_encoder_kernel(af_ref, kcvc_ref, w1_ref, b1_ref, wqkv_ref, bqkv_ref,
                         wqc_ref, xa_ref):
    """Fused agent MLP + last-step temporal attention + map cross-attention."""
    TA, T, DIN = af_ref.shape
    H = HIDDEN

    # agent MLP (flattened batch); w2/b2 folded into wqkv / bqkv
    af2d = af_ref[...].reshape(TA * T, DIN)                          # bf16
    h1 = jnp.maximum(
        jnp.dot(af2d, w1_ref[...], preferred_element_type=jnp.float32)
        + b1_ref[...], 0.0)                                          # [TA*T, H]
    qkv = (jnp.dot(h1.astype(jnp.bfloat16), wqkv_ref[...],
                   preferred_element_type=jnp.float32)
           + bqkv_ref[...])                                          # [TA*T, 3H]
    qkv = qkv.reshape(TA, T, 3 * H)
    q_last = qkv[:, T - 1, 0 * H:1 * H]                              # [TA, H]
    k = qkv[..., 1 * H:2 * H]                                        # [TA, T, H]
    v = qkv[..., 2 * H:3 * H]                                        # [TA, T, H]

    # temporal attention, last-step query only — tiny, keep it on the VPU
    s = jnp.sum(q_last[:, None, :] * k, axis=-1)                     # [TA, T]
    s = s - jnp.max(s, axis=-1, keepdims=True)
    p = jnp.exp(s)
    a = p * pl.reciprocal(jnp.sum(p, axis=-1, keepdims=True), approx=True)
    h = jnp.sum(a[..., None] * v, axis=1)                            # [TA, H]

    # cross-attention: agents attend to the map; kc|vc were projected once.
    # TODO(synk): for very large P stream polygon blocks with an online softmax
    # instead of holding kcvc and the [TA, P] scores resident (v7x VMEM).
    kcvc = kcvc_ref[...]                                             # [P, 2H] bf16
    kc = kcvc[:, 0 * H:1 * H]
    vc = kcvc[:, 1 * H:2 * H]
    qc = jnp.dot(h.astype(jnp.bfloat16), wqc_ref[...],
                 preferred_element_type=jnp.float32)                 # scale folded
    sc = jnp.einsum('ah,ph->ap', qc.astype(jnp.bfloat16), kc,
                    preferred_element_type=jnp.float32)              # [TA, P]
    sc = sc - jnp.max(sc, axis=-1, keepdims=True)
    pc = jnp.exp(sc)
    ac = pc * pl.reciprocal(jnp.sum(pc, axis=-1, keepdims=True), approx=True)
    ctx = jnp.dot(ac.astype(jnp.bfloat16), vc,
                  preferred_element_type=jnp.float32)                # [TA, H]

    xa_ref[...] = _pack_rows_to_lanes(h + ctx).astype(xa_ref.dtype)


# ----------------------------------------------------------------------------
# pallas_call wrappers: 1-D parallel grid over polygon / agent blocks
# ----------------------------------------------------------------------------
def run_map_encoder(pt_feat, kp, *, block_p=128):
    P, N, DIN = pt_feat.shape
    assert P % PACK == 0, "polygon count must be a multiple of 4 (pad upstream)"
    TP = _pick_block(P, block_p)
    pt_bf16 = pt_feat.astype(jnp.bfloat16)

    args = (pt_bf16, kp['w1'], kp['b1'], kp['wqkv'], kp['bqkv'])
    in_specs = [pl.BlockSpec((TP, N, DIN), lambda i: (i, 0, 0))]
    in_specs += [_rep_spec(a.shape) for a in args[1:]]

    packed = pl.pallas_call(
        map_encoder_kernel,
        out_shape=jax.ShapeDtypeStruct((P // PACK, PACK * HIDDEN), jnp.float32),
        grid=(P // TP,),
        in_specs=in_specs,
        out_specs=pl.BlockSpec((TP // PACK, PACK * HIDDEN), lambda i: (i, 0)),
        compiler_params=pltpu.CompilerParams(
            dimension_semantics=("parallel",)),
    )(*args)
    return _unpack_lanes(packed, P, TP)


def run_kv_proj(x_pl_bf16, wkvc):
    P, H = x_pl_bf16.shape
    return pl.pallas_call(
        kv_proj_kernel,
        out_shape=jax.ShapeDtypeStruct((P, 2 * H), jnp.bfloat16),
        grid=(1,),
        in_specs=[pl.BlockSpec((P, H), lambda i: (0, 0)),
                  pl.BlockSpec(wkvc.shape, lambda i: (0, 0))],
        out_specs=pl.BlockSpec((P, 2 * H), lambda i: (0, 0)),
    )(x_pl_bf16, wkvc)


def run_agent_encoder(agent_feat, x_pl, kp, *, block_a=128):
    A, T, DIN = agent_feat.shape
    assert A % PACK == 0, "agent count must be a multiple of 4 (pad upstream)"
    TA = _pick_block(A, block_a)
    af_bf16 = agent_feat.astype(jnp.bfloat16)

    # hoisted: polygon K/V projection runs once, not once per agent block
    kcvc = run_kv_proj(x_pl.astype(jnp.bfloat16), kp['wkvc'])        # [P, 2H] bf16

    args = (af_bf16, kcvc,
            kp['w1'], kp['b1'], kp['wqkv'], kp['bqkv'], kp['wqc'])
    in_specs = [pl.BlockSpec((TA, T, DIN), lambda i: (i, 0, 0))]
    in_specs += [_rep_spec(a.shape) for a in args[1:]]

    packed = pl.pallas_call(
        agent_encoder_kernel,
        out_shape=jax.ShapeDtypeStruct((A // PACK, PACK * HIDDEN), jnp.float32),
        grid=(A // TA,),
        in_specs=in_specs,
        out_specs=pl.BlockSpec((TA // PACK, PACK * HIDDEN), lambda i: (i, 0)),
        compiler_params=pltpu.CompilerParams(
            dimension_semantics=("parallel",)),
    )(*args)
    return _unpack_lanes(packed, A, TA)


# ----------------------------------------------------------------------------
# Parameter preparation: fold / pre-scale / cast weights for the kernels
# ----------------------------------------------------------------------------
def _prep_map_params(p):
    scale = 1.0 / np.sqrt(np.float32(HIDDEN))
    wqkv = jnp.concatenate([p['wq'] * scale, p['wk'], p['wv']], axis=1)  # [H,3H]
    return {
        'w1':   p['w1'].astype(jnp.bfloat16),
        'b1':   p['b1'].astype(jnp.float32),
        'wqkv': (p['w2'] @ wqkv).astype(jnp.bfloat16),    # fold 2nd MLP layer
        'bqkv': (p['b2'] @ wqkv).astype(jnp.float32),
    }


def _prep_agent_params(p):
    scale = 1.0 / np.sqrt(np.float32(HIDDEN))
    wqkv = jnp.concatenate([p['wq'] * scale, p['wk'], p['wv']], axis=1)
    return {
        'w1':   p['w1'].astype(jnp.bfloat16),
        'b1':   p['b1'].astype(jnp.float32),
        'wqkv': (p['w2'] @ wqkv).astype(jnp.bfloat16),    # fold 2nd MLP layer
        'bqkv': (p['b2'] @ wqkv).astype(jnp.float32),
        'wqc':  (p['wqc'] * scale).astype(jnp.bfloat16),
        'wkvc': jnp.concatenate([p['wkc'], p['wvc']], axis=1).astype(jnp.bfloat16),
    }


# ----------------------------------------------------------------------------
# Module wrappers mirroring QCNetOEEncoder.forward semantics
# ----------------------------------------------------------------------------
class MapEncoderPallas:
    def __init__(self, params):
        self.params = _prep_map_params(params)

    def __call__(self, data):
        x_pl = run_map_encoder(data['pt_feat'], self.params)
        return {'x_pl': x_pl}


class AgentEncoderPallas:
    def __init__(self, params, quant_infer_cold_start=False, deploy=False):
        self.params = _prep_agent_params(params)
        self.quant_infer_cold_start = quant_infer_cold_start
        self.deploy = deploy

    def __call__(self, data, map_enc):
        x_a = run_agent_encoder(data['agent_feat'], map_enc['x_pl'], self.params)
        return {'x_a': x_a}


class QCNetOEEncoderPallas:
    """Faithful re-implementation of QCNetOEEncoder.forward control flow."""

    def __init__(self, map_encoder, agent_encoder, stream_deploy=False):
        self.map_encoder = map_encoder
        self.agent_encoder = agent_encoder
        self.stream_deploy = stream_deploy

    def __call__(self, data):
        quant_infer_cold_start = self.agent_encoder.quant_infer_cold_start
        deploy = self.agent_encoder.deploy
        if quant_infer_cold_start and (not deploy):
            if data['map_enc'] is not None:
                map_enc = data['map_enc']
            else:
                map_enc = self.map_encoder(data)
        else:
            map_enc = self.map_encoder(data)
            if map_enc == {}:
                return {}
        agent_enc = self.agent_encoder(data, map_enc)
        return {**map_enc, **agent_enc}

    # TODO(synk): set_qconfig / quantization config has no Pallas equivalent.


# ----------------------------------------------------------------------------
# Pure-JAX f32 reference (original unfused math) for the correctness check
# ----------------------------------------------------------------------------
def _ref_map(pt, p):
    e = jnp.maximum(jnp.einsum('pnd,dh->pnh', pt, p['w1']) + p['b1'], 0.0)
    e = jnp.einsum('pnh,hk->pnk', e, p['w2']) + p['b2']
    q = jnp.einsum('pnh,hk->pnk', e, p['wq'])
    k = jnp.einsum('pnh,hk->pnk', e, p['wk'])
    v = jnp.einsum('pnh,hk->pnk', e, p['wv'])
    s = jnp.einsum('pnh,pmh->pnm', q, k) / jnp.sqrt(jnp.float32(HIDDEN))
    a = jax.nn.softmax(s, axis=-1)
    return jnp.einsum('pnm,pmh->pnh', a, v).mean(axis=1)


def _ref_agent(af, x_pl, p):
    e = jnp.maximum(jnp.einsum('atd,dh->ath', af, p['w1']) + p['b1'], 0.0)
    e = jnp.einsum('ath,hk->atk', e, p['w2']) + p['b2']
    q = jnp.einsum('ath,hk->atk', e, p['wq'])
    k = jnp.einsum('ath,hk->atk', e, p['wk'])
    v = jnp.einsum('ath,hk->atk', e, p['wv'])
    s = jnp.einsum('ath,ash->ats', q, k) / jnp.sqrt(jnp.float32(HIDDEN))
    o = jnp.einsum('ats,ash->ath', jax.nn.softmax(s, axis=-1), v)
    h = o[:, -1, :]
    qc = h @ p['wqc']; kc = x_pl @ p['wkc']; vc = x_pl @ p['wvc']
    sc = qc @ kc.T / jnp.sqrt(jnp.float32(HIDDEN))
    return h + jax.nn.softmax(sc, axis=-1) @ vc


# ----------------------------------------------------------------------------
def _init_linear(key, fan_in, fan_out):
    bound = 1.0 / np.sqrt(fan_in)
    return jax.random.uniform(key, (fan_in, fan_out), jnp.float32, -bound, bound)


def _make_params(key, din):
    ks = jax.random.split(key, 10)
    return {
        'w1': _init_linear(ks[0], din, HIDDEN),
        'b1': jax.random.uniform(ks[1], (1, HIDDEN), jnp.float32, -0.05, 0.05),
        'w2': _init_linear(ks[2], HIDDEN, HIDDEN),
        'b2': jax.random.uniform(ks[3], (1, HIDDEN), jnp.float32, -0.05, 0.05),
        'wq': _init_linear(ks[4], HIDDEN, HIDDEN),
        'wk': _init_linear(ks[5], HIDDEN, HIDDEN),
        'wv': _init_linear(ks[6], HIDDEN, HIDDEN),
        'wqc': _init_linear(ks[7], HIDDEN, HIDDEN),
        'wkc': _init_linear(ks[8], HIDDEN, HIDDEN),
        'wvc': _init_linear(ks[9], HIDDEN, HIDDEN),
    }


if __name__ == "__main__":
    key = jax.random.PRNGKey(0)
    k_map_w, k_ag_w, k_pt, k_af = jax.random.split(key, 4)

    # Shapes chosen so each encoder runs a 2-step parallel grid (block = 32),
    # exercising the multi-block / megacore path while staying small.
    P, N, DIN_PT = 64, 16, 8
    A, T, DIN_A = 64, 8, 8

    map_params = _make_params(k_map_w, DIN_PT)
    agent_params = _make_params(k_ag_w, DIN_A)

    data = {
        'pt_feat': jax.random.normal(k_pt, (P, N, DIN_PT), jnp.float32),
        'agent_feat': jax.random.normal(k_af, (A, T, DIN_A), jnp.float32),
        'map_enc': None,
    }

    encoder = QCNetOEEncoderPallas(
        map_encoder=MapEncoderPallas(map_params),
        agent_encoder=AgentEncoderPallas(agent_params,
                                         quant_infer_cold_start=False,
                                         deploy=False),
        stream_deploy=False,
    )

    out = encoder(data)
    out = jax.tree_util.tree_map(jax.block_until_ready, out)

    assert set(out.keys()) == {'x_pl', 'x_a'}
    assert out['x_pl'].shape == (P, HIDDEN)
    assert out['x_a'].shape == (A, HIDDEN)

    # correctness check against a pure-JAX f32 reference (kernels use bf16 MXU
    # inputs with f32 accumulation and an approx-reciprocal softmax normalizer,
    # so tolerance is slightly looser than pure f32)
    x_pl_ref = _ref_map(data['pt_feat'], map_params)
    x_a_ref = _ref_agent(data['agent_feat'], x_pl_ref, agent_params)
    np.testing.assert_allclose(np.asarray(out['x_pl']), np.asarray(x_pl_ref),
                               rtol=4e-2, atol=4e-2)
    np.testing.assert_allclose(np.asarray(out['x_a']), np.asarray(x_a_ref),
                               rtol=4e-2, atol=4e-2)

    print("KERNEL_OK")
</pallas_src>

<mosaic_0001>
module attributes {stable_mosaic.version = 11 : i64} {
  func.func @map_encoder_kernel(%arg0: i32, %arg1: memref<32x16x8xbf16, #tpu.memory_space<vmem>>, %arg2: memref<8x32xbf16, #tpu.memory_space<vmem>>, %arg3: memref<1x32xf32, #tpu.memory_space<vmem>>, %arg4: memref<32x96xbf16, #tpu.memory_space<vmem>>, %arg5: memref<1x96xf32, #tpu.memory_space<vmem>>, %arg6: memref<8x128xf32, #tpu.memory_space<vmem>>) attributes {dimension_semantics = [#tpu.dimension_semantics<parallel>], iteration_bounds = array<i64: 2>, scalar_prefetch = 0 : i64, scratch_operands = 0 : i64, tpu.core_type = #tpu.core_type<tc>, window_params = [{transform_indices = @transform_0, window_bounds = array<i64: 32, 16, 8>}, {pipeline_mode = #tpu.pipeline_mode<synchronous>, transform_indices = @transform_1, window_bounds = array<i64: 8, 32>}, {pipeline_mode = #tpu.pipeline_mode<synchronous>, transform_indices = @transform_2, window_bounds = array<i64: 1, 32>}, {pipeline_mode = #tpu.pipeline_mode<synchronous>, transform_indices = @transform_3, window_bounds = array<i64: 32, 96>}, {pipeline_mode = #tpu.pipeline_mode<synchronous>, transform_indices = @transform_4, window_bounds = array<i64: 1, 96>}, {transform_indices = @transform_5, window_bounds = array<i64: 8, 128>}]} {
    %c0 = arith.constant 0 : index
    %c0_0 = arith.constant 0 : index
    %c0_1 = arith.constant 0 : index
    %0 = vector.load %arg1[%c0, %c0_0, %c0_1] : memref<32x16x8xbf16, #tpu.memory_space<vmem>>, vector<32x16x8xbf16>
    %1 = vector.shape_cast %0 : vector<32x16x8xbf16> to vector<512x8xbf16>
    %c0_2 = arith.constant 0 : index
    %c0_3 = arith.constant 0 : index
    %2 = vector.load %arg2[%c0_2, %c0_3] : memref<8x32xbf16, #tpu.memory_space<vmem>>, vector<8x32xbf16>
    %cst = arith.constant dense<0.000000e+00> : vector<512x32xf32>
    %3 = tpu.matmul %1, %2, %cst {dimension_numbers = #tpu.dot_dimension_numbers<[1], [0], [0], [1], [0, 0, 1, 1], [], []>} : vector<512x8xbf16>, vector<8x32xbf16>, vector<512x32xf32> -> vector<512x32xf32>
    %c0_4 = arith.constant 0 : index
    %c0_5 = arith.constant 0 : index
    %4 = vector.load %arg3[%c0_4, %c0_5] : memref<1x32xf32, #tpu.memory_space<vmem>>, vector<1x32xf32>
    %5 = vector.broadcast %4 : vector<1x32xf32> to vector<512x32xf32>
    %6 = arith.addf %3, %5 : vector<512x32xf32>
    %cst_6 = arith.constant 0.000000e+00 : f32
    %7 = vector.broadcast %cst_6 : f32 to vector<512x32xf32>
    %8 = arith.maximumf %6, %7 : vector<512x32xf32>
    %9 = arith.truncf %8 : vector<512x32xf32> to vector<512x32xbf16>
    %c0_7 = arith.constant 0 : index
    %c0_8 = arith.constant 0 : index
    %10 = vector.load %arg4[%c0_7, %c0_8] : memref<32x96xbf16, #tpu.memory_space<vmem>>, vector<32x96xbf16>
    %cst_9 = arith.constant dense<0.000000e+00> : vector<512x96xf32>
    %11 = tpu.matmul %9, %10, %cst_9 {dimension_numbers = #tpu.dot_dimension_numbers<[1], [0], [0], [1], [0, 0, 1, 1], [], []>} : vector<512x32xbf16>, vector<32x96xbf16>, vector<512x96xf32> -> vector<512x96xf32>
    %c0_10 = arith.constant 0 : index
    %c0_11 = arith.constant 0 : index
    %12 = vector.load %arg5[%c0_10, %c0_11] : memref<1x96xf32, #tpu.memory_space<vmem>>, vector<1x96xf32>
    %13 = vector.broadcast %12 : vector<1x96xf32> to vector<512x96xf32>
    %14 = arith.addf %11, %13 : vector<512x96xf32>
    %15 = vector.shape_cast %14 : vector<512x96xf32> to vector<32x16x96xf32>
    %16 = vector.extract_strided_slice %15 {offsets = [0, 0, 0], sizes = [32, 16, 32], strides = [1, 1, 1]} : vector<32x16x96xf32> to vector<32x16x32xf32>
    %17 = vector.extract_strided_slice %15 {offsets = [0, 0, 32], sizes = [32, 16, 32], strides = [1, 1, 1]} : vector<32x16x96xf32> to vector<32x16x32xf32>
    %18 = vector.extract_strided_slice %15 {offsets = [0, 0, 64], sizes = [32, 16, 32], strides = [1, 1, 1]} : vector<32x16x96xf32> to vector<32x16x32xf32>
    %19 = arith.truncf %16 : vector<32x16x32xf32> to vector<32x16x32xbf16>
    %20 = arith.truncf %17 : vector<32x16x32xf32> to vector<32x16x32xbf16>
    "tpu.trace_start"() <{level = 10 : i32, message = "pnh,pmh->pnm"}> : () -> ()
    %cst_12 = arith.constant dense<0.000000e+00> : vector<32x16x16xf32>
    %21 = tpu.matmul %19, %20, %cst_12 {dimension_numbers = #tpu.dot_dimension_numbers<[2], [2], [1], [1], [0, 0, 0, 1, 1, 1], [0], [0]>} : vector<32x16x32xbf16>, vector<32x16x32xbf16>, vector<32x16x16xf32> -> vector<32x16x16xf32>
    "tpu.trace_stop"() : () -> ()
    %cst_13 = arith.constant dense<0xFF800000> : vector<32x16xf32>
    %22 = vector.multi_reduction <maximumf>, %21, %cst_13 [2] : vector<32x16x16xf32> to vector<32x16xf32>
    %23 = vector.shape_cast %22 : vector<32x16xf32> to vector<32x16x1xf32>
    %24 = vector.broadcast %23 : vector<32x16x1xf32> to vector<32x16x16xf32>
    %25 = arith.subf %21, %24 : vector<32x16x16xf32>
    %26 = math.exp %25 : vector<32x16x16xf32>
    %cst_14 = arith.constant dense<0.000000e+00> : vector<32x16xf32>
    %27 = vector.multi_reduction <add>, %26, %cst_14 [2] : vector<32x16x16xf32> to vector<32x16xf32>
    %28 = vector.shape_cast %27 : vector<32x16xf32> to vector<32x16x1xf32>
    %29 = tpu.reciprocal %28 {approx = true} : vector<32x16x1xf32> -> vector<32x16x1xf32>
    %30 = vector.broadcast %29 : vector<32x16x1xf32> to vector<32x16x16xf32>
    %31 = arith.mulf %26, %30 : vector<32x16x16xf32>
    %32 = arith.truncf %31 : vector<32x16x16xf32> to vector<32x16x16xbf16>
    %33 = arith.truncf %18 : vector<32x16x32xf32> to vector<32x16x32xbf16>
    "tpu.trace_start"() <{level = 10 : i32, message = "pnm,pmh->pnh"}> : () -> ()
    %cst_15 = arith.constant dense<0.000000e+00> : vector<32x16x32xf32>
    %34 = tpu.matmul %32, %33, %cst_15 {dimension_numbers = #tpu.dot_dimension_numbers<[2], [1], [1], [2], [0, 0, 0, 1, 1, 2], [0], [0]>} : vector<32x16x16xbf16>, vector<32x16x32xbf16>, vector<32x16x32xf32> -> vector<32x16x32xf32>
    "tpu.trace_stop"() : () -> ()
    %cst_16 = arith.constant dense<0.000000e+00> : vector<32x32xf32>
    %35 = vector.multi_reduction <add>, %34, %cst_16 [1] : vector<32x16x32xf32> to vector<32x32xf32>
    %cst_17 = arith.constant 1.600000e+01 : f32
    %36 = vector.broadcast %cst_17 : f32 to vector<32x32xf32>
    %37 = arith.divf %35, %36 : vector<32x32xf32>
    %38 = vector.extract_strided_slice %37 {offsets = [0, 0], sizes = [8, 32], strides = [1, 1]} : vector<32x32xf32> to vector<8x32xf32>
    %39 = vector.extract_strided_slice %37 {offsets = [8, 0], sizes = [8, 32], strides = [1, 1]} : vector<32x32xf32> to vector<8x32xf32>
    %40 = vector.extract_strided_slice %37 {offsets = [16, 0], sizes = [8, 32], strides = [1, 1]} : vector<32x32xf32> to vector<8x32xf32>
    %41 = vector.extract_strided_slice %37 {offsets = [24, 0], sizes = [8, 32], strides = [1, 1]} : vector<32x32xf32> to vector<8x32xf32>
    %42 = tpu.concatenate %38, %39, %40, %41 in 1 : vector<8x32xf32>, vector<8x32xf32>, vector<8x32xf32>, vector<8x32xf32> -> vector<8x128xf32>
    %c0_18 = arith.constant 0 : index
    %c0_19 = arith.constant 0 : index
    %43 = vector.load %arg6[%c0_18, %c0_19] : memref<8x128xf32, #tpu.memory_space<vmem>>, vector<8x128xf32>
    tpu.vector_store %arg6[%c0_18, %c0_19], %42 {strides = array<i32>} : memref<8x128xf32, #tpu.memory_space<vmem>>, vector<8x128xf32>,
    return
  }
  func.func @transform_0(%arg0: i32) -> (i32, i32, i32) {
    %c0_i32 = arith.constant 0 : i32
    %c0_i32_0 = arith.constant 0 : i32
    %c0_i32_1 = arith.constant 0 : i32
    return %arg0, %c0_i32, %c0_i32_0 : i32, i32, i32
  }
  func.func @transform_1(%arg0: i32) -> (i32, i32) {
    %c0_i32 = arith.constant 0 : i32
    %c0_i32_0 = arith.constant 0 : i32
    %c0_i32_1 = arith.constant 0 : i32
    return %c0_i32, %c0_i32_0 : i32, i32
  }
  func.func @transform_2(%arg0: i32) -> (i32, i32) {
    %c0_i32 = arith.constant 0 : i32
    %c0_i32_0 = arith.constant 0 : i32
    %c0_i32_1 = arith.constant 0 : i32
    return %c0_i32, %c0_i32_0 : i32, i32
  }
  func.func @transform_3(%arg0: i32) -> (i32, i32) {
    %c0_i32 = arith.constant 0 : i32
    %c0_i32_0 = arith.constant 0 : i32
    %c0_i32_1 = arith.constant 0 : i32
    return %c0_i32, %c0_i32_0 : i32, i32
  }
  func.func @transform_4(%arg0: i32) -> (i32, i32) {
    %c0_i32 = arith.constant 0 : i32
    %c0_i32_0 = arith.constant 0 : i32
    %c0_i32_1 = arith.constant 0 : i32
    return %c0_i32, %c0_i32_0 : i32, i32
  }
  func.func @transform_5(%arg0: i32) -> (i32, i32) {
    %c0_i32 = arith.constant 0 : i32
    %c0_i32_0 = arith.constant 0 : i32
    return %arg0, %c0_i32 : i32, i32
  }
}

</mosaic_0001>

<bundles_post_ra>
// kernel: tpu_custom_call.1
= control target key start
LH: loop header
LB: loop body
LE: loop exit
PB: predicated region body
PF: predicated region fallthrough
CT: control target
= control target key end

     0   :  { %10 = vsyncpa [#allocation3], 0  ;;  %s6489_s0 = inlined_call_operand.vmem [shape: bf16[64,16,8], index: 0, kind: input, shape index: {}]   ;;  %s6490_s1 = inlined_call_operand.vmem [shape: bf16[8,32], index: 1, kind: input, shape index: {}]   ;;  %s6491_s2 = inlined_call_operand.vmem [shape: f32[1,32], index: 2, kind: input, shape index: {}]   ;;  %s6492_s3 = inlined_call_operand.vmem [shape: bf16[32,96], index: 3, kind: input, shape index: {}]   ;;  %s6493_s4 = inlined_call_operand.vmem [shape: f32[1,96], index: 4, kind: input, shape index: {}]   ;;  %s6494_s5 = inlined_call_operand.hbm [shape: f32[16,128], index: 5, kind: output, shape index: {}]  }
   0x1   :  { %12 = vsyncpa [#allocation3 + $0x1], 0  ;;  %s4806_s18 = smov 0   ;;  %s4808_s19 = smov 0  }
   0x2   :  { %s4810_s20 = smov 0   ;;  %s4812_s21 = smov 0  }
   0x3 LB: > { %s4827_s22 = sadd.s32 4294967295, %s4770_s21   ;;  %s4092_s23 = sadd.s32 4294967294, %s4770_s21   ;;  %s4770_s21 = sphi %s4812_s21, %s6567_s21   ;;  %s4766_s20 = sphi %s4810_s20, %s6566_s20   ;;  %s4762_s19 = sphi %s4808_s19, %s6565_s19   ;;  %s4758_s18 = sphi %s4806_s18, %s6564_s18  }
   0x4   : > { %s4831_s24 = sadd.s32 1, %s4770_s21   ;;  %s135_s25 = sadd.s32 1, %s4766_s20 }
   0x5   : > { %s132_s26 = ssub.s32 %s4770_s21, %s4831_s24  ;;  %p145_p0 = scmp.ne.s32.totalorder %s4766_s20, %s4762_s19 }
   0x6   : > { %p133_p1 = scmp.eq.s32.totalorder %s132_s26, 0  ;;  %p146_p2 = scmp.eq.s32.totalorder %s4827_s22, 1 }
   0x7   : > { %p151_p3 = scmp.ne.s32.totalorder %s4762_s19, %s4758_s18  ;;  %p152_p4 = scmp.eq.s32.totalorder %s4092_s23, 1 }
   0x8   : > { %s4842_s27 = scalar_select %p133_p1, %s4766_s20, %s135_s25  }
   0x9   : > { %p4844_p5 = por %p146_p2, %p145_p0  ;;  %p4848_p6 = por %p152_p4, %p151_p3 }
   0xa   : > { %p4095_p7 = scmp.ge.s32.totalorder %s4770_s21, 1  ;;  %p192_p8 = scmp.lt.s32.totalorder %s4770_s21, 3 }
   0xc   : > { %p193_p9 = pnand %p4095_p7, %p192_p8 }
   0xe   : > { %196 = sbr.rel (%p193_p9) target bundleno = 1992 (0x7c8), region = 40 }
  0x13   : > { %v293_v0 = vld [vmem:[%s6490_s1] sm:$0xf]  ;;  %vm555_vm0 = vcmask 1043456   ;;  %s4097_s7 = sshll.u32 %s4827_s22, 5  ;;  %vm458_vm1 = vcmask 64512   ;;  %v4402_v9 = vld [vmem:[%s6492_s3 + $0x8] sm:$0xff] }
  0x14   : > { %v557_v1 = vsel %vm555_vm0, %v293_v0, 0  ;;  %p222_p10 = scmp.lt.s32.totalorder %s4097_s7, 63  ;;  %947 = vmatpush.bf16.msra.mxu1 %v4402_v9  ;;  %v4401_v10 = vld [vmem:[%s6492_s3] sm:$0xff]  ;;  %vm844_vm2 = vcmask 261120   ;;  %s4772_s26 = smov 64   ;;  %vm2038_vm3 = vcmask 130048  }
  0x15   : > { %566 = vmatpush.bf16.msra.mxu0 %v557_v1  ;;  %v4889_v14 = vld [vmem:[%s6491_s2] ss:$0 sm:$0xff]  ;;  %s4773_s30 = smov 96   ;;  %vm3942_vm5 = vcmask 1041409   ;;  %vm3944_vm6 = vcmask 1042434   ;;  %vm3946_vm7 = vcmask 1043459  }
  0x16   : > { %s6569_s7 = smov (!%p222_p10, %s4097_s7), 63  ;;  %vm3948_vm8 = vcmask 1044484   ;;  %vm3950_vm9 = vcmask 1045509   ;;  %vm3952_vm10 = vcmask 1046534   ;;  %vm3954_vm11 = vcmask 1047559   ;;  %s4775_s10 = smov 32  }
  0x17   : > { %s4368_s8 = sshll.u32 %s6569_s7, 3  ;;  %s4365_s13 = sshll.u32 %s4827_s22, 3  ;;  %vm4012_vm12 = vcmask 523264   ;;  %vm4014_vm13 = vcmask 785408  }
  0x18   : > { %s4861_s11 = scalar_lea.vmem %s6489_s0, %s4368_s8  ;;  %948 = vmatpush.bf16.msra.mxu1 %v4401_v10  ;;  %s4028_s16 = scalar_lea.hbm %s6494_s5, %s4365_s13 }
  0x19   : > { %v4369_v2 = vld [vmem:[%s4861_s11] sm:$0xff]  ;;  %v4370_v3 = vld [vmem:[%s4861_s11 + $0x8] sm:$0xff]  ;;  %v4371_v4 = vld [vmem:[%s4861_s11 + $0x10] sm:$0xff]  ;;  %s4032_s25 = sshll.u32 %s4028_s16, 4  ;;  %s4728_s8 = scalar_lea.hbm %s6494_s5, 16  ;;  %s4033_s25 = int_to_ptr.hbm [resolvable:$true] %s4032_s25 }
  0x1a   : > { %4228 = vmatmul.msk.bf16.vlgmr.msra.gmra.mxu0 %vm458_vm1, %v4369_v2  ;;  %v4372_v5 = vld [vmem:[%s4861_s11 + $0x18] sm:$0xff]  ;;  %v4373_v6 = vld [vmem:[%s4861_s11 + $0x20] sm:$0xff]  ;;  %v4374_v7 = vld [vmem:[%s4861_s11 + $0x28] sm:$0xff] }
  0x1b   : > { %v4375_v8 = vld [vmem:[%s4861_s11 + $0x30] sm:$0xff]  ;;  %v4376_v11 = vld [vmem:[%s4861_s11 + $0x38] sm:$0xff]  ;;  %v4377_v12 = vld [vmem:[%s4861_s11 + $0x40] sm:$0xff] }
  0x1c   : > { %v4378_v21 = vld [vmem:[%s4861_s11 + $0x48] sm:$0xff]  ;;  %v4379_v29 = vld [vmem:[%s4861_s11 + $0x50] sm:$0xff]  ;;  %v4380_v37 = vld [vmem:[%s4861_s11 + $0x58] sm:$0xff] }
  0x1d   : > { %v4381_v45 = vld [vmem:[%s4861_s11 + $0x60] sm:$0xff]  ;;  %v4382_v53 = vld [vmem:[%s4861_s11 + $0x68] sm:$0xff]  ;;  %v4383_v61 = vld [vmem:[%s4861_s11 + $0x70] sm:$0xff] }
  0x2a   : > { %4229 = vmatmul.msk.bf16.gmra.mxu0 %vm458_vm1, %v4370_v3 }
  0x3a   : > { %4230 = vmatmul.msk.bf16.gmra.mxu0 %vm458_vm1, %v4371_v4 }
  0x4a   : > { %4231 = vmatmul.msk.bf16.gmra.mxu0 %vm458_vm1, %v4372_v5  ;;  %v4384_v5 = vld [vmem:[%s4861_s11 + $0x78] sm:$0xff] }
  0x5a   : > { %4232 = vmatmul.msk.bf16.gmra.mxu0 %vm458_vm1, %v4373_v6 }
  0x6a   : > { %4233 = vmatmul.msk.bf16.gmra.mxu0 %vm458_vm1, %v4374_v7 }
  0x7a   : > { %4234 = vmatmul.msk.bf16.gmra.mxu0 %vm458_vm1, %v4375_v8 }
  0x8a   : > { %4235 = vmatmul.msk.bf16.gmra.mxu0 %vm458_vm1, %v4376_v11 }
  0x97   : > { %v568_v13 = vpop.f32.mrf.mxu0 }
  0x98   : > { %v569_v15 = vadd.f32 %v4889_v14, %v568_v13  ;;  %v4385_v13 = vld [vmem:[%s4861_s11 + $0x80] sm:$0xff] }
  0x9a   : > { %4236 = vmatmul.msk.bf16.gmra.mxu0 %vm458_vm1, %v4377_v12  ;;  %v728_v18 = vmax.f32 %v569_v15, 0.0 }
  0x9f   : > { %v570_v16 = vpop.f32.mrf.mxu0 }
  0xa0   : > { %v571_v17 = vadd.f32 %v4889_v14, %v570_v16 }
  0xa2   : > { %v729_v19 = vmax.f32 %v571_v17, 0.0 }
  0xa4   : > { %v792_v20 = vpack.c.bf16 %v729_v19, %v728_v18 }
  0xa6   : > { %4268 = vmatmul.msk.bf16.vlgmr.msra.gmra.mxu1 %vm844_vm2, %v792_v20 }
  0xa7   : > { %v573_v22 = vpop.f32.mrf.mxu0 }
  0xa8   : > { %v574_v23 = vadd.f32 %v4889_v14, %v573_v22  ;;  %v4937_v22 = vld [vmem:[%s6493_s4] ss:$0 sm:$0xff] }
  0xaa   : > { %4237 = vmatmul.msk.bf16.gmra.mxu0 %vm458_vm1, %v4378_v21  ;;  %v730_v26 = vmax.f32 %v574_v23, 0.0 }
  0xaf   : > { %v575_v24 = vpop.f32.mrf.mxu0 }
  0xb0   : > { %v576_v25 = vadd.f32 %v4889_v14, %v575_v24  ;;  %v4386_v24 = vld [vmem:[%s4861_s11 + $0x88] sm:$0xff] }
  0xb2   : > { %v731_v27 = vmax.f32 %v576_v25, 0.0 }
  0xb4   : > { %v793_v28 = vpack.c.bf16 %v731_v27, %v730_v26 }
  0xb6   : > { %4269 = vmatmul.msk.bf16.gmra.mxu1 %vm844_vm2, %v793_v28 }
  0xb7   : > { %v578_v30 = vpop.f32.mrf.mxu0 }
  0xb8   : > { %v579_v31 = vadd.f32 %v4889_v14, %v578_v30 }
  0xba   : > { %4238 = vmatmul.msk.bf16.gmra.mxu0 %vm458_vm1, %v4379_v29  ;;  %v732_v34 = vmax.f32 %v579_v31, 0.0 }
  0xbf   : > { %v580_v32 = vpop.f32.mrf.mxu0 }
  0xc0   : > { %v581_v33 = vadd.f32 %v4889_v14, %v580_v32 }
  0xc2   : > { %v733_v35 = vmax.f32 %v581_v33, 0.0 }
  0xc4   : > { %v794_v36 = vpack.c.bf16 %v733_v35, %v732_v34 }
  0xc6   : > { %4270 = vmatmul.msk.bf16.gmra.mxu1 %vm844_vm2, %v794_v36 }
  0xc7   : > { %v583_v38 = vpop.f32.mrf.mxu0 }
  0xc8   : > { %v584_v39 = vadd.f32 %v4889_v14, %v583_v38 }
  0xca   : > { %4239 = vmatmul.msk.bf16.gmra.mxu0 %vm458_vm1, %v4380_v37  ;;  %v734_v42 = vmax.f32 %v584_v39, 0.0 }
  0xcf   : > { %v585_v40 = vpop.f32.mrf.mxu0 }
  0xd0   : > { %v586_v41 = vadd.f32 %v4889_v14, %v585_v40 }
  0xd2   : > { %v735_v43 = vmax.f32 %v586_v41, 0.0  ;;  %v4387_v41 = vld [vmem:[%s4861_s11 + $0x90] sm:$0xff] }
  0xd4   : > { %v795_v44 = vpack.c.bf16 %v735_v43, %v734_v42 }
  0xd6   : > { %4271 = vmatmul.msk.bf16.gmra.mxu1 %vm844_vm2, %v795_v44 }
  0xd7   : > { %v588_v46 = vpop.f32.mrf.mxu0 }
  0xd8   : > { %v589_v47 = vadd.f32 %v4889_v14, %v588_v46 }
  0xda   : > { %4240 = vmatmul.msk.bf16.gmra.mxu0 %vm458_vm1, %v4381_v45  ;;  %v736_v50 = vmax.f32 %v589_v47, 0.0 }
  0xdf   : > { %v590_v48 = vpop.f32.mrf.mxu0 }
  0xe0   : > { %v591_v49 = vadd.f32 %v4889_v14, %v590_v48 }
  0xe2   : > { %v737_v51 = vmax.f32 %v591_v49, 0.0 }
  0xe4   : > { %v796_v52 = vpack.c.bf16 %v737_v51, %v736_v50 }
  0xe6   : > { %4272 = vmatmul.msk.bf16.gmra.mxu1 %vm844_vm2, %v796_v52 }
  0xe7   : > { %v593_v54 = vpop.f32.mrf.mxu0 }
  0xe8   : > { %v594_v55 = vadd.f32 %v4889_v14, %v593_v54 }
  0xea   : > { %4241 = vmatmul.msk.bf16.gmra.mxu0 %vm458_vm1, %v4382_v53  ;;  %v738_v58 = vmax.f32 %v594_v55, 0.0 }
  0xef   : > { %v595_v56 = vpop.f32.mrf.mxu0 }
  0xf0   : > { %v596_v57 = vadd.f32 %v4889_v14, %v595_v56 }
  0xf2   : > { %v739_v59 = vmax.f32 %v596_v57, 0.0 }
  0xf4   : > { %v797_v60 = vpack.c.bf16 %v739_v59, %v738_v58  ;;  %v4388_v58 = vld [vmem:[%s4861_s11 + $0x98] sm:$0xff] }
  0xf6   : > { %4273 = vmatmul.msk.bf16.gmra.mxu1 %vm844_vm2, %v797_v60 }
  0xf7   : > { %v598_v62 = vpop.f32.mrf.mxu0 }
  0xf8   : > { %v599_v63 = vadd.f32 %v4889_v14, %v598_v62 }
  0xfa   : > { %4242 = vmatmul.msk.bf16.gmra.mxu0 %vm458_vm1, %v4383_v61  ;;  %v740_v2 = vmax.f32 %v599_v63, 0.0 }
  0xff   : > { %v600_v0 = vpop.f32.mrf.mxu0 }
 0x100   : > { %v601_v1 = vadd.f32 %v4889_v14, %v600_v0 }
 0x102   : > { %v741_v3 = vmax.f32 %v601_v1, 0.0 }
 0x104   : > { %v798_v4 = vpack.c.bf16 %v741_v3, %v740_v2 }
 0x106   : > { %4274 = vmatmul.msk.bf16.gmra.mxu1 %vm844_vm2, %v798_v4 }
 0x107   : > { %v603_v6 = vpop.f32.mrf.mxu0 }
 0x108   : > { %v604_v7 = vadd.f32 %v4889_v14, %v603_v6 }
 0x10a   : > { %4243 = vmatmul.msk.bf16.gmra.mxu0 %vm458_vm1, %v4384_v5  ;;  %v742_v10 = vmax.f32 %v604_v7, 0.0 }
 0x10f   : > { %v605_v8 = vpop.f32.mrf.mxu0 }
 0x110   : > { %v606_v9 = vadd.f32 %v4889_v14, %v605_v8 }
 0x112   : > { %v743_v11 = vmax.f32 %v606_v9, 0.0 }
 0x114   : > { %v799_v12 = vpack.c.bf16 %v743_v11, %v742_v10 }
 0x116   : > { %4275 = vmatmul.msk.bf16.gmra.mxu1 %vm844_vm2, %v799_v12 }
 0x117   : > { %v608_v15 = vpop.f32.mrf.mxu0 }
 0x118   : > { %v609_v16 = vadd.f32 %v4889_v14, %v608_v15 }
 0x11a   : > { %4244 = vmatmul.msk.bf16.gmra.mxu0 %vm458_vm1, %v4385_v13  ;;  %v744_v19 = vmax.f32 %v609_v16, 0.0 }
 0x11f   : > { %v610_v17 = vpop.f32.mrf.mxu0 }
 0x120   : > { %v611_v18 = vadd.f32 %v4889_v14, %v610_v17 }
 0x122   : > { %v745_v20 = vmax.f32 %v611_v18, 0.0 }
 0x123   : > { %v950_v21 = vpop.f32.mrf.mxu1 }
 0x124   : > { %v800_v23 = vpack.c.bf16 %v745_v20, %v744_v19  ;;  %v951_v26 = vadd.f32 %v4937_v22, %v950_v21 }
 0x126   : > { %4276 = vmatmul.msk.bf16.gmra.mxu1 %vm844_vm2, %v800_v23  ;;  %v1110_v28 = vpack.c.bf16 %v951_v26, %v951_v26 }
 0x127   : > { %v613_v25 = vpop.f32.mrf.mxu0 }
 0x128   : > { %v614_v30 = vadd.f32 %v4889_v14, %v613_v25  ;;  %v1176_v33 = vunpack.c.l.b16 %v1110_v28 }
 0x12a   : > { %4245 = vmatmul.msk.bf16.gmra.mxu0 %vm458_vm1, %v4386_v24  ;;  %v746_v36 = vmax.f32 %v614_v30, 0.0 }
 0x12b   : > { %v952_v27 = vpop.f32.mrf.mxu1 }
 0x12c   : > { %v953_v29 = vadd.f32 %v4937_v22, %v952_v27 }
 0x12e   : > { %v1111_v31 = vpack.c.bf16 %v953_v29, %v953_v29 }
 0x12f   : > { %v615_v32 = vpop.f32.mrf.mxu0 }
 0x130   : > { %v1177_v34 = vunpack.c.l.b16 %v1111_v31  ;;  %v616_v35 = vadd.f32 %v4889_v14, %v615_v32  ;;  %v4389_v31 = vld [vmem:[%s4861_s11 + $0xa0] sm:$0xff] }
 0x132   : > { %v747_v37 = vmax.f32 %v616_v35, 0.0  ;;  %v4946_v38 = vpack.c.b16 %v1177_v34, %v1176_v33 }
 0x133   : > { %v955_v39 = vpop.f32.mrf.mxu1 }
 0x134   : > { %2812 = vrot.lane.b32.xlu1 %v4946_v38, %s4772_s26  ;;  %1179 = vrot.lane.b32.xlu0 %v4946_v38, %s4773_s30  ;;  %v801_v40 = vpack.c.bf16 %v747_v37, %v746_v36  ;;  %v956_v43 = vadd.f32 %v4937_v22, %v955_v39 }
 0x136   : > { %4277 = vmatmul.msk.bf16.gmra.mxu1 %vm844_vm2, %v801_v40  ;;  %v1112_v45 = vpack.c.bf16 %v956_v43, %v956_v43 }
 0x137   : > { %v618_v42 = vpop.f32.mrf.mxu0 }
 0x138   : > { %v619_v47 = vadd.f32 %v4889_v14, %v618_v42  ;;  %v1203_v50 = vunpack.c.l.b16 %v1112_v45 }
 0x13a   : > { %4246 = vmatmul.msk.bf16.gmra.mxu0 %vm458_vm1, %v4387_v41  ;;  %v748_v53 = vmax.f32 %v619_v47, 0.0 }
 0x13b   : > { %v957_v44 = vpop.f32.mrf.mxu1 }
 0x13c   : > { %v958_v46 = vadd.f32 %v4937_v22, %v957_v44 }
 0x13e   : > { %v1113_v48 = vpack.c.bf16 %v958_v46, %v958_v46 }
 0x13f   : > { %v620_v49 = vpop.f32.mrf.mxu0 }
 0x140   : > { %v1204_v51 = vunpack.c.l.b16 %v1113_v48  ;;  %v621_v52 = vadd.f32 %v4889_v14, %v620_v49 }
 0x142   : > { %v749_v54 = vmax.f32 %v621_v52, 0.0  ;;  %v4959_v55 = vpack.c.b16 %v1204_v51, %v1203_v50  ;;  %v4390_v52 = vld [vmem:[%s4861_s11 + $0xa8] sm:$0xff] }
 0x143   : > { %v960_v56 = vpop.f32.mrf.mxu1 }
 0x144   : > { %1206 = vrot.lane.b32.xlu0 %v4959_v55, %s4773_s30  ;;  %v802_v57 = vpack.c.bf16 %v749_v54, %v748_v53  ;;  %v961_v60 = vadd.f32 %v4937_v22, %v960_v56 }
 0x146   : > { %4278 = vmatmul.msk.bf16.gmra.mxu1 %vm844_vm2, %v802_v57  ;;  %v1114_v62 = vpack.c.bf16 %v961_v60, %v961_v60 }
 0x147   : > { %v623_v59 = vpop.f32.mrf.mxu0 }
 0x148   : > { %v624_v0 = vadd.f32 %v4889_v14, %v623_v59  ;;  %v1230_v3 = vunpack.c.l.b16 %v1114_v62 }
 0x14a   : > { %4247 = vmatmul.msk.bf16.gmra.mxu0 %vm458_vm1, %v4388_v58  ;;  %v750_v6 = vmax.f32 %v624_v0, 0.0 }
 0x14b   : > { %v962_v61 = vpop.f32.mrf.mxu1 }
 0x14c   : > { %v963_v63 = vadd.f32 %v4937_v22, %v962_v61  ;;  %2837 = vrot.lane.b32.xlu0 %v4959_v55, %s4772_s26 }
 0x14e   : > { %v1115_v1 = vpack.c.bf16 %v963_v63, %v963_v63 }
 0x14f   : > { %v625_v2 = vpop.f32.mrf.mxu0 }
 0x150   : > { %v1231_v4 = vunpack.c.l.b16 %v1115_v1  ;;  %v626_v5 = vadd.f32 %v4889_v14, %v625_v2 }
 0x152   : > { %v751_v7 = vmax.f32 %v626_v5, 0.0  ;;  %v4972_v8 = vpack.c.b16 %v1231_v4, %v1230_v3 }
 0x153   : > { %v965_v9 = vpop.f32.mrf.mxu1 }
 0x154   : > { %2862 = vrot.lane.b32.xlu2 %v4972_v8, %s4772_s26  ;;  %1233 = vrot.lane.b32.xlu1 %v4972_v8, %s4773_s30  ;;  %v803_v10 = vpack.c.bf16 %v751_v7, %v750_v6  ;;  %v966_v12 = vadd.f32 %v4937_v22, %v965_v9 }
 0x156   : > { %4279 = vmatmul.msk.bf16.gmra.mxu1 %vm844_vm2, %v803_v10  ;;  %v1116_v15 = vpack.c.bf16 %v966_v12, %v966_v12 }
 0x157   : > { %v628_v11 = vpop.f32.mrf.mxu0 }
 0x158   : > { %v629_v17 = vadd.f32 %v4889_v14, %v628_v11  ;;  %v1257_v20 = vunpack.c.l.b16 %v1116_v15 }
 0x15a   : > { %v752_v24 = vmax.f32 %v629_v17, 0.0  ;;  %4248 = vmatmul.msk.bf16.gmra.mxu0 %vm458_vm1, %v4389_v31 }
 0x15b   : > { %v967_v13 = vpop.f32.mrf.mxu1 }
 0x15c   : > { %v968_v16 = vadd.f32 %v4937_v22, %v967_v13 }
 0x15e   : > { %v1117_v18 = vpack.c.bf16 %v968_v16, %v968_v16 }
 0x15f   : > { %v630_v19 = vpop.f32.mrf.mxu0 }
 0x160   : > { %v1258_v21 = vunpack.c.l.b16 %v1117_v18  ;;  %v631_v23 = vadd.f32 %v4889_v14, %v630_v19 }
 0x162   : > { %v753_v25 = vmax.f32 %v631_v23, 0.0  ;;  %v4983_v26 = vpack.c.b16 %v1258_v21, %v1257_v20 }
 0x163   : > { %v970_v27 = vpop.f32.mrf.mxu1 }
 0x164   : > { %v804_v28 = vpack.c.bf16 %v753_v25, %v752_v24  ;;  %1260 = vrot.lane.b32.xlu1 %v4983_v26, %s4773_s30  ;;  %2887 = vrot.lane.b32.xlu0 %v4983_v26, %s4772_s26  ;;  %v971_v30 = vadd.f32 %v4937_v22, %v970_v27 }
 0x166   : > { %4280 = vmatmul.msk.bf16.gmra.mxu1 %vm844_vm2, %v804_v28  ;;  %v1118_v33 = vpack.c.bf16 %v971_v30, %v971_v30 }
 0x167   : > { %v633_v29 = vpop.f32.mrf.mxu0 }
 0x168   : > { %v634_v35 = vadd.f32 %v4889_v14, %v633_v29  ;;  %v1284_v39 = vunpack.c.l.b16 %v1118_v33 }
 0x16a   : > { %v754_v42 = vmax.f32 %v634_v35, 0.0  ;;  %4249 = vmatmul.msk.bf16.gmra.mxu0 %vm458_vm1, %v4390_v52 }
 0x16b   : > { %v972_v32 = vpop.f32.mrf.mxu1 }
 0x16c   : > { %v973_v34 = vadd.f32 %v4937_v22, %v972_v32 }
 0x16e   : > { %v1119_v36 = vpack.c.bf16 %v973_v34, %v973_v34 }
 0x16f   : > { %v635_v37 = vpop.f32.mrf.mxu0 }
 0x170   : > { %v1285_v40 = vunpack.c.l.b16 %v1119_v36  ;;  %v636_v41 = vadd.f32 %v4889_v14, %v635_v37 }
 0x172   : > { %v755_v43 = vmax.f32 %v636_v41, 0.0  ;;  %v4996_v44 = vpack.c.b16 %v1285_v40, %v1284_v39 }
 0x173   : > { %v975_v45 = vpop.f32.mrf.mxu1 }
 0x174   : > { %v805_v46 = vpack.c.bf16 %v755_v43, %v754_v42  ;;  %1287 = vrot.lane.b32.xlu2 %v4996_v44, %s4773_s30  ;;  %2912 = vrot.lane.b32.xlu1 %v4996_v44, %s4772_s26  ;;  %v976_v48 = vadd.f32 %v4937_v22, %v975_v45 }
 0x176   : > { %4281 = vmatmul.msk.bf16.gmra.mxu1 %vm844_vm2, %v805_v46  ;;  %v1120_v50 = vpack.c.bf16 %v976_v48, %v976_v48 }
 0x177   : > { %v638_v47 = vpop.f32.mrf.mxu0 }
 0x178   : > { %v639_v53 = vadd.f32 %v4889_v14, %v638_v47  ;;  %v1311_v57 = vunpack.c.l.b16 %v1120_v50 }
 0x17a   : > { %v756_v60 = vmax.f32 %v639_v53, 0.0 }
 0x17b   : > { %v977_v49 = vpop.f32.mrf.mxu1 }
 0x17c   : > { %v978_v51 = vadd.f32 %v4937_v22, %v977_v49 }
 0x17e   : > { %v1121_v54 = vpack.c.bf16 %v978_v51, %v978_v51 }
 0x17f   : > { %v640_v56 = vpop.f32.mrf.mxu0 }
 0x180   : > { %v1312_v58 = vunpack.c.l.b16 %v1121_v54  ;;  %v641_v59 = vadd.f32 %v4889_v14, %v640_v56 }
 0x182   : > { %v757_v61 = vmax.f32 %v641_v59, 0.0  ;;  %v5009_v62 = vpack.c.b16 %v1312_v58, %v1311_v57 }
 0x183   : > { %v980_v63 = vpop.f32.mrf.mxu1 }
 0x184   : > { %v806_v0 = vpack.c.bf16 %v757_v61, %v756_v60  ;;  %1314 = vrot.lane.b32.xlu2 %v5009_v62, %s4773_s30  ;;  %v981_v2 = vadd.f32 %v4937_v22, %v980_v63 }
 0x186   : > { %4282 = vmatmul.msk.bf16.gmra.mxu1 %vm844_vm2, %v806_v0  ;;  %v1122_v4 = vpack.c.bf16 %v981_v2, %v981_v2 }
 0x187   : > { %v643_v1 = vpop.f32.mrf.mxu0 }
 0x188   : > { %v644_v6 = vadd.f32 %v4889_v14, %v643_v1  ;;  %v1338_v10 = vunpack.c.l.b16 %v1122_v4 }
 0x18a   : > { %v758_v13 = vmax.f32 %v644_v6, 0.0 }
 0x18b   : > { %v982_v3 = vpop.f32.mrf.mxu1 }
 0x18c   : > { %v983_v5 = vadd.f32 %v4937_v22, %v982_v3  ;;  %2937 = vrot.lane.b32.xlu2 %v5009_v62, %s4772_s26 }
 0x18e   : > { %v1123_v7 = vpack.c.bf16 %v983_v5, %v983_v5 }
 0x18f   : > { %v645_v9 = vpop.f32.mrf.mxu0 }
 0x190   : > { %v1339_v11 = vunpack.c.l.b16 %v1123_v7  ;;  %v646_v12 = vadd.f32 %v4889_v14, %v645_v9 }
 0x192   : > { %v759_v15 = vmax.f32 %v646_v12, 0.0  ;;  %v5020_v16 = vpack.c.b16 %v1339_v11, %v1338_v10  ;;  %v4391_v10 = vld [vmem:[%s4861_s11 + $0xb0] sm:$0xff] }
 0x193   : > { %v985_v17 = vpop.f32.mrf.mxu1  ;;  %4250 = vmatmul.msk.bf16.gmra.mxu0 %vm458_vm1, %v4391_v10 }
 0x194   : > { %v807_v18 = vpack.c.bf16 %v759_v15, %v758_v13  ;;  %1341 = vrot.lane.b32.xlu0 %v5020_v16, %s4773_s30  ;;  %v986_v20 = vadd.f32 %v4937_v22, %v985_v17 }
 0x196   : > { %4283 = vmatmul.msk.bf16.gmra.mxu1 %vm844_vm2, %v807_v18  ;;  %v1124_v23 = vpack.c.bf16 %v986_v20, %v986_v20 }
 0x197   : > { %v648_v19 = vpop.f32.mrf.mxu0 }
 0x198   : > { %v649_v25 = vadd.f32 %v4889_v14, %v648_v19  ;;  %v1365_v29 = vunpack.c.l.b16 %v1124_v23 }
 0x19a   : > { %v760_v32 = vmax.f32 %v649_v25, 0.0 }
 0x19b   : > { %v987_v21 = vpop.f32.mrf.mxu1 }
 0x19c   : > { %v988_v24 = vadd.f32 %v4937_v22, %v987_v21  ;;  %2962 = vrot.lane.b32.xlu0 %v5020_v16, %s4772_s26 }
 0x19e   : > { %v1125_v27 = vpack.c.bf16 %v988_v24, %v988_v24 }
 0x19f   : > { %v650_v28 = vpop.f32.mrf.mxu0 }
 0x1a0   : > { %v1366_v30 = vunpack.c.l.b16 %v1125_v27  ;;  %v651_v31 = vadd.f32 %v4889_v14, %v650_v28 }
 0x1a2   : > { %v761_v33 = vmax.f32 %v651_v31, 0.0  ;;  %v5031_v34 = vpack.c.b16 %v1366_v30, %v1365_v29 }
 0x1a3   : > { %v990_v35 = vpop.f32.mrf.mxu1 }
 0x1a4   : > { %v808_v36 = vpack.c.bf16 %v761_v33, %v760_v32  ;;  %1368 = vrot.lane.b32.xlu1 %v5031_v34, %s4773_s30  ;;  %v991_v41 = vadd.f32 %v4937_v22, %v990_v35 }
 0x1a6   : > { %4284 = vmatmul.msk.bf16.gmra.mxu1 %vm844_vm2, %v808_v36  ;;  %v1180_v37 = vpop.permute.xlu0 %1179  ;;  %v1126_v43 = vpack.c.bf16 %v991_v41, %v991_v41  ;;  %v5056_v2 = vpop.permute.xlu1 %2812 }
 0x1a7   : > { %v1185_v39 = vsel %vm844_vm2, %v1180_v37, 0  ;;  %v653_v40 = vpop.f32.mrf.mxu0 }
 0x1a8   : > { %1194 = vmatpush.bf16.xpose.msra.mxu2 %v1185_v39  ;;  %v654_v46 = vadd.f32 %v4889_v14, %v653_v40  ;;  %v1392_v49 = vunpack.c.l.b16 %v1126_v43 }
 0x1aa   : > { %v762_v51 = vmax.f32 %v654_v46, 0.0 }
 0x1ab   : > { %v992_v42 = vpop.f32.mrf.mxu1 }
 0x1ac   : > { %v993_v45 = vadd.f32 %v4937_v22, %v992_v42  ;;  %2987 = vrot.lane.b32.xlu1 %v5031_v34, %s4772_s26 }
 0x1ae   : > { %v1127_v47 = vpack.c.bf16 %v993_v45, %v993_v45  ;;  %v5067_v17 = vpop.permute.xlu2 %2862 }
 0x1af   : > { %4300 = vmatmul.msk.bf16.vlgmr.msra.gmra.mxu2 %vm844_vm2, %v4946_v38  ;;  %v655_v48 = vpop.f32.mrf.mxu0 }
 0x1b0   : > { %v1393_v50 = vunpack.c.l.b16 %v1127_v47  ;;  %v656_v52 = vadd.f32 %v4889_v14, %v655_v48 }
 0x1b2   : > { %v5045_v53 = vpack.c.b16 %v1393_v50, %v1392_v49  ;;  %v763_v54 = vmax.f32 %v656_v52, 0.0 }
 0x1b3   : > { %v995_v56 = vpop.f32.mrf.mxu1 }
 0x1b4   : > { %1395 = vrot.lane.b32.xlu2 %v5045_v53, %s4773_s30  ;;  %v809_v57 = vpack.c.bf16 %v763_v54, %v762_v51  ;;  %v996_v60 = vadd.f32 %v4937_v22, %v995_v56 }
 0x1b6   : > { %v1207_v58 = vpop.permute.xlu0 %1206  ;;  %4285 = vmatmul.msk.bf16.gmra.mxu1 %vm844_vm2, %v809_v57  ;;  %v1128_v63 = vpack.c.bf16 %v996_v60, %v996_v60 }
 0x1b7   : > { %v1212_v59 = vsel %vm844_vm2, %v1207_v58, 0  ;;  %v658_v38 = vpop.f32.mrf.mxu0  ;;  %v4392_v58 = vld [vmem:[%s4861_s11 + $0xb8] sm:$0xff] }
 0x1b8   : > { %1221 = vmatpush.bf16.xpose.msra.mxu3 %v1212_v59  ;;  %v659_v1 = vadd.f32 %v4889_v14, %v658_v38  ;;  %v1419_v5 = vunpack.c.l.b16 %v1128_v63  ;;  %4251 = vmatmul.msk.bf16.gmra.mxu0 %vm458_vm1, %v4392_v58 }
 0x1ba   : > { %v764_v7 = vmax.f32 %v659_v1, 0.0 }
 0x1bb   : > { %v997_v61 = vpop.f32.mrf.mxu1 }
 0x1bc   : > { %v998_v0 = vadd.f32 %v4937_v22, %v997_v61  ;;  %3012 = vrot.lane.b32.xlu2 %v5045_v53, %s4772_s26 }
 0x1be   : > { %v1129_v3 = vpack.c.bf16 %v998_v0, %v998_v0 }
 0x1bf   : > { %4301 = vmatmul.msk.bf16.vlgmr.msra.gmra.mxu3 %vm844_vm2, %v4959_v55  ;;  %v660_v4 = vpop.f32.mrf.mxu0 }
 0x1c0   : > { %v1420_v6 = vunpack.c.l.b16 %v1129_v3  ;;  %v661_v9 = vadd.f32 %v4889_v14, %v660_v4 }
 0x1c2   : > { %v5062_v11 = vpack.c.b16 %v1420_v6, %v1419_v5  ;;  %v765_v12 = vmax.f32 %v661_v9, 0.0  ;;  %v5115_v9 = vpop.permute.xlu0 %2837 }
 0x1c3   : > { %v1000_v13 = vpop.f32.mrf.mxu1 }
 0x1c4   : > { %1422 = vrot.lane.b32.xlu0 %v5062_v11, %s4773_s30  ;;  %v810_v15 = vpack.c.bf16 %v765_v12, %v764_v7  ;;  %v1001_v20 = vadd.f32 %v4937_v22, %v1000_v13 }
 0x1c6   : > { %v1234_v55 = vpop.permute.xlu1 %1233  ;;  %4286 = vmatmul.msk.bf16.gmra.mxu1 %vm844_vm2, %v810_v15  ;;  %v1130_v23 = vpack.c.bf16 %v1001_v20, %v1001_v20 }
 0x1c7   : > { %v1239_v18 = vsel %vm844_vm2, %v1234_v55, 0  ;;  %v663_v19 = vpop.f32.mrf.mxu0 }
 0x1c8   : > { %1248 = vmatpush.bf16.xpose.msrb.mxu2 %v1239_v18  ;;  %v664_v25 = vadd.f32 %v4889_v14, %v663_v19  ;;  %v1446_v31 = vunpack.c.l.b16 %v1130_v23  ;;  %v4393_v23 = vld [vmem:[%s4861_s11 + $0xc0] sm:$0xff] }
 0x1c9   : > { %4252 = vmatmul.msk.bf16.gmra.mxu0 %vm458_vm1, %v4393_v23 }
 0x1ca   : > { %v766_v33 = vmax.f32 %v664_v25, 0.0 }
 0x1cb   : > { %v1002_v21 = vpop.f32.mrf.mxu1 }
 0x1cc   : > { %v1003_v24 = vadd.f32 %v4937_v22, %v1002_v21  ;;  %3037 = vrot.lane.b32.xlu0 %v5062_v11, %s4772_s26 }
 0x1ce   : > { %v1131_v27 = vpack.c.bf16 %v1003_v24, %v1003_v24  ;;  %v1288_v28 = vpop.permute.xlu2 %1287 }
 0x1cf   : > { %v1293_v29 = vsel %vm844_vm2, %v1288_v28, 0  ;;  %4302 = vmatmul.msk.bf16.vlgmr.msrb.gmra.mxu2 %vm844_vm2, %v4972_v8  ;;  %v665_v30 = vpop.f32.mrf.mxu0 }
 0x1d0   : > { %v1447_v32 = vunpack.c.l.b16 %v1131_v27  ;;  %1302 = vmatpush.bf16.xpose.msra.mxu2 %v1293_v29  ;;  %v666_v35 = vadd.f32 %v4889_v14, %v665_v30 }
 0x1d2   : > { %v5080_v36 = vpack.c.b16 %v1447_v32, %v1446_v31  ;;  %v767_v37 = vmax.f32 %v666_v35, 0.0 }
 0x1d3   : > { %v1005_v39 = vpop.f32.mrf.mxu1 }
 0x1d4   : > { %1449 = vrot.lane.b32.xlu1 %v5080_v36, %s4773_s30  ;;  %3062 = vrot.lane.b32.xlu0 %v5080_v36, %s4772_s26  ;;  %v811_v40 = vpack.c.bf16 %v767_v37, %v766_v33  ;;  %v1006_v42 = vadd.f32 %v4937_v22, %v1005_v39 }
 0x1d6   : > { %v1261_v41 = vpop.permute.xlu1 %1260  ;;  %4287 = vmatmul.msk.bf16.gmra.mxu1 %vm844_vm2, %v811_v40  ;;  %v1132_v45 = vpack.c.bf16 %v1006_v42, %v1006_v42  ;;  %v5120_v55 = vpop.permute.xlu0 %2887 }
 0x1d7   : > { %v1266_v8 = vsel %vm844_vm2, %v1261_v41, 0  ;;  %v668_v56 = vpop.f32.mrf.mxu0 }
 0x1d8   : > { %1275 = vmatpush.bf16.xpose.msrb.mxu3 %v1266_v8  ;;  %v1473_v50 = vunpack.c.l.b16 %v1132_v45  ;;  %v669_v38 = vadd.f32 %v4889_v14, %v668_v56 }
 0x1da   : > { %v768_v1 = vmax.f32 %v669_v38, 0.0 }
 0x1db   : > { %v1007_v43 = vpop.f32.mrf.mxu1 }
 0x1dc   : > { %v1008_v46 = vadd.f32 %v4937_v22, %v1007_v43 }
 0x1de   : > { %v1133_v47 = vpack.c.bf16 %v1008_v46, %v1008_v46  ;;  %v1315_v48 = vpop.permute.xlu2 %1314 }
 0x1df   : > { %v1320_v49 = vsel %vm844_vm2, %v1315_v48, 0  ;;  %4303 = vmatmul.msk.bf16.vlgmr.msrb.gmra.mxu3 %vm844_vm2, %v4983_v26  ;;  %4304 = vmatmul.msk.bf16.vlgmr.msra.gmra.mxu2 %vm844_vm2, %v4996_v44  ;;  %v670_v61 = vpop.f32.mrf.mxu0 }
 0x1e0   : > { %v1474_v51 = vunpack.c.l.b16 %v1133_v47  ;;  %1329 = vmatpush.bf16.xpose.msra.mxu3 %v1320_v49  ;;  %v671_v3 = vadd.f32 %v4889_v14, %v670_v61 }
 0x1e2   : > { %v5095_v52 = vpack.c.b16 %v1474_v51, %v1473_v50  ;;  %v769_v5 = vmax.f32 %v671_v3, 0.0 }
 0x1e3   : > { %v1010_v54 = vpop.f32.mrf.mxu1 }
 0x1e4   : > { %1476 = vrot.lane.b32.xlu2 %v5095_v52, %s4773_s30  ;;  %3087 = vrot.lane.b32.xlu1 %v5095_v52, %s4772_s26  ;;  %v1011_v57 = vadd.f32 %v4937_v22, %v1010_v54  ;;  %v812_v7 = vpack.c.bf16 %v769_v5, %v768_v1 }
 0x1e6   : > { %v1134_v59 = vpack.c.bf16 %v1011_v57, %v1011_v57  ;;  %4288 = vmatmul.msk.bf16.gmra.mxu1 %vm844_vm2, %v812_v7  ;;  %v5132_v30 = vpop.permute.xlu2 %2937  ;;  %v5138_v8 = vpop.permute.xlu1 %2912 }
 0x1e7   : > { %v673_v12 = vpop.f32.mrf.mxu0 }
 0x1e8   : > { %v1500_v63 = vunpack.c.l.b16 %v1134_v59  ;;  %v674_v21 = vadd.f32 %v4889_v14, %v673_v12  ;;  %v4395_v12 = vld [vmem:[%s4861_s11 + $0xd0] sm:$0xff] }
 0x1ea   : > { %v770_v28 = vmax.f32 %v674_v21, 0.0 }
 0x1eb   : > { %v1012_v26 = vpop.f32.mrf.mxu1 }
 0x1ec   : > { %v1013_v44 = vadd.f32 %v4937_v22, %v1012_v26 }
 0x1ee   : > { %v1135_v60 = vpack.c.bf16 %v1013_v44, %v1013_v44 }
 0x1ef   : > { %4305 = vmatmul.msk.bf16.vlgmr.msra.gmra.mxu3 %vm844_vm2, %v5009_v62  ;;  %v675_v27 = vpop.f32.mrf.mxu0 }
 0x1f0   : > { %v1501_v0 = vunpack.c.l.b16 %v1135_v60  ;;  %v676_v29 = vadd.f32 %v4889_v14, %v675_v27  ;;  %v4394_v60 = vld [vmem:[%s4861_s11 + $0xc8] sm:$0xff] }
 0x1f1   : > { %4253 = vmatmul.msk.bf16.gmra.mxu0 %vm458_vm1, %v4394_v60 }
 0x1f2   : > { %v5109_v4 = vpack.c.b16 %v1501_v0, %v1500_v63  ;;  %v771_v32 = vmax.f32 %v676_v29, 0.0  ;;  %v4396_v29 = vld [vmem:[%s4861_s11 + $0xd8] sm:$0xff] }
 0x1f3   : > { %v1015_v6 = vpop.f32.mrf.mxu1 }
 0x1f4   : > { %3112 = vrot.lane.b32.xlu2 %v5109_v4, %s4772_s26  ;;  %1503 = vrot.lane.b32.xlu0 %v5109_v4, %s4773_s30  ;;  %v1016_v62 = vadd.f32 %v4937_v22, %v1015_v6  ;;  %v813_v37 = vpack.c.bf16 %v771_v32, %v770_v28 }
 0x1f6   : > { %v1136_v13 = vpack.c.bf16 %v1016_v62, %v1016_v62  ;;  %4289 = vmatmul.msk.bf16.gmra.mxu1 %vm844_vm2, %v813_v37 }
 0x1f8   : > { %v1527_v19 = vunpack.c.l.b16 %v1136_v13 }
 0x1fb   : > { %v1017_v10 = vpop.f32.mrf.mxu1 }
 0x1fc   : > { %v1018_v15 = vadd.f32 %v4937_v22, %v1017_v10 }
 0x1fe   : > { %v1137_v18 = vpack.c.bf16 %v1018_v15, %v1018_v15 }
 0x200   : > { %v1528_v20 = vunpack.c.l.b16 %v1137_v18 }
 0x201   : > { %4254 = vmatmul.msk.bf16.gmra.mxu0 %vm458_vm1, %v4395_v12 }
 0x202   : > { %v5124_v24 = vpack.c.b16 %v1528_v20, %v1527_v19 }
 0x203   : > { %v1020_v25 = vpop.f32.mrf.mxu1 }
 0x204   : > { %1530 = vrot.lane.b32.xlu1 %v5124_v24, %s4773_s30  ;;  %3137 = vrot.lane.b32.xlu0 %v5124_v24, %s4772_s26  ;;  %v1021_v35 = vadd.f32 %v4937_v22, %v1020_v25 }
 0x206   : > { %v1342_v31 = vpop.permute.xlu0 %1341  ;;  %v1138_v40 = vpack.c.bf16 %v1021_v35, %v1021_v35 }
 0x207   : > { %v1347_v33 = vsel %vm844_vm2, %v1342_v31, 0 }
 0x208   : > { %1356 = vmatpush.bf16.xpose.msrb.mxu2 %v1347_v33  ;;  %v1554_v46 = vunpack.c.l.b16 %v1138_v40 }
 0x20b   : > { %v1022_v39 = vpop.f32.mrf.mxu1 }
 0x20c   : > { %v1023_v41 = vadd.f32 %v4937_v22, %v1022_v39 }
 0x20e   : > { %v1139_v42 = vpack.c.bf16 %v1023_v41, %v1023_v41  ;;  %v1396_v43 = vpop.permute.xlu2 %1395  ;;  %v5166_v0 = vpop.permute.xlu0 %2962 }
 0x20f   : > { %v1401_v45 = vsel %vm844_vm2, %v1396_v43, 0  ;;  %4306 = vmatmul.msk.bf16.vlgmr.msrb.gmra.mxu2 %vm844_vm2, %v5020_v16 }
 0x210   : > { %v1555_v47 = vunpack.c.l.b16 %v1139_v42  ;;  %1410 = vmatpush.bf16.xpose.msra.mxu2 %v1401_v45  ;;  %v678_v21 = vpop.f32.mrf.mxu0 }
 0x211   : > { %v679_v27 = vadd.f32 %v4889_v14, %v678_v21  ;;  %4255 = vmatmul.msk.bf16.gmra.mxu0 %vm458_vm1, %v4396_v29 }
 0x212   : > { %v5143_v48 = vpack.c.b16 %v1555_v47, %v1554_v46 }
 0x213   : > { %v1025_v49 = vpop.f32.mrf.mxu1  ;;  %v772_v33 = vmax.f32 %v679_v27, 0.0 }
 0x214   : > { %1557 = vrot.lane.b32.xlu2 %v5143_v48, %s4773_s30  ;;  %v1026_v54 = vadd.f32 %v4937_v22, %v1025_v49 }
 0x216   : > { %v1369_v50 = vpop.permute.xlu1 %1368  ;;  %v1140_v57 = vpack.c.bf16 %v1026_v54, %v1026_v54  ;;  %v5174_v62 = vpop.permute.xlu2 %3012 }
 0x217   : > { %v1374_v51 = vsel %vm844_vm2, %v1369_v50, 0 }
 0x218   : > { %1383 = vmatpush.bf16.xpose.msrb.mxu3 %v1374_v51  ;;  %v1581_v26 = vunpack.c.l.b16 %v1140_v57  ;;  %v680_v32 = vpop.f32.mrf.mxu0 }
 0x21b   : > { %v1027_v56 = vpop.f32.mrf.mxu1 }
 0x21c   : > { %v1028_v16 = vadd.f32 %v4937_v22, %v1027_v56  ;;  %3162 = vrot.lane.b32.xlu2 %v5143_v48, %s4772_s26 }
 0x21e   : > { %v1141_v58 = vpack.c.bf16 %v1028_v16, %v1028_v16  ;;  %v5179_v15 = vpop.permute.xlu1 %2987 }
 0x21f   : > { %4307 = vmatmul.msk.bf16.vlgmr.msrb.gmra.mxu3 %vm844_vm2, %v5031_v34  ;;  %4308 = vmatmul.msk.bf16.vlgmr.msra.gmra.mxu2 %vm844_vm2, %v5045_v53 }
 0x220   : > { %v1582_v59 = vunpack.c.l.b16 %v1141_v58 }
 0x222   : > { %v5156_v44 = vpack.c.b16 %v1582_v59, %v1581_v26 }
 0x223   : > { %v1030_v38 = vpop.f32.mrf.mxu1 }
 0x224   : > { %3187 = vrot.lane.b32.xlu1 %v5156_v44, %s4772_s26  ;;  %1584 = vrot.lane.b32.xlu0 %v5156_v44, %s4773_s30  ;;  %v1031_v61 = vadd.f32 %v4937_v22, %v1030_v38 }
 0x226   : > { %v1142_v63 = vpack.c.bf16 %v1031_v61, %v1031_v61 }
 0x228   : > { %v1608_v3 = vunpack.c.l.b16 %v1142_v63 }
 0x22b   : > { %v1032_v34 = vpop.f32.mrf.mxu1 }
 0x22c   : > { %v1033_v53 = vadd.f32 %v4937_v22, %v1032_v34 }
 0x22e   : > { %v1143_v1 = vpack.c.bf16 %v1033_v53, %v1033_v53 }
 0x230   : > { %v1609_v5 = vunpack.c.l.b16 %v1143_v1 }
 0x232   : > { %v5168_v6 = vpack.c.b16 %v1609_v5, %v1608_v3  ;;  %v5184_v23 = vpop.f32.mrf.mxu2 }
 0x233   : > { %v1035_v7 = vpop.f32.mrf.mxu1  ;;  %v2039_v25 = vsel %vm2038_vm3, %v5184_v23, -inf }
 0x234   : > { %1611 = vrot.lane.b32.xlu1 %v5168_v6, %s4773_s30  ;;  %3212 = vrot.lane.b32.xlu0 %v5168_v6, %s4772_s26  ;;  %v1036_v40 = vadd.f32 %v4937_v22, %v1035_v7 }
 0x235   : > { %v683_v53 = vpop.f32.mrf.mxu0 }
 0x236   : > { %v1423_v10 = vpop.permute.xlu0 %1422  ;;  %v1144_v42 = vpack.c.bf16 %v1036_v40, %v1036_v40 }
 0x237   : > { %v1428_v13 = vsel %vm844_vm2, %v1423_v10, 0 }
 0x238   : > { %1437 = vmatpush.bf16.xpose.msra.mxu3 %v1428_v13  ;;  %v1635_v46 = vunpack.c.l.b16 %v1144_v42  ;;  %v4398_v42 = vld [vmem:[%s4861_s11 + $0xe8] sm:$0xff] }
 0x23a   : > { %v5202_v49 = vpop.f32.mrf.mxu2 }
 0x23b   : > { %v1037_v20 = vpop.f32.mrf.mxu1 }
 0x23c   : > { %v1038_v41 = vadd.f32 %v4937_v22, %v1037_v20 }
 0x23d   : > { %v685_v27 = vpop.f32.mrf.mxu0 }
 0x23e   : > { %v1477_v18 = vpop.permute.xlu2 %1476  ;;  %v1145_v43 = vpack.c.bf16 %v1038_v41, %v1038_v41  ;;  %v5200_v45 = vpop.permute.xlu0 %3037 }
 0x23f   : > { %v1482_v19 = vsel %vm844_vm2, %v1477_v18, 0  ;;  %4309 = vmatmul.msk.bf16.vlgmr.msra.gmra.mxu3 %vm844_vm2, %v5062_v11  ;;  %v681_v11 = vadd.f32 %v4889_v14, %v680_v32  ;;  %6506 = vst [vmem:[#allocation5_spill] sm:$0xff] %v5200_v45 }
 0x240   : > { %1491 = vmatpush.bf16.xpose.msrb.mxu3 %v1482_v19  ;;  %v1636_v47 = vunpack.c.l.b16 %v1145_v43  ;;  %v5234_v19 = vld [vmem:[%s6491_s2] ss:$0 sm:$0xff] }
 0x241   : > { %v773_v37 = vmax.f32 %v681_v11, 0.0  ;;  %v684_v20 = vadd.f32 %v5234_v19, %v683_v53  ;;  %v686_v32 = vadd.f32 %v5234_v19, %v685_v27 }
 0x242   : > { %v5204_v50 = vpop.f32.mrf.mxu3  ;;  %v5206_v51 = vpack.c.b16 %v1636_v47, %v1635_v46 }
 0x243   : > { %v1040_v35 = vpop.f32.mrf.mxu1  ;;  %v814_v39 = vpack.c.bf16 %v773_v37, %v772_v33  ;;  %v4397_v33 = vld [vmem:[%s4861_s11 + $0xe0] sm:$0xff]  ;;  %v775_v11 = vmax.f32 %v686_v32, 0.0 }
 0x244   : > { %v1041_v16 = vadd.f32 %v4937_v22, %v1040_v35  ;;  %4256 = vmatmul.msk.bf16.gmra.mxu0 %vm458_vm1, %v4397_v33 }
 0x245   : > { %2040 = vmax.xlane.f32.xlu2 %v2039_v25  ;;  %4290 = vmatmul.msk.bf16.gmra.mxu1 %vm844_vm2, %v814_v39 }
 0x246   : > { %v1450_v28 = vpop.permute.xlu1 %1449  ;;  %v5214_v56 = vpop.permute.xlu0 %3062  ;;  %v1146_v34 = vpack.c.bf16 %v1041_v16, %v1041_v16 }
 0x247   : > { %v1455_v31 = vsel %vm844_vm2, %v1450_v28, 0  ;;  %6507 = vst [vmem:[#allocation6_spill] sm:$0xff] %v5214_v56  ;;  %v688_v40 = vpop.f32.mrf.mxu0 }
 0x248   : > { %1464 = vmatpush.bf16.xpose.msrb.mxu2 %v1455_v31  ;;  %v1662_v5 = vunpack.c.l.b16 %v1146_v34  ;;  %v774_v31 = vmax.f32 %v684_v20, 0.0  ;;  %v689_v41 = vadd.f32 %v5234_v19, %v688_v40 }
 0x24b   : > { %v1042_v14 = vpop.f32.mrf.mxu1 }
 0x24c   : > { %v1043_v58 = vadd.f32 %v4937_v22, %v1042_v14  ;;  %v776_v14 = vmax.f32 %v689_v41, 0.0 }
 0x24e   : > { %v5224_v59 = vpop.permute.xlu2 %3112  ;;  %v1147_v63 = vpack.c.bf16 %v1043_v58, %v1043_v58 }
 0x24f   : > { %4310 = vmatmul.msk.bf16.vlgmr.msrb.gmra.mxu2 %vm844_vm2, %v5080_v36  ;;  %4311 = vmatmul.msk.bf16.vlgmr.msrb.gmra.mxu3 %vm844_vm2, %v5095_v52  ;;  %v2042_v36 = vsel %vm2038_vm3, %v5202_v49, -inf  ;;  %v2045_v52 = vsel %vm2038_vm3, %v5204_v50, -inf  ;;  %6508 = vst [vmem:[#allocation7_spill] sm:$0xff] %v5224_v59  ;;  %v690_v43 = vpop.f32.mrf.mxu0 }
 0x250   : > { %v1663_v7 = vunpack.c.l.b16 %v1147_v63  ;;  %v691_v46 = vadd.f32 %v5234_v19, %v690_v43 }
 0x252   : > { %v5216_v57 = vpop.f32.mrf.mxu2  ;;  %v5240_v25 = vpack.c.b16 %v1663_v7, %v1662_v5 }
 0x253   : > { %v1045_v54 = vpop.f32.mrf.mxu1  ;;  %v2051_v26 = vsel %vm2038_vm3, %v5216_v57, -inf }
 0x254   : > { %v1046_v1 = vadd.f32 %v4937_v22, %v1045_v54  ;;  %4257 = vmatmul.msk.bf16.gmra.mxu0 %vm458_vm1, %v4398_v42 }
 0x256   : > { %v5229_v10 = vpop.permute.xlu1 %3087  ;;  %v1148_v12 = vpack.c.bf16 %v1046_v1, %v1046_v1 }
 0x257   : > { %6509 = vst [vmem:[#allocation8_spill] sm:$0xff] %v5229_v10 }
 0x258   : > { %v1689_v28 = vunpack.c.l.b16 %v1148_v12 }
 0x25a   : > { %v5286_v20 = vpop.f32.mrf.mxu2 }
 0x25b   : > { %v1047_v61 = vpop.f32.mrf.mxu1  ;;  %v2054_v32 = vsel %vm2038_vm3, %v5286_v20, -inf }
 0x25c   : > { %v1048_v3 = vadd.f32 %v4937_v22, %v1047_v61 }
 0x25d   : > { %1638 = vrot.lane.b32.xlu2 %v5206_v51, %s4773_s30 }
 0x25e   : > { %2043 = vmax.xlane.f32.xlu0 %v2042_v36  ;;  %2046 = vmax.xlane.f32.xlu1 %v2045_v52  ;;  %v1149_v18 = vpack.c.bf16 %v1048_v3, %v1048_v3  ;;  %v5263_v36 = vpop.f32.mrf.mxu3  ;;  %v777_v52 = vmax.f32 %v691_v46, 0.0 }
 0x260   : > { %v1690_v29 = vunpack.c.l.b16 %v1149_v18  ;;  %v816_v54 = vpack.c.bf16 %v777_v52, %v776_v14 }
 0x262   : > { %v5247_v37 = vpack.c.b16 %v1690_v29, %v1689_v28 }
 0x263   : > { %v1050_v47 = vpop.f32.mrf.mxu1 }
 0x264   : > { %v1051_v61 = vadd.f32 %v4937_v22, %v1050_v47 }
 0x265   : > { %3237 = vrot.lane.b32.xlu2 %v5206_v51, %s4772_s26 }
 0x266   : > { %2052 = vmax.xlane.f32.xlu1 %v2051_v26  ;;  %v1504_v38 = vpop.permute.xlu0 %1503  ;;  %v5271_v26 = vpop.f32.mrf.mxu3  ;;  %v1150_v53 = vpack.c.bf16 %v1051_v61, %v1051_v61 }
 0x267   : > { %v1509_v60 = vsel %vm844_vm2, %v1504_v38, 0 }
 0x268   : > { %1518 = vmatpush.bf16.xpose.msra.mxu2 %v1509_v60  ;;  %v1716_v7 = vunpack.c.l.b16 %v1150_v53  ;;  %v5319_v53 = vpop.f32.mrf.mxu2 }
 0x26b   : > { %v1052_v58 = vpop.f32.mrf.mxu1 }
 0x26c   : > { %v1053_v34 = vadd.f32 %v4937_v22, %v1052_v58 }
 0x26e   : > { %v1558_v13 = vpop.permute.xlu2 %1557  ;;  %v1151_v1 = vpack.c.bf16 %v1053_v34, %v1053_v34  ;;  %v5281_v5 = vpop.f32.mrf.mxu3 }
 0x26f   : > { %v1563_v21 = vsel %vm844_vm2, %v1558_v13, 0  ;;  %4312 = vmatmul.msk.bf16.vlgmr.msra.gmra.mxu2 %vm844_vm2, %v5109_v4  ;;  %v815_v4 = vpack.c.bf16 %v775_v11, %v774_v31  ;;  %v4400_v13 = vld [vmem:[%s4861_s11 + $0xf8] sm:$0xff]  ;;  %v2060_v18 = vsel %vm2038_vm3, %v5281_v5, -inf  ;;  %v693_v28 = vpop.f32.mrf.mxu0 }
 0x270   : > { %1572 = vmatpush.bf16.xpose.msrb.mxu2 %v1563_v21  ;;  %v1717_v12 = vunpack.c.l.b16 %v1151_v1  ;;  %v694_v11 = vadd.f32 %v5234_v19, %v693_v28 }
 0x271   : > { %4291 = vmatmul.msk.bf16.gmra.mxu1 %vm844_vm2, %v815_v4 }
 0x272   : > { %1665 = vrot.lane.b32.xlu0 %v5240_v25, %s4773_s30  ;;  %v5288_v21 = vpack.c.b16 %v1717_v12, %v1716_v7  ;;  %v778_v40 = vmax.f32 %v694_v11, 0.0  ;;  %v2063_v7 = vsel %vm2038_vm3, %v5319_v53, -inf  ;;  %v2057_v11 = vsel %vm2038_vm3, %v5271_v26, -inf }
 0x273   : > { %v1055_v63 = vpop.f32.mrf.mxu1 }
 0x274   : > { %v1056_v31 = vadd.f32 %v4937_v22, %v1055_v63 }
 0x276   : > { %v1531_v35 = vpop.permute.xlu1 %1530  ;;  %v5267_v16 = vpop.permute.xlu0 %3137 }
 0x277   : > { %v1536_v39 = vsel %vm844_vm2, %v1531_v35, 0  ;;  %6510 = vst [vmem:[#allocation9_spill] sm:$0xff] %v5267_v16  ;;  %v1152_v35 = vpack.c.bf16 %v1056_v31, %v1056_v31  ;;  %v5302_v42 = vpop.permute.xlu2 %3162 }
 0x278   : > { %1545 = vmatpush.bf16.xpose.msra.mxu3 %v1536_v39  ;;  %v695_v39 = vpop.f32.mrf.mxu0  ;;  %6512 = vst [vmem:[#allocation11_spill] sm:$0xff] %v5302_v42 }
 0x279   : > { %v696_v41 = vadd.f32 %v5234_v19, %v695_v39  ;;  %v1743_v43 = vunpack.c.l.b16 %v1152_v35  ;;  %v5341_v35 = vpop.f32.mrf.mxu2 }
 0x27a   : > { %3287 = vrot.lane.b32.xlu0 %v5247_v37, %s4772_s26 }
 0x27b   : > { %v1057_v27 = vpop.f32.mrf.mxu1  ;;  %v779_v46 = vmax.f32 %v696_v41, 0.0 }
 0x27c   : > { %v1058_v33 = vadd.f32 %v4937_v22, %v1057_v27 }
 0x27d   : > { %v817_v47 = vpack.c.bf16 %v779_v46, %v778_v40  ;;  %v2066_v40 = vsel %vm2038_vm3, %v5341_v35, -inf }
 0x27e   : > { %v1153_v4 = vpack.c.bf16 %v1058_v33, %v1058_v33 }
 0x27f   : > { %3262 = vrot.lane.b32.xlu1 %v5240_v25, %s4772_s26  ;;  %4313 = vmatmul.msk.bf16.vlgmr.msra.gmra.mxu3 %vm844_vm2, %v5124_v24  ;;  %v2048_v24 = vsel %vm2038_vm3, %v5263_v36, -inf }
 0x280   : > { %4314 = vmatmul.msk.bf16.vlgmr.msrb.gmra.mxu2 %vm844_vm2, %v5143_v48  ;;  %v4399_v48 = vld [vmem:[%s4861_s11 + $0xf0] sm:$0xff]  ;;  %v1744_v14 = vunpack.c.l.b16 %v1153_v4  ;;  %v698_v22 = vpop.f32.mrf.mxu0  ;;  %s218_s11 = sand.u32 1, %s4762_s19  }
 0x281   : > { %4292 = vmatmul.msk.bf16.gmra.mxu1 %vm844_vm2, %v816_v54  ;;  %4258 = vmatmul.msk.bf16.gmra.mxu0 %vm458_vm1, %v4399_v48  ;;  %s4096_s12 = sshll.u32 %s218_s11, 3  ;;  %s4018_s22 = scalar_lea.sflag [#allocation3], %s218_s11 }
 0x282   : > { %v5304_v52 = vpack.c.b16 %v1744_v14, %v1743_v43  ;;  %s220_s17 = scalar_lea.vmem [#allocation2], %s4096_s12 }
 0x283   : > { %s4030_s23 = sshll.u32 %s220_s17, 4  ;;  %s4031_s23 = int_to_ptr.vmem [resolvable:$true] %s4030_s23 }
 0x288   : > { %v700_v48 = vpop.f32.mrf.mxu0 }
 0x289   : > { %v701_v58 = vadd.f32 %v5234_v19, %v700_v48 }
 0x28b   : > { %v781_v61 = vmax.f32 %v701_v58, 0.0 }
 0x28e   : > { %2049 = vmax.xlane.f32.xlu2 %v2048_v24  ;;  %v699_v24 = vadd.f32 %v5234_v19, %v698_v22  ;;  %v5354_v22 = vld [vmem:[%s6493_s4] ss:$0 sm:$0xff] }
 0x290   : > { %v703_v63 = vpop.f32.mrf.mxu0 }
 0x291   : > { %4259 = vmatmul.msk.bf16.gmra.mxu0 %vm458_vm1, %v4400_v13  ;;  %4293 = vmatmul.msk.bf16.gmra.mxu1 %vm844_vm2, %v817_v47  ;;  %v704_v1 = vadd.f32 %v5234_v19, %v703_v63 }
 0x293   : > { %v782_v13 = vmax.f32 %v704_v1, 0.0 }
 0x296   : > { %v1585_v38 = vpop.permute.xlu0 %1584  ;;  %v5277_v3 = vpop.permute.xlu1 %3187 }
 0x297   : > { %v1590_v60 = vsel %vm844_vm2, %v1585_v38, 0  ;;  %6511 = vst [vmem:[#allocation10_spill] sm:$0xff] %v5277_v3 }
 0x298   : > { %1599 = vmatpush.bf16.xpose.msrb.mxu3 %v1590_v60  ;;  %v705_v12 = vpop.f32.mrf.mxu0 }
 0x29f   : > { %4315 = vmatmul.msk.bf16.vlgmr.msrb.gmra.mxu3 %vm844_vm2, %v5156_v44 }
 0x2a4   : > { %2061 = vmax.xlane.f32.xlu0 %v2060_v18  ;;  %v706_v18 = vadd.f32 %v5234_v19, %v705_v12 }
 0x2a6   : > { %v1612_v29 = vpop.permute.xlu1 %1611  ;;  %1719 = vrot.lane.b32.xlu2 %v5288_v21, %s4773_s30  ;;  %v783_v27 = vmax.f32 %v706_v18, 0.0 }
 0x2a7   : > { %v1617_v44 = vsel %vm844_vm2, %v1612_v29, 0  ;;  %v5325_v29 = vpop.permute.xlu0 %3212 }
 0x2a8   : > { %1626 = vmatpush.bf16.xpose.msra.mxu2 %v1617_v44  ;;  %v819_v28 = vpack.c.bf16 %v783_v27, %v782_v13  ;;  %6513 = vst [vmem:[#allocation12_spill] sm:$0xff] %v5325_v29 }
 0x2a9   : > { %2055 = vmax.xlane.f32.xlu1 %v2054_v32 }
 0x2af   : > { %4316 = vmatmul.msk.bf16.vlgmr.msra.gmra.mxu2 %vm844_vm2, %v5168_v6  ;;  %v780_v6 = vmax.f32 %v699_v24, 0.0 }
 0x2b1   : > { %v818_v34 = vpack.c.bf16 %v781_v61, %v780_v6 }
 0x2b3   : > { %4294 = vmatmul.msk.bf16.gmra.mxu1 %vm844_vm2, %v818_v34 }
 0x2b8   : > { %v5307_v54 = vpop.xlane.xlu2 %2040  ;;  %1746 = vrot.lane.b32.xlu0 %v5304_v52, %s4773_s30 }
 0x2c0   : > { %v1639_v38 = vpop.permute.xlu2 %1638 }
 0x2c1   : > { %v1644_v60 = vsel %vm844_vm2, %v1639_v38, 0  ;;  %v708_v39 = vpop.f32.mrf.mxu0 }
 0x2c2   : > { %1692 = vrot.lane.b32.xlu1 %v5247_v37, %s4773_s30  ;;  %1653 = vmatpush.bf16.xpose.msra.mxu3 %v1644_v60  ;;  %v1060_v4 = vpop.f32.mrf.mxu1  ;;  %v709_v43 = vadd.f32 %v5234_v19, %v708_v39  ;;  %v5360_v60 = vpop.f32.mrf.mxu2 }
 0x2c3   : > { %4295 = vmatmul.msk.bf16.gmra.mxu1 %vm844_vm2, %v819_v28  ;;  %v1061_v24 = vadd.f32 %v5354_v22, %v1060_v4 }
 0x2c4   : > { %v784_v47 = vmax.f32 %v709_v43, 0.0 }
 0x2c5   : > { %v1154_v61 = vpack.c.bf16 %v1061_v24, %v1061_v24 }
 0x2c7   : > { %v1770_v1 = vunpack.c.l.b16 %v1154_v61 }
 0x2c8   : > { %v5347_v41 = vpop.permute.xlu2 %3237 }
 0x2c9   : > { %4317 = vmatmul.msk.bf16.vlgmr.msra.gmra.mxu3 %vm844_vm2, %v5206_v51  ;;  %v5330_v51 = vpop.f32.mrf.mxu3  ;;  %6514 = vst [vmem:[#allocation13_spill] sm:$0xff] %v5347_v41  ;;  %v710_v46 = vpop.f32.mrf.mxu0 }
 0x2ca   : > { %v2069_v31 = vsel %vm2038_vm3, %v5330_v51, -inf  ;;  %v1062_v14 = vpop.f32.mrf.mxu1  ;;  %v5367_v28 = vpop.f32.mrf.mxu2 }
 0x2cb   : > { %v1063_v48 = vadd.f32 %v5354_v22, %v1062_v14  ;;  %v2078_v4 = vsel %vm2038_vm3, %v5367_v28, -inf }
 0x2cd   : > { %v1155_v34 = vpack.c.bf16 %v1063_v48, %v1063_v48 }
 0x2cf   : > { %2064 = vmax.xlane.f32.xlu2 %v2063_v7  ;;  %v1771_v7 = vunpack.c.l.b16 %v1155_v34 }
 0x2d1   : > { %v5328_v44 = vpop.xlane.xlu0 %2043  ;;  %v713_v63 = vpop.f32.mrf.mxu0  ;;  %v5365_v27 = vpack.c.b16 %v1771_v7, %v1770_v1 }
 0x2d2   : > { %v714_v13 = vadd.f32 %v5234_v19, %v713_v63  ;;  %v5374_v43 = vpop.xlane.xlu1 %2046  ;;  %v5382_v48 = vpop.f32.mrf.mxu3 }
 0x2d3   : > { %v2072_v1 = vsel %vm2038_vm3, %v5382_v48, -inf }
 0x2e2   : > { %2070 = vmax.xlane.f32.xlu0 %v2069_v31  ;;  %v715_v31 = vpop.f32.mrf.mxu0 }
 0x2e4   : > { %v1666_v32 = vpop.permute.xlu0 %1665 }
 0x2e5   : > { %v1671_v33 = vsel %vm844_vm2, %v1666_v32, 0 }
 0x2e6   : > { %1680 = vmatpush.bf16.xpose.msrb.mxu2 %v1671_v33  ;;  %v786_v33 = vmax.f32 %v714_v13, 0.0 }
 0x2e7   : > { %3312 = vrot.lane.b32.xlu2 %v5288_v21, %s4772_s26 }
 0x2ec   : > { %2058 = vmax.xlane.f32.xlu1 %v2057_v11  ;;  %v716_v11 = vadd.f32 %v5234_v19, %v715_v31  ;;  %v5389_v13 = vpop.permute.xlu0 %3287 }
 0x2ed   : > { %4318 = vmatmul.msk.bf16.vlgmr.msrb.gmra.mxu2 %vm844_vm2, %v5240_v25  ;;  %v711_v25 = vadd.f32 %v5234_v19, %v710_v46  ;;  %6515 = vst [vmem:[#allocation14_spill] sm:$0xff] %v5389_v13 }
 0x2ee   : > { %v1065_v32 = vpop.f32.mrf.mxu1  ;;  %v787_v39 = vmax.f32 %v716_v11, 0.0 }
 0x2ef   : > { %v785_v6 = vmax.f32 %v711_v25, 0.0  ;;  %v1066_v25 = vadd.f32 %v5354_v22, %v1065_v32 }
 0x2f1   : > { %v820_v38 = vpack.c.bf16 %v785_v6, %v784_v47  ;;  %v5384_v6 = vpop.xlane.xlu1 %2052  ;;  %v1156_v63 = vpack.c.bf16 %v1066_v25, %v1066_v25 }
 0x2f3   : > { %4296 = vmatmul.msk.bf16.gmra.mxu1 %vm844_vm2, %v820_v38  ;;  %v1797_v31 = vunpack.c.l.b16 %v1156_v63 }
 0x2f4   : > { %2067 = vmax.xlane.f32.xlu1 %v2066_v40  ;;  %v821_v40 = vpack.c.bf16 %v787_v39, %v786_v33  ;;  %v5391_v33 = vpop.f32.mrf.mxu3 }
 0x2f6   : > { %3337 = vrot.lane.b32.xlu0 %v5304_v52, %s4772_s26  ;;  %v1067_v46 = vpop.f32.mrf.mxu1 }
 0x2f7   : > { %v1068_v24 = vadd.f32 %v5354_v22, %v1067_v46 }
 0x2f9   : > { %v5394_v11 = vpop.permute.xlu1 %3262 }
 0x2fa   : > { %6516 = vst [vmem:[#allocation15_spill] sm:$0xff] %v5394_v11 }
 0x2fe   : > { %v718_v14 = vpop.f32.mrf.mxu0  ;;  %v1070_v7 = vpop.f32.mrf.mxu1 }
 0x2ff   : > { %v719_v47 = vadd.f32 %v5234_v19, %v718_v14 }
 0x301   : > { %v5358_v58 = vpop.xlane.xlu2 %2049  ;;  %v788_v61 = vmax.f32 %v719_v47, 0.0 }
 0x303   : > { %4297 = vmatmul.msk.bf16.gmra.mxu1 %vm844_vm2, %v821_v40  ;;  %v2081_v40 = vsel %vm2038_vm3, %v5391_v33, -inf }
 0x306   : > { %v720_v38 = vpop.f32.mrf.mxu0  ;;  %v1072_v46 = vpop.f32.mrf.mxu1 }
 0x307   : > { %v721_v34 = vadd.f32 %v5234_v19, %v720_v38  ;;  %v1073_v38 = vadd.f32 %v5354_v22, %v1072_v46 }
 0x309   : > { %v1720_v12 = vpop.permute.xlu2 %1719 }
 0x30a   : > { %v1725_v18 = vsel %vm844_vm2, %v1720_v12, 0  ;;  %v789_v12 = vmax.f32 %v721_v34, 0.0 }
 0x30b   : > { %1734 = vmatpush.bf16.xpose.msra.mxu2 %v1725_v18 }
 0x30c   : > { %v822_v18 = vpack.c.bf16 %v789_v12, %v788_v61  ;;  %v1159_v12 = vpack.c.bf16 %v1073_v38, %v1073_v38 }
 0x30d   : > { %1773 = vrot.lane.b32.xlu1 %v5365_v27, %s4773_s30 }
 0x310   : > { %2079 = vmax.xlane.f32.xlu2 %v2078_v4  ;;  %v723_v4 = vpop.f32.mrf.mxu0 }
 0x311   : > { %v724_v47 = vadd.f32 %v5234_v19, %v723_v4 }
 0x312   : > { %4320 = vmatmul.msk.bf16.vlgmr.msra.gmra.mxu2 %vm844_vm2, %v5288_v21  ;;  %v1157_v21 = vpack.c.bf16 %v1068_v24, %v1068_v24  ;;  %v1071_v24 = vadd.f32 %v5354_v22, %v1070_v7 }
 0x313   : > { %4298 = vmatmul.msk.bf16.gmra.mxu1 %vm844_vm2, %v822_v18  ;;  %v790_v34 = vmax.f32 %v724_v47, 0.0 }
 0x314   : > { %v1798_v32 = vunpack.c.l.b16 %v1157_v21 }
 0x316   : > { %v5396_v39 = vpack.c.b16 %v1798_v32, %v1797_v31  ;;  %v1075_v32 = vpop.f32.mrf.mxu1 }
 0x317   : > { %v5402_v14 = vpop.xlane.xlu0 %2061 }
 0x318   : > { %v725_v61 = vpop.f32.mrf.mxu0 }
 0x319   : > { %v726_v63 = vadd.f32 %v5234_v19, %v725_v61  ;;  %v2075_v19 = vsel %vm2038_vm3, %v5360_v60, -inf }
 0x31b   : > { %v791_v21 = vmax.f32 %v726_v63, 0.0 }
 0x31c   : > { %v5405_v25 = vpop.xlane.xlu1 %2055 }
 0x31d   : > { %v823_v31 = vpack.c.bf16 %v791_v21, %v790_v34 }
 0x31e   : > { %v1077_v38 = vpop.f32.mrf.mxu1 }
 0x320   : > { %2073 = vmax.xlane.f32.xlu0 %v2072_v1  ;;  %v1158_v1 = vpack.c.bf16 %v1071_v24, %v1071_v24 }
 0x322   : > { %v1824_v4 = vunpack.c.l.b16 %v1158_v1 }
 0x323   : > { %4299 = vmatmul.msk.bf16.gmra.mxu1 %vm844_vm2, %v823_v31 }
 0x328   : > { %2082 = vmax.xlane.f32.xlu0 %v2081_v40  ;;  %1800 = vrot.lane.b32.xlu2 %v5396_v39, %s4773_s30  ;;  %v1825_v40 = vunpack.c.l.b16 %v1159_v12 }
 0x32a   : > { %v1747_v18 = vpop.permute.xlu0 %1746  ;;  %v5417_v24 = vpack.c.b16 %v1825_v40, %v1824_v4  ;;  %v5431_v40 = vpop.f32.mrf.mxu2 }
 0x32b   : > { %v1752_v46 = vsel %vm844_vm2, %v1747_v18, 0 }
 0x330   : > { %3387 = vrot.lane.b32.xlu2 %v5396_v39, %s4772_s26  ;;  %v1080_v61 = vpop.f32.mrf.mxu1 }
 0x331   : > { %v1081_v34 = vadd.f32 %v5354_v22, %v1080_v61  ;;  %v1078_v61 = vadd.f32 %v5354_v22, %v1077_v38 }
 0x333   : > { %v1162_v63 = vpack.c.bf16 %v1081_v34, %v1081_v34 }
 0x334   : > { %v1693_v7 = vpop.permute.xlu1 %1692 }
 0x335   : > { %v1698_v47 = vsel %vm844_vm2, %v1693_v7, 0  ;;  %v1878_v12 = vunpack.c.l.b16 %v1162_v63  ;;  %v5435_v7 = vpop.f32.mrf.mxu3 }
 0x336   : > { %1707 = vmatpush.bf16.xpose.msrb.mxu3 %v1698_v47 }
 0x337   : > { %2076 = vmax.xlane.f32.xlu1 %v2075_v19  ;;  %v1076_v19 = vadd.f32 %v5354_v22, %v1075_v32 }
 0x338   : > { %v1082_v21 = vpop.f32.mrf.mxu1 }
 0x339   : > { %v1083_v1 = vadd.f32 %v5354_v22, %v1082_v21  ;;  %v1160_v63 = vpack.c.bf16 %v1076_v19, %v1076_v19  ;;  %v1161_v21 = vpack.c.bf16 %v1078_v61, %v1078_v61 }
 0x33b   : > { %v1163_v18 = vpack.c.bf16 %v1083_v1, %v1083_v1 }
 0x33c   : > { %1827 = vrot.lane.b32.xlu0 %v5417_v24, %s4773_s30 }
 0x33d   : > { %4319 = vmatmul.msk.bf16.vlgmr.msrb.gmra.mxu3 %vm844_vm2, %v5247_v37  ;;  %v1879_v31 = vunpack.c.l.b16 %v1163_v18  ;;  %v2087_v37 = vsel %vm2038_vm3, %v5431_v40, -inf }
 0x33e   : > { %1761 = vmatpush.bf16.xpose.msra.mxu3 %v1752_v46  ;;  %v5437_v46 = vpop.f32.mrf.mxu3 }
 0x33f   : > { %v5429_v4 = vpack.c.b16 %v1879_v31, %v1878_v12  ;;  %v2231_v12 = vsub.f32 %v5184_v23, %v5307_v54  ;;  %v1851_v31 = vunpack.c.l.b16 %v1160_v63  ;;  %v2232_v23 = vsub.f32 %v5202_v49, %v5328_v44 }
 0x340   : > { %v1085_v47 = vpop.f32.mrf.mxu1  ;;  %v2084_v54 = vsel %vm2038_vm3, %v5435_v7, -inf }
 0x341   : > { %v2295_v38 = vmul.f32 1.442695, %v2231_v12 }
 0x342   : > { %v5447_v18 = vpop.xlane.xlu2 %2064 }
 0x343   : > { %4448 = vpow2.f32 %v2295_v38  ;;  %v2239_v56 = vsub.f32 %v5319_v53, %v5447_v18 }
 0x348   : > { %v1087_v1 = vpop.f32.mrf.mxu1 }
 0x349   : > { %v1088_v32 = vadd.f32 %v5354_v22, %v1087_v1  ;;  %v2297_v1 = vmul.f32 1.442695, %v2232_v23  ;;  %v5465_v12 = vpop.eup %4448 }
 0x34b   : > { %v1165_v61 = vpack.c.bf16 %v1088_v32, %v1088_v32  ;;  %4450 = vpow2.f32 %v2297_v1 }
 0x34d   : > { %4321 = vmatmul.msk.bf16.vlgmr.msra.gmra.mxu3 %vm844_vm2, %v5304_v52  ;;  %v2093_v52 = vsel %vm2038_vm3, %v5437_v46, -inf }
 0x350   : > { %3362 = vrot.lane.b32.xlu1 %v5365_v27, %s4772_s26 }
 0x359   : > { %2088 = vmax.xlane.f32.xlu2 %v2087_v37  ;;  %v1852_v37 = vunpack.c.l.b16 %v1161_v21  ;;  %v1906_v21 = vunpack.c.l.b16 %v1165_v61 }
 0x35b   : > { %v5453_v13 = vpack.c.b16 %v1852_v37, %v1851_v31 }
 0x35f   : > { %v5443_v34 = vpop.xlane.xlu1 %2058 }
 0x366   : > { %2094 = vmax.xlane.f32.xlu0 %v2093_v52  ;;  %v1086_v52 = vadd.f32 %v5354_v22, %v1085_v47  ;;  %v5463_v47 = vpop.permute.xlu2 %3312 }
 0x367   : > { %v5455_v11 = vpop.xlane.xlu1 %2067  ;;  %6517 = vst [vmem:[#allocation16_spill] sm:$0xff] %v5463_v47 }
 0x368   : > { %v1164_v19 = vpack.c.bf16 %v1086_v52, %v1086_v52  ;;  %v2423_v52 = vsel %vm2038_vm3, %v5465_v12, 0.0  ;;  %v2240_v18 = vsub.f32 %v5341_v35, %v5455_v11 }
 0x36a   : > { %v1905_v63 = vunpack.c.l.b16 %v1164_v19  ;;  %v5477_v19 = vpop.eup %4450 }
 0x36c   : > { %v5467_v31 = vpack.c.b16 %v1906_v21, %v1905_v63 }
 0x36e   : > { %6518 = vst [vmem:[#allocation17_spill] sm:$0xff] %v5467_v31 }
 0x370   : > { %v1090_v44 = vpop.f32.mrf.mxu1 }
 0x371   : > { %3412 = vrot.lane.b32.xlu2 %v5417_v24, %s4772_s26  ;;  %v1091_v38 = vadd.f32 %v5354_v22, %v1090_v44 }
 0x373   : > { %v1166_v61 = vpack.c.bf16 %v1091_v38, %v1091_v38  ;;  %v5487_v38 = vpop.f32.mrf.mxu2 }
 0x374   : > { %v2090_v41 = vsel %vm2038_vm3, %v5487_v38, -inf }
 0x375   : > { %v1932_v1 = vunpack.c.l.b16 %v1166_v61  ;;  %v5498_v61 = vpop.f32.mrf.mxu3 }
 0x378   : > { %v1092_v23 = vpop.f32.mrf.mxu1 }
 0x379   : > { %v1093_v63 = vadd.f32 %v5354_v22, %v1092_v23 }
 0x37a   : > { %2085 = vmax.xlane.f32.xlu1 %v2084_v54  ;;  %3437 = vrot.lane.b32.xlu0 %v5453_v13, %s4772_s26  ;;  %v2426_v54 = vsel %vm2038_vm3, %v5477_v19, 0.0 }
 0x37f   : > { %v1774_v37 = vpop.permute.xlu1 %1773 }
 0x380   : > { %v1779_v49 = vsel %vm844_vm2, %v1774_v37, 0  ;;  %v1167_v37 = vpack.c.bf16 %v1093_v63, %v1093_v63 }
 0x381   : > { %1788 = vmatpush.bf16.xpose.msrb.mxu2 %v1779_v49  ;;  %v5484_v49 = vpop.xlane.xlu0 %2070 }
 0x382   : > { %2424 = vadd.xlane.f32.xlu1 %v2423_v52  ;;  %1908 = vrot.lane.b32.xlu0 %v5467_v31, %s4773_s30  ;;  %v1933_v52 = vunpack.c.l.b16 %v1167_v37 }
 0x383   : > { %v5474_v32 = vpop.xlane.xlu2 %2079 }
 0x384   : > { %v5489_v47 = vpack.c.b16 %v1933_v52, %v1932_v1  ;;  %v2096_v1 = vsel %vm2038_vm3, %v5498_v61, -inf }
 0x386   : > { %6519 = vst [vmem:[#allocation18_spill] sm:$0xff] %v5489_v47 }
 0x388   : > { %4322 = vmatmul.msk.bf16.vlgmr.msrb.gmra.mxu2 %vm844_vm2, %v5365_v27  ;;  %v1095_v27 = vpop.f32.mrf.mxu1 }
 0x389   : > { %v1096_v23 = vadd.f32 %v5354_v22, %v1095_v27 }
 0x38a   : > { %2427 = vadd.xlane.f32.xlu1 %v2426_v54  ;;  %v5494_v54 = vpop.permute.xlu0 %3337 }
 0x38b   : > { %v1801_v21 = vpop.permute.xlu2 %1800  ;;  %6520 = vst [vmem:[#allocation19_spill] sm:$0xff] %v5494_v54  ;;  %v1168_v63 = vpack.c.bf16 %v1096_v23, %v1096_v23 }
 0x38c   : > { %v1806_v44 = vsel %vm844_vm2, %v1801_v21, 0  ;;  %v5500_v21 = vpop.f32.mrf.mxu2 }
 0x38d   : > { %1815 = vmatpush.bf16.xpose.msrb.mxu3 %v1806_v44  ;;  %v1959_v52 = vunpack.c.l.b16 %v1168_v63 }
 0x390   : > { %v1097_v37 = vpop.f32.mrf.mxu1 }
 0x391   : > { %v1098_v44 = vadd.f32 %v5354_v22, %v1097_v37 }
 0x392   : > { %2091 = vmax.xlane.f32.xlu1 %v2090_v41  ;;  %v2237_v41 = vsub.f32 %v5271_v26, %v5443_v34 }
 0x393   : > { %v1169_v27 = vpack.c.bf16 %v1098_v44, %v1098_v44  ;;  %v2074_v54 = vpop.xlane.xlu0 %2073 }
 0x394   : > { %4323 = vmatmul.msk.bf16.vlgmr.msrb.gmra.mxu3 %vm844_vm2, %v5396_v39  ;;  %v2307_v39 = vmul.f32 1.442695, %v2237_v41  ;;  %v5509_v16 = vpop.f32.mrf.mxu2  ;;  %v2242_v42 = vsub.f32 %v5382_v48, %v2074_v54 }
 0x395   : > { %v1960_v29 = vunpack.c.l.b16 %v1169_v27 }
 0x396   : > { %4452 = vpow2.f32 %v2307_v39  ;;  %v2317_v37 = vmul.f32 1.442695, %v2242_v42 }
 0x397   : > { %v5507_v3 = vpack.c.b16 %v1960_v29, %v1959_v52 }
 0x398   : > { %v1100_v23 = vpop.f32.mrf.mxu1  ;;  %4454 = vpow2.f32 %v2317_v37 }
 0x399   : > { %6521 = vst [vmem:[#allocation20_spill] sm:$0xff] %v5507_v3  ;;  %v1101_v10 = vadd.f32 %v5354_v22, %v1100_v23 }
 0x39a   : > { %2097 = vmax.xlane.f32.xlu2 %v2096_v1 }
 0x39b   : > { %v5513_v59 = vpop.xlane.xlu0 %2082  ;;  %v1170_v26 = vpack.c.bf16 %v1101_v10, %v1101_v10 }
 0x39c   : > { %v5515_v34 = vpop.eup %4452  ;;  %v5518_v44 = vpop.f32.mrf.mxu2 }
 0x39d   : > { %v2441_v42 = vsel %vm2038_vm3, %v5515_v34, 0.0  ;;  %v1986_v48 = vunpack.c.l.b16 %v1170_v26 }
 0x39e   : > { %v5528_v37 = vpop.eup %4454 }
 0x39f   : > { %v2456_v26 = vsel %vm2038_vm3, %v5528_v37, 0.0 }
 0x3a0   : > { %v1102_v63 = vpop.f32.mrf.mxu1 }
 0x3a1   : > { %v1103_v1 = vadd.f32 %v5354_v22, %v1102_v63 }
 0x3a3   : > { %v1171_v54 = vpack.c.bf16 %v1103_v1, %v1103_v1 }
 0x3a4   : > { %v5536_v63 = vpop.f32.mrf.mxu2 }
 0x3a5   : > { %v1987_v10 = vunpack.c.l.b16 %v1171_v54 }
 0x3a7   : > { %v5526_v23 = vpack.c.b16 %v1987_v10, %v1986_v48 }
 0x3a8   : > { %v1105_v54 = vpop.f32.mrf.mxu1 }
 0x3a9   : > { %6522 = vst [vmem:[#allocation21_spill] sm:$0xff] %v5526_v23 }
 0x3aa   : > { %v2077_v29 = vpop.xlane.xlu1 %2076 }
 0x3ab   : > { %v2243_v41 = vsub.f32 %v5360_v60, %v2077_v29  ;;  %1854 = vrot.lane.b32.xlu1 %v5453_v13, %s4773_s30  ;;  %v2244_v60 = vsub.f32 %v5367_v28, %v5474_v32 }
 0x3ac   : > { %2442 = vadd.xlane.f32.xlu0 %v2441_v42  ;;  %v5544_v32 = vpop.f32.mrf.mxu2  ;;  %v2233_v42 = vsub.f32 %v5204_v50, %v5374_v43 }
 0x3ad   : > { %v2319_v52 = vmul.f32 1.442695, %v2243_v41  ;;  %v2321_v1 = vmul.f32 1.442695, %v2244_v60 }
 0x3ae   : > { %v1828_v27 = vpop.permute.xlu0 %1827 }
 0x3af   : > { %v1833_v39 = vsel %vm844_vm2, %v1828_v27, 0  ;;  %4456 = vpow2.f32 %v2319_v52  ;;  %v2235_v52 = vsub.f32 %v5216_v57, %v5384_v6  ;;  %v2234_v27 = vsub.f32 %v5263_v36, %v5358_v58 }
 0x3b0   : > { %1842 = vmatpush.bf16.xpose.msra.mxu2 %v1833_v39  ;;  %4458 = vpow2.f32 %v2321_v1  ;;  %v1107_v43 = vpop.f32.mrf.mxu1  ;;  %v2236_v57 = vsub.f32 %v5286_v20, %v5405_v25 }
 0x3b1   : > { %v2303_v50 = vmul.f32 1.442695, %v2235_v52  ;;  %v2301_v60 = vmul.f32 1.442695, %v2234_v27  ;;  %v1108_v1 = vadd.f32 %v5354_v22, %v1107_v43  ;;  %v2099_v43 = vsel %vm2038_vm3, %v5500_v21, -inf }
 0x3b2   : > { %1881 = vrot.lane.b32.xlu2 %v5429_v4, %s4773_s30 }
 0x3b3   : > { %v1173_v58 = vpack.c.bf16 %v1108_v1, %v1108_v1 }
 0x3b4   : > { %2457 = vadd.xlane.f32.xlu0 %v2456_v26  ;;  %v5552_v10 = vpop.f32.mrf.mxu2  ;;  %v1106_v26 = vadd.f32 %v5354_v22, %v1105_v54 }
 0x3b5   : > { %v5540_v29 = vpop.eup %4456  ;;  %v2126_v39 = vsel %vm2038_vm3, %v5552_v10, -inf  ;;  %v2014_v54 = vunpack.c.l.b16 %v1173_v58  ;;  %v5598_v58 = vpop.permute.xlu2 %3387 }
 0x3b6   : > { %v2459_v28 = vsel %vm2038_vm3, %v5540_v29, 0.0  ;;  %v5546_v41 = vpop.eup %4458  ;;  %v1172_v6 = vpack.c.bf16 %v1106_v26, %v1106_v26  ;;  %v2102_v26 = vsel %vm2038_vm3, %v5509_v16, -inf  ;;  %6525 = vst [vmem:[#allocation24_spill] sm:$0xff] %v5598_v58 }
 0x3b7   : > { %4324 = vmatmul.msk.bf16.vlgmr.msra.gmra.mxu2 %vm844_vm2, %v5417_v24  ;;  %v2462_v48 = vsel %vm2038_vm3, %v5546_v41, 0.0  ;;  %v2299_v24 = vmul.f32 1.442695, %v2233_v42  ;;  %v2305_v42 = vmul.f32 1.442695, %v2236_v57 }
 0x3b9   : > { %4460 = vpow2.f32 %v2299_v24  ;;  %v2013_v24 = vunpack.c.l.b16 %v1172_v6 }
 0x3ba   : > { %4462 = vpow2.f32 %v2303_v50 }
 0x3bb   : > { %4464 = vpow2.f32 %v2301_v60  ;;  %v5574_v20 = vpack.c.b16 %v2014_v54, %v2013_v24  ;;  %v2238_v60 = vsub.f32 %v5281_v5, %v5402_v14 }
 0x3bc   : > { %2460 = vadd.xlane.f32.xlu0 %v2459_v28  ;;  %4466 = vpow2.f32 %v2305_v42 }
 0x3bd   : > { %6523 = vst [vmem:[#allocation22_spill] sm:$0xff] %v5574_v20  ;;  %v2309_v57 = vmul.f32 1.442695, %v2238_v60 }
 0x3bf   : > { %v5562_v28 = vpop.eup %4460  ;;  %4468 = vpow2.f32 %v2309_v57 }
 0x3c0   : > { %v2429_v36 = vsel %vm2038_vm3, %v5562_v28, 0.0 }
 0x3c2   : > { %v5594_v6 = vpop.permute.xlu1 %3362 }
 0x3c3   : > { %6524 = vst [vmem:[#allocation23_spill] sm:$0xff] %v5594_v6 }
 0x3c4   : > { %2463 = vadd.xlane.f32.xlu0 %v2462_v48  ;;  %v5568_v48 = vpop.eup %4462 }
 0x3c5   : > { %v5570_v52 = vpop.eup %4464  ;;  %v2435_v22 = vsel %vm2038_vm3, %v5568_v48, 0.0 }
 0x3c6   : > { %v2432_v25 = vsel %vm2038_vm3, %v5570_v52, 0.0  ;;  %v5578_v27 = vpop.eup %4466 }
 0x3c7   : > { %v2438_v50 = vsel %vm2038_vm3, %v5578_v27, 0.0  ;;  %v5602_v24 = vpop.eup %4468 }
 0x3c8   : > { %v2444_v14 = vsel %vm2038_vm3, %v5602_v24, 0.0 }
 0x3cc   : > { %2127 = vmax.xlane.f32.xlu0 %v2126_v39  ;;  %v5582_v39 = vpop.f32.mrf.mxu3  ;;  %v5606_v54 = vpop.xlane.xlu2 %2088 }
 0x3d4   : > { %v5592_v1 = vpop.f32.mrf.mxu3 }
 0x3d5   : > { %2430 = vadd.xlane.f32.xlu1 %v2429_v36  ;;  %v2105_v36 = vsel %vm2038_vm3, %v5582_v39, -inf }
 0x3d9   : > { %v2095_v58 = vpop.xlane.xlu0 %2094 }
 0x3da   : > { %v2249_v6 = vsub.f32 %v5437_v46, %v2095_v58  ;;  %v2311_v58 = vmul.f32 1.442695, %v2239_v56 }
 0x3db   : > { %2436 = vadd.xlane.f32.xlu2 %v2435_v22 }
 0x3dc   : > { %v5600_v42 = vpop.f32.mrf.mxu3 }
 0x3dd   : > { %2433 = vadd.xlane.f32.xlu1 %v2432_v25 }
 0x3e0   : > { %2016 = vrot.lane.b32.xlu0 %v5574_v20, %s4773_s30 }
 0x3e3   : > { %2439 = vadd.xlane.f32.xlu2 %v2438_v50 }
 0x3e4   : > { %v5608_v22 = vpop.f32.mrf.mxu3 }
 0x3e5   : > { %2100 = vmax.xlane.f32.xlu1 %v2099_v43  ;;  %v2108_v43 = vsel %vm2038_vm3, %v5592_v1, -inf }
 0x3eb   : > { %2103 = vmax.xlane.f32.xlu2 %v2102_v26  ;;  %v5617_v26 = vpop.permute.xlu2 %3412 }
 0x3ec   : > { %6526 = vst [vmem:[#allocation25_spill] sm:$0xff] %v5617_v26  ;;  %v5619_v57 = vpop.f32.mrf.mxu3  ;;  %v5632_v26 = vpop.permute.xlu0 %3437 }
 0x3ed   : > { %v2086_v5 = vpop.xlane.xlu1 %2085  ;;  %6527 = vst [vmem:[#allocation26_spill] sm:$0xff] %v5619_v57 }
 0x3ee   : > { %v2246_v25 = vsub.f32 %v5435_v7, %v2086_v5  ;;  %6529 = vst [vmem:[#allocation28_spill] sm:$0xff] %v5632_v26 }
 0x3f0   : > { %v2325_v60 = vmul.f32 1.442695, %v2246_v25 }
 0x3f2   : > { %4470 = vpow2.f32 %v2325_v60 }
 0x3f3   : > { %2106 = vmax.xlane.f32.xlu2 %v2105_v36  ;;  %v2129_v36 = vsel %vm2038_vm3, %v5619_v57, -inf }
 0x3f5   : > { %v5613_v50 = vpop.xlane.xlu1 %2424 }
 0x3f8   : > { %v5627_v5 = vpop.eup %4470 }
 0x3f9   : > { %6528 = vst [vmem:[#allocation27_spill] sm:$0xff] %v5627_v5  ;;  %v2468_v25 = vsel %vm2038_vm3, %v5627_v5, 0.0 }
 0x3fb   : > { %2445 = vadd.xlane.f32.xlu2 %v2444_v14 }
 0x3fd   : > { %v5623_v14 = vpop.xlane.xlu1 %2427 }
 0x3fe   : > { %3462 = vrot.lane.b32.xlu1 %v5429_v4, %s4772_s26 }
 0x403   : > { %2109 = vmax.xlane.f32.xlu2 %v2108_v43  ;;  %v2331_v43 = vmul.f32 1.442695, %v2249_v6  ;;  %v1909_v6 = vpop.permute.xlu0 %1908 }
 0x405   : > { %v5634_v60 = vpop.xlane.xlu1 %2091  ;;  %4472 = vpow2.f32 %v2331_v43  ;;  %v2241_v43 = vsub.f32 %v5330_v51, %v5484_v49 }
 0x406   : > { %4474 = vpow2.f32 %v2311_v58 }
 0x407   : > { %v2315_v58 = vmul.f32 1.442695, %v2241_v43 }
 0x40a   : > { %2130 = vmax.xlane.f32.xlu0 %v2129_v36  ;;  %v5636_v36 = vpop.f32.mrf.mxu3 }
 0x40b   : > { %v2132_v46 = vsel %vm2038_vm3, %v5636_v36, -inf  ;;  %v5646_v5 = vpop.eup %4472 }
 0x40c   : > { %v5653_v56 = vpop.eup %4474 }
 0x40d   : > { %v5625_v7 = vpop.xlane.xlu2 %2097 }
 0x412   : > { %2469 = vadd.xlane.f32.xlu0 %v2468_v25  ;;  %v1914_v25 = vsel %vm844_vm2, %v1909_v6, 0 }
 0x415   : > { %v1882_v45 = vpop.permute.xlu2 %1881 }
 0x416   : > { %v1887_v57 = vsel %vm844_vm2, %v1882_v45, 0  ;;  %v2477_v45 = vsel %vm2038_vm3, %v5646_v5, 0.0 }
 0x417   : > { %1896 = vmatpush.bf16.xpose.msrb.mxu2 %v1887_v57  ;;  %v2313_v57 = vmul.f32 1.442695, %v2240_v18 }
 0x419   : > { %4476 = vpow2.f32 %v2313_v57 }
 0x41a   : > { %2133 = vmax.xlane.f32.xlu0 %v2132_v46  ;;  %4478 = vpow2.f32 %v2315_v58 }
 0x41b   : > { %1935 = vrot.lane.b32.xlu2 %v5489_v47, %s4773_s30 }
 0x41d   : > { %v1855_v26 = vpop.permute.xlu1 %1854 }
 0x41e   : > { %v1860_v53 = vsel %vm844_vm2, %v1855_v26, 0  ;;  %4326 = vmatmul.msk.bf16.vlgmr.msrb.gmra.mxu2 %vm844_vm2, %v5429_v4  ;;  %v2447_v26 = vsel %vm2038_vm3, %v5653_v56, 0.0  ;;  %v2111_v4 = vsel %vm2038_vm3, %v5518_v44, -inf }
 0x41f   : > { %1869 = vmatpush.bf16.xpose.msra.mxu3 %v1860_v53  ;;  %v5665_v46 = vpop.eup %4476 }
 0x420   : > { %v2450_v35 = vsel %vm2038_vm3, %v5665_v46, 0.0  ;;  %v5673_v11 = vpop.eup %4478 }
 0x421   : > { %v2453_v51 = vsel %vm2038_vm3, %v5673_v11, 0.0 }
 0x422   : > { %2478 = vadd.xlane.f32.xlu0 %v2477_v45 }
 0x426   : > { %4325 = vmatmul.msk.bf16.vlgmr.msra.gmra.mxu3 %vm844_vm2, %v5453_v13  ;;  %v2114_v13 = vsel %vm2038_vm3, %v5536_v63, -inf }
 0x427   : > { %1923 = vmatpush.bf16.xpose.msrb.mxu3 %v1914_v25 }
 0x428   : > { %2448 = vadd.xlane.f32.xlu1 %v2447_v26 }
 0x430   : > { %2112 = vmax.xlane.f32.xlu1 %v2111_v4 }
 0x436   : > { %4327 = vmatmul.msk.bf16.vlgmr.msrb.gmra.mxu3 %vm844_vm2, %v5467_v31 }
 0x438   : > { %2451 = vadd.xlane.f32.xlu1 %v2450_v35 }
 0x440   : > { %2115 = vmax.xlane.f32.xlu1 %v2114_v13 }
 0x444   : > { %2454 = vadd.xlane.f32.xlu2 %v2453_v51 }
 0x448   : > { %v2431_v49 = vpop.xlane.xlu1 %2430 }
 0x449   : > { %4480 = vrcp.f32 %v2431_v49 }
 0x44e   : > { %v2437_v6 = vpop.xlane.xlu2 %2436 }
 0x44f   : > { %4482 = vrcp.f32 %v2437_v6  ;;  %v4481_v53 = vpop.eup %4480 }
 0x450   : > { %v2434_v25 = vpop.xlane.xlu1 %2433  ;;  %v2681_v45 = vmul.f32 %v4481_v53, %v5562_v28 }
 0x451   : > { %4484 = vrcp.f32 %v2434_v25 }
 0x452   : > { %v2745_v4 = vpack.c.bf16 %v2681_v45, %v2681_v45 }
 0x454   : > { %v5682_v13 = vunpack.c.l.b16 %v2745_v4  ;;  %v2443_v4 = vpop.xlane.xlu0 %2442 }
 0x455   : > { %v4483_v18 = vpop.eup %4482 }
 0x456   : > { %v2440_v26 = vpop.xlane.xlu2 %2439  ;;  %v2683_v58 = vmul.f32 %v4483_v18, %v5568_v48 }
 0x457   : > { %v4485_v57 = vpop.eup %4484  ;;  %4486 = vrcp.f32 %v2440_v26 }
 0x458   : > { %v2682_v43 = vmul.f32 %v4485_v57, %v5570_v52  ;;  %v2747_v49 = vpack.c.bf16 %v2683_v58, %v2683_v58 }
 0x459   : > { %1962 = vrot.lane.b32.xlu1 %v5507_v3, %s4773_s30 }
 0x45a   : > { %v2746_v35 = vpack.c.bf16 %v2682_v43, %v2682_v43  ;;  %v5692_v18 = vunpack.c.l.b16 %v2747_v49 }
 0x45c   : > { %v5684_v51 = vunpack.c.l.b16 %v2746_v35  ;;  %1989 = vrot.lane.b32.xlu2 %v5526_v23, %s4773_s30 }
 0x45d   : > { %v4487_v28 = vpop.eup %4486 }
 0x45e   : > { %v2684_v52 = vmul.f32 %v4487_v28, %v5578_v27  ;;  %v2104_v25 = vpop.xlane.xlu2 %2103 }
 0x45f   : > { %v2252_v53 = vsub.f32 %v5509_v16, %v2104_v25 }
 0x460   : > { %v2748_v45 = vpack.c.bf16 %v2684_v52, %v2684_v52 }
 0x461   : > { %v2337_v48 = vmul.f32 1.442695, %v2252_v53 }
 0x462   : > { %v5694_v26 = vunpack.c.l.b16 %v2748_v45 }
 0x463   : > { %4488 = vpow2.f32 %v2337_v48 }
 0x464   : > { %4490 = vrcp.f32 %v2443_v4  ;;  %v2247_v4 = vsub.f32 %v5431_v40, %v5606_v54  ;;  %v2123_v40 = vsel %vm2038_vm3, %v5544_v32, -inf }
 0x466   : > { %v5698_v43 = vpop.xlane.xlu2 %2106  ;;  %v2327_v57 = vmul.f32 1.442695, %v2247_v4 }
 0x469   : > { %v5700_v58 = vpop.eup %4488 }
 0x46a   : > { %v2486_v27 = vsel %vm2038_vm3, %v5700_v58, 0.0  ;;  %v4491_v35 = vpop.eup %4490 }
 0x46b   : > { %2487 = vadd.xlane.f32.xlu0 %v2486_v27  ;;  %v2685_v28 = vmul.f32 %v4491_v35, %v5515_v34  ;;  %v2117_v35 = vsel %vm2038_vm3, %v5600_v42, -inf }
 0x46d   : > { %v2749_v52 = vpack.c.bf16 %v2685_v28, %v2685_v28  ;;  %v2248_v28 = vsub.f32 %v5487_v38, %v5634_v60  ;;  %v2101_v38 = vpop.xlane.xlu1 %2100 }
 0x46e   : > { %v2446_v16 = vpop.xlane.xlu2 %2445 }
 0x46f   : > { %4492 = vrcp.f32 %v2446_v16  ;;  %v5708_v48 = vunpack.c.l.b16 %v2749_v52 }
 0x470   : > { %4494 = vpow2.f32 %v2327_v57  ;;  %v5735_v57 = vpop.f32.mrf.mxu2 }
 0x475   : > { %v4493_v49 = vpop.eup %4492 }
 0x476   : > { %v2686_v25 = vmul.f32 %v4493_v49, %v5602_v24  ;;  %v5706_v53 = vpop.xlane.xlu2 %2109  ;;  %v2245_v24 = vsub.f32 %v5391_v33, %v5513_v59  ;;  %v2329_v49 = vmul.f32 1.442695, %v2248_v28  ;;  %v5727_v52 = vpop.eup %4494  ;;  %v2120_v59 = vsel %vm2038_vm3, %v5608_v22, -inf }
 0x477   : > { %v2471_v33 = vsel %vm2038_vm3, %v5727_v52, 0.0  ;;  %v2135_v28 = vsel %vm2038_vm3, %v5735_v57, -inf  ;;  %v2254_v27 = vsub.f32 %v5592_v1, %v5706_v53 }
 0x478   : > { %v2750_v45 = vpack.c.bf16 %v2686_v25, %v2686_v25  ;;  %v2323_v54 = vmul.f32 1.442695, %v2245_v24  ;;  %v5744_v24 = vpop.f32.mrf.mxu2 }
 0x47a   : > { %v5710_v6 = vunpack.c.l.b16 %v2750_v45  ;;  %4496 = vpow2.f32 %v2323_v54  ;;  %v2251_v45 = vsub.f32 %v5500_v21, %v2101_v38  ;;  %v2250_v21 = vsub.f32 %v5498_v61, %v5625_v7 }
 0x47b   : > { %4498 = vpow2.f32 %v2329_v49 }
 0x47c   : > { %v2333_v49 = vmul.f32 1.442695, %v2250_v21 }
 0x47e   : > { %v1936_v16 = vpop.permute.xlu2 %1935 }
 0x47f   : > { %v1941_v34 = vsel %vm844_vm2, %v1936_v16, 0 }
 0x480   : > { %1950 = vmatpush.bf16.xpose.msra.mxu2 %v1941_v34  ;;  %v5733_v60 = vpop.eup %4496  ;;  %v2335_v34 = vmul.f32 1.442695, %v2251_v45  ;;  %v2458_v45 = vpop.xlane.xlu0 %2457 }
 0x481   : > { %v5737_v25 = vpop.eup %4498  ;;  %v2465_v4 = vsel %vm2038_vm3, %v5733_v60, 0.0  ;;  %v5764_v7 = vpop.f32.mrf.mxu2 }
 0x482   : > { %v2474_v16 = vsel %vm2038_vm3, %v5737_v25, 0.0  ;;  %4500 = vpow2.f32 %v2335_v34  ;;  %6531 = vst [vmem:[#allocation30_spill] sm:$0xff] %v5764_v7  ;;  %v2253_v34 = vsub.f32 %v5582_v39, %v5698_v43 }
 0x483   : > { %2118 = vmax.xlane.f32.xlu1 %v2117_v35  ;;  %v5746_v35 = vpop.permute.xlu1 %3462  ;;  %4502 = vpow2.f32 %v2333_v49 }
 0x484   : > { %6530 = vst [vmem:[#allocation29_spill] sm:$0xff] %v5746_v35  ;;  %4504 = vrcp.f32 %v2458_v45 }
 0x485   : > { %2124 = vmax.xlane.f32.xlu2 %v2123_v40  ;;  %v2138_v40 = vsel %vm2038_vm3, %v5744_v24, -inf }
 0x487   : > { %4328 = vmatmul.msk.bf16.vlgmr.msra.gmra.mxu2 %vm844_vm2, %v5489_v47 }
 0x488   : > { %v5754_v54 = vpop.eup %4500 }
 0x489   : > { %v2483_v38 = vsel %vm2038_vm3, %v5754_v54, 0.0 }
 0x48b   : > { %2121 = vmax.xlane.f32.xlu1 %v2120_v59  ;;  %v5756_v59 = vpop.f32.mrf.mxu3 }
 0x48c   : > { %v2141_v61 = vsel %vm2038_vm3, %v5756_v59, -inf }
 0x48d   : > { %2472 = vadd.xlane.f32.xlu2 %v2471_v33 }
 0x493   : > { %2466 = vadd.xlane.f32.xlu1 %v2465_v4  ;;  %v5766_v4 = vpop.eup %4502  ;;  %v5776_v49 = vpop.f32.mrf.mxu3 }
 0x494   : > { %v2480_v21 = vsel %vm2038_vm3, %v5766_v4, 0.0  ;;  %v4505_v1 = vpop.eup %4504 }
 0x495   : > { %2475 = vadd.xlane.f32.xlu2 %v2474_v16  ;;  %v2147_v16 = vsel %vm2038_vm3, %v5764_v7, -inf }
 0x49b   : > { %2136 = vmax.xlane.f32.xlu1 %v2135_v28  ;;  %v5758_v33 = vpop.xlane.xlu1 %2448  ;;  %v5789_v31 = vpop.f32.mrf.mxu3 }
 0x49d   : > { %2139 = vmax.xlane.f32.xlu2 %v2138_v40  ;;  %v5774_v40 = vpop.xlane.xlu0 %2460 }
 0x4a3   : > { %2484 = vadd.xlane.f32.xlu1 %v2483_v38  ;;  %v2113_v28 = vpop.xlane.xlu1 %2112  ;;  %v5778_v38 = vpop.f32.mrf.mxu2 }
 0x4a4   : > { %6532 = vst [vmem:[#allocation31_spill] sm:$0xff] %v5778_v38  ;;  %v2150_v39 = vsel %vm2038_vm3, %v5778_v38, -inf  ;;  %v2255_v43 = vsub.f32 %v5518_v44, %v2113_v28  ;;  %v2153_v44 = vsel %vm2038_vm3, %v5789_v31, -inf }
 0x4a5   : > { %2142 = vmax.xlane.f32.xlu2 %v2141_v61  ;;  %v2339_v61 = vmul.f32 1.442695, %v2253_v34  ;;  %v5791_v53 = vpop.xlane.xlu0 %2463 }
 0x4a6   : > { %v2343_v34 = vmul.f32 1.442695, %v2255_v43 }
 0x4a7   : > { %4506 = vpow2.f32 %v2339_v61 }
 0x4ab   : > { %2148 = vmax.xlane.f32.xlu1 %v2147_v16  ;;  %v2341_v16 = vmul.f32 1.442695, %v2254_v27  ;;  %v5787_v35 = vpop.xlane.xlu1 %2451  ;;  %v2690_v27 = vmul.f32 %v4505_v1, %v5528_v37 }
 0x4ad   : > { %2481 = vadd.xlane.f32.xlu2 %v2480_v21  ;;  %v2144_v21 = vsel %vm2038_vm3, %v5776_v49, -inf  ;;  %4508 = vpow2.f32 %v2341_v16  ;;  %v5793_v45 = vpop.eup %4506  ;;  %v5807_v37 = vpop.xlane.xlu0 %2127 }
 0x4ae   : > { %v2489_v28 = vsel %vm2038_vm3, %v5793_v45, 0.0 }
 0x4b3   : > { %2151 = vmax.xlane.f32.xlu1 %v2150_v39  ;;  %v5800_v61 = vpop.eup %4508  ;;  %v2116_v16 = vpop.xlane.xlu1 %2115 }
 0x4b4   : > { %v2492_v1 = vsel %vm2038_vm3, %v5800_v61, 0.0 }
 0x4b5   : > { %2145 = vmax.xlane.f32.xlu2 %v2144_v21  ;;  %v2754_v21 = vpack.c.bf16 %v2690_v27, %v2690_v27 }
 0x4b7   : > { %v2455_v47 = vpop.xlane.xlu2 %2454 }
 0x4b8   : > { %4510 = vrcp.f32 %v2455_v47 }
 0x4b9   : > { %4512 = vpow2.f32 %v2343_v34 }
 0x4ba   : > { %4514 = vrcp.f32 %v5623_v14 }
 0x4bb   : > { %2154 = vmax.xlane.f32.xlu1 %v2153_v44  ;;  %4516 = vrcp.f32 %v5613_v50  ;;  %v2256_v44 = vsub.f32 %v5536_v63, %v2116_v16 }
 0x4bd   : > { %2490 = vadd.xlane.f32.xlu2 %v2489_v28  ;;  %v5820_v28 = vpop.f32.mrf.mxu2  ;;  %v2345_v50 = vmul.f32 1.442695, %v2256_v44 }
 0x4be   : > { %v4511_v39 = vpop.eup %4510 }
 0x4bf   : > { %v1990_v43 = vpop.permute.xlu2 %1989  ;;  %v2689_v38 = vmul.f32 %v4511_v39, %v5673_v11  ;;  %v5804_v7 = vpop.eup %4512  ;;  %v5814_v11 = vunpack.c.l.b16 %v2754_v21  ;;  %4518 = vpow2.f32 %v2345_v50 }
 0x4c0   : > { %v1995_v47 = vsel %vm844_vm2, %v1990_v43, 0  ;;  %v2495_v14 = vsel %vm2038_vm3, %v5804_v7, 0.0  ;;  %v5824_v39 = vpop.f32.mrf.mxu3  ;;  %v2017_v21 = vpop.permute.xlu0 %2016  ;;  %4520 = vrcp.f32 %v5787_v35 }
 0x4c1   : > { %2004 = vmatpush.bf16.xpose.msrb.mxu2 %v1995_v47  ;;  %v2753_v34 = vpack.c.bf16 %v2689_v38, %v2689_v38  ;;  %v4515_v38 = vpop.eup %4514  ;;  %v2156_v16 = vsel %vm2038_vm3, %v5824_v39, -inf  ;;  %v2022_v47 = vsel %vm844_vm2, %v2017_v21, 0  ;;  %4522 = vrcp.f32 %v5758_v33 }
 0x4c2   : > { %v4517_v63 = vpop.eup %4516  ;;  %v2680_v43 = vmul.f32 %v4515_v38, %v5477_v19  ;;  %4524 = vrcp.f32 %v5791_v53 }
 0x4c3   : > { %2493 = vadd.xlane.f32.xlu1 %v2492_v1  ;;  %v5816_v27 = vunpack.c.l.b16 %v2753_v34  ;;  %v2679_v1 = vmul.f32 %v4517_v63, %v5465_v12  ;;  %4526 = vrcp.f32 %v5774_v40 }
 0x4c5   : > { %2496 = vadd.xlane.f32.xlu2 %v2495_v14  ;;  %v2159_v14 = vsel %vm2038_vm3, %v5820_v28, -inf  ;;  %v5837_v19 = vpop.f32.mrf.mxu2  ;;  %v2743_v38 = vpack.c.bf16 %v2679_v1, %v2679_v1 }
 0x4c6   : > { %v2162_v50 = vsel %vm2038_vm3, %v5837_v19, -inf }
 0x4c7   : > { %v2809_v12 = vunpack.c.l.b16 %v2743_v38 }
 0x4c8   : > { %4330 = vmatmul.msk.bf16.vlgmr.msrb.gmra.mxu2 %vm844_vm2, %v5526_v23 }
 0x4c9   : > { %2825 = vmatpush.bf16.msra.mxu2 %v5056_v2  ;;  %v5839_v2 = vpop.eup %4518 }
 0x4ca   : > { %v2498_v63 = vsel %vm2038_vm3, %v5839_v2, 0.0 }
 0x4cb   : > { %v1963_v34 = vpop.permute.xlu1 %1962  ;;  %2157 = vmax.xlane.f32.xlu1 %v2156_v16  ;;  %v4521_v16 = vpop.eup %4520 }
 0x4cc   : > { %v1968_v44 = vsel %vm844_vm2, %v1963_v34, 0  ;;  %v5859_v34 = vpop.xlane.xlu0 %2130 }
 0x4cd   : > { %2875 = vmatpush.bf16.msrb.mxu2 %v5067_v17  ;;  %2160 = vmax.xlane.f32.xlu2 %v2159_v14  ;;  %v2744_v17 = vpack.c.bf16 %v2680_v43, %v2680_v43 }
 0x4ce   : > { %1977 = vmatpush.bf16.xpose.msra.mxu3 %v1968_v44 }
 0x4cf   : > { %v2810_v21 = vunpack.c.l.b16 %v2744_v17 }
 0x4d1   : > { %v2811_v43 = vpack.c.b16 %v2810_v21, %v2809_v12 }
 0x4d3   : > { %2163 = vmax.xlane.f32.xlu1 %v2162_v50 }
 0x4d4   : > { %v5866_v44 = vpop.xlane.xlu0 %2469 }
 0x4d5   : > { %4329 = vmatmul.msk.bf16.vlgmr.msra.gmra.mxu3 %vm844_vm2, %v5507_v3  ;;  %2499 = vadd.xlane.f32.xlu2 %v2498_v63 }
 0x4d6   : > { %2031 = vmatpush.bf16.xpose.msrb.mxu3 %v2022_v47  ;;  %v6533_v47 = vpack.c.b16 %v5694_v26, %v5692_v18  ;;  %v6534_v26 = vpack.c.b16 %v5684_v51, %v5682_v13 }
 0x4d8   : > { %4332 = vmatmul.msk.bf16.vlgmr.msra.gmra.mxu2 %vm2038_vm3, %v2811_v43 }
 0x4d9   : > { %2925 = vmatpush.bf16.msra.mxu2 %v5138_v8  ;;  %v2688_v8 = vmul.f32 %v4521_v16, %v5665_v46 }
 0x4db   : > { %v2752_v33 = vpack.c.bf16 %v2688_v8, %v2688_v8 }
 0x4dc   : > { %v2134_v21 = vpop.xlane.xlu0 %2133 }
 0x4dd   : > { %v2262_v43 = vsub.f32 %v5636_v36, %v2134_v21  ;;  %v6535_v36 = vpack.c.b16 %v5710_v6, %v5708_v48 }
 0x4de   : > { %2850 = vmatpush.bf16.msra.mxu3 %v5115_v9  ;;  %v4523_v9 = vpop.eup %4522 }
 0x4df   : > { %v2687_v35 = vmul.f32 %v4523_v9, %v5653_v56  ;;  %v4525_v56 = vpop.eup %4524 }
 0x4e0   : > { %v4527_v53 = vpop.eup %4526  ;;  %v2692_v13 = vmul.f32 %v4525_v56, %v5546_v41 }
 0x4e1   : > { %v2751_v1 = vpack.c.bf16 %v2687_v35, %v2687_v35 }
 0x4e2   : > { %v2756_v50 = vpack.c.bf16 %v2692_v13, %v2692_v13 }
 0x4e3   : > { %v2909_v18 = vunpack.c.l.b16 %v2751_v1 }
 0x4e5   : > { %4331 = vmatmul.msk.bf16.vlgmr.msrb.gmra.mxu3 %vm844_vm2, %v5574_v20 }
 0x4e6   : > { %2900 = vmatpush.bf16.msrb.mxu3 %v5120_v55  ;;  %v2910_v55 = vunpack.c.l.b16 %v2752_v33  ;;  %v5895_v33 = vpop.f32.mrf.mxu3 }
 0x4e8   : > { %4334 = vmatmul.msk.bf16.vlgmr.msrb.gmra.mxu2 %vm2038_vm3, %v6533_v47 }
 0x4e9   : > { %2975 = vmatpush.bf16.msrb.mxu2 %v5166_v0  ;;  %v2911_v0 = vpack.c.b16 %v2910_v55, %v2909_v18  ;;  %v5898_v18 = vpop.xlane.xlu0 %2478 }
 0x4f1   : > { %v2488_v21 = vpop.xlane.xlu0 %2487 }
 0x4f5   : > { %4333 = vmatmul.msk.bf16.vlgmr.msra.gmra.mxu3 %vm2038_vm3, %v6534_v26 }
 0x4f6   : > { %2950 = vmatpush.bf16.msra.mxu3 %v5132_v30  ;;  %v2119_v46 = vpop.xlane.xlu1 %2118  ;;  %v2691_v30 = vmul.f32 %v4527_v53, %v5540_v29  ;;  %v5887_v29 = vpop.f32.mrf.mxu2 }
 0x4f7   : > { %v2257_v14 = vsub.f32 %v5600_v42, %v2119_v46  ;;  %v6536_v46 = vld [vmem:[#allocation26_spill] sm:$0xff]  ;;  %v2171_v53 = vsel %vm2038_vm3, %v5887_v29, -inf }
 0x4f8   : > { %v2125_v17 = vpop.xlane.xlu2 %2124  ;;  %4336 = vmatmul.msk.bf16.vlgmr.msra.gmra.mxu2 %vm2038_vm3, %v2911_v0  ;;  %v2755_v63 = vpack.c.bf16 %v2691_v30, %v2691_v30  ;;  %v2260_v0 = vsub.f32 %v5552_v10, %v5807_v37  ;;  %v2261_v56 = vsub.f32 %v6536_v46, %v5859_v34  ;;  %v5919_v30 = vpop.f32.mrf.mxu3 }
 0x4f9   : > { %v2347_v40 = vmul.f32 1.442695, %v2257_v14  ;;  %v2259_v38 = vsub.f32 %v5544_v32, %v2125_v17  ;;  %3025 = vmatpush.bf16.msra.mxu2 %v5174_v62  ;;  %v2960_v62 = vunpack.c.l.b16 %v2756_v50  ;;  %v2165_v14 = vsel %vm2038_vm3, %v5895_v33, -inf }
 0x4fa   : > { %v2959_v8 = vunpack.c.l.b16 %v2755_v63  ;;  %v2353_v10 = vmul.f32 1.442695, %v2260_v0  ;;  %v2355_v34 = vmul.f32 1.442695, %v2261_v56 }
 0x4fb   : > { %4528 = vpow2.f32 %v2347_v40  ;;  %v2351_v51 = vmul.f32 1.442695, %v2259_v38 }
 0x4fc   : > { %v2961_v1 = vpack.c.b16 %v2960_v62, %v2959_v8 }
 0x4fd   : > { %4530 = vpow2.f32 %v2351_v51 }
 0x4fe   : > { %v2122_v12 = vpop.xlane.xlu1 %2121  ;;  %v5915_v40 = vpop.f32.mrf.mxu2 }
 0x4ff   : > { %v2258_v42 = vsub.f32 %v5608_v22, %v2122_v12  ;;  %v2357_v22 = vmul.f32 1.442695, %v2262_v43 }
 0x500   : > { %v2473_v16 = vpop.xlane.xlu2 %2472 }
 0x501   : > { %v5881_v47 = vpop.eup %4528  ;;  %v2349_v32 = vmul.f32 1.442695, %v2258_v42  ;;  %4532 = vrcp.f32 %v2473_v16 }
 0x502   : > { %v2501_v41 = vsel %vm2038_vm3, %v5881_v47, 0.0 }
 0x503   : > { %v5885_v9 = vpop.eup %4530  ;;  %4534 = vpow2.f32 %v2349_v32  ;;  %2502 = vadd.xlane.f32.xlu2 %v2501_v41  ;;  %v2168_v32 = vsel %vm2038_vm3, %v5919_v30, -inf }
 0x504   : > { %v2507_v35 = vsel %vm2038_vm3, %v5885_v9, 0.0  ;;  %4536 = vpow2.f32 %v2357_v22 }
 0x505   : > { %4335 = vmatmul.msk.bf16.vlgmr.msrb.gmra.mxu3 %vm2038_vm3, %v6535_v36  ;;  %2508 = vadd.xlane.f32.xlu1 %v2507_v35  ;;  %v6539_v35 = vld [vmem:[#allocation5_spill] sm:$0xff] }
 0x506   : > { %3000 = vmatpush.bf16.msrb.mxu3 %v5179_v15  ;;  %v2467_v55 = vpop.xlane.xlu1 %2466  ;;  %v6537_v15 = vld [vmem:[#allocation6_spill] sm:$0xff]  ;;  %v5935_v22 = vpop.f32.mrf.mxu2 }
 0x507   : > { %v4533_v26 = vpop.eup %4532 }
 0x508   : > { %v2476_v6 = vpop.xlane.xlu2 %2475  ;;  %4338 = vmatmul.msk.bf16.vlgmr.msrb.gmra.mxu2 %vm2038_vm3, %v2961_v1  ;;  %v2695_v37 = vmul.f32 %v4533_v26, %v5727_v52 }
 0x509   : > { %v5903_v48 = vpop.eup %4534  ;;  %4538 = vrcp.f32 %v2476_v6  ;;  %3075 = vmatpush.bf16.msrb.mxu2 %v6537_v15 }
 0x50a   : > { %v2504_v17 = vsel %vm2038_vm3, %v5903_v48, 0.0  ;;  %4540 = vrcp.f32 %v2467_v55  ;;  %v5917_v38 = vpop.eup %4536  ;;  %v2759_v52 = vpack.c.bf16 %v2695_v37, %v2695_v37 }
 0x50b   : > { %2166 = vmax.xlane.f32.xlu2 %v2165_v14  ;;  %2505 = vadd.xlane.f32.xlu0 %v2504_v17  ;;  %4542 = vrcp.f32 %v5866_v44  ;;  %v2516_v44 = vsel %vm2038_vm3, %v5917_v38, 0.0  ;;  %v6541_v17 = vld [vmem:[#allocation7_spill] sm:$0xff] }
 0x50c   : > { %4544 = vpow2.f32 %v2353_v10 }
 0x50d   : > { %2172 = vmax.xlane.f32.xlu1 %v2171_v53  ;;  %4546 = vpow2.f32 %v2355_v34 }
 0x50e   : > { %v2137_v13 = vpop.xlane.xlu1 %2136  ;;  %4548 = vrcp.f32 %v2488_v21 }
 0x50f   : > { %v4539_v51 = vpop.eup %4538  ;;  %v2263_v50 = vsub.f32 %v5735_v57, %v2137_v13  ;;  %v3009_v57 = vunpack.c.l.b16 %v2759_v52 }
 0x510   : > { %v2696_v12 = vmul.f32 %v4539_v51, %v5737_v25  ;;  %v2140_v42 = vpop.xlane.xlu2 %2139  ;;  %v4541_v62 = vpop.eup %4540  ;;  %v6538_v25 = vpack.c.b16 %v5814_v11, %v5816_v27  ;;  %v6540_v27 = vld [vmem:[#allocation27_spill] sm:$0xff] }
 0x511   : > { %v2359_v63 = vmul.f32 1.442695, %v2263_v50  ;;  %v2264_v43 = vsub.f32 %v5744_v24, %v2140_v42  ;;  %v2174_v24 = vsel %vm2038_vm3, %v5915_v40, -inf  ;;  %v4543_v8 = vpop.eup %4542  ;;  %v2693_v55 = vmul.f32 %v4541_v62, %v5733_v60 }
 0x512   : > { %v2760_v16 = vpack.c.bf16 %v2696_v12, %v2696_v12  ;;  %v5938_v1 = vpop.eup %4544  ;;  %v2694_v46 = vmul.f32 %v4543_v8, %v6540_v27 }
 0x513   : > { %4550 = vpow2.f32 %v2359_v63  ;;  %2169 = vmax.xlane.f32.xlu2 %v2168_v32  ;;  %2517 = vadd.xlane.f32.xlu0 %v2516_v44  ;;  %v2361_v36 = vmul.f32 1.442695, %v2264_v43  ;;  %v5941_v6 = vpop.eup %4546  ;;  %v2757_v10 = vpack.c.bf16 %v2693_v55, %v2693_v55  ;;  %v2510_v60 = vsel %vm2038_vm3, %v5938_v1, 0.0  ;;  %v5961_v63 = vpop.f32.mrf.mxu2 }
 0x514   : > { %v3010_v41 = vunpack.c.l.b16 %v2760_v16  ;;  %v4549_v11 = vpop.eup %4548  ;;  %v2758_v34 = vpack.c.bf16 %v2694_v46, %v2694_v46  ;;  %v2513_v51 = vsel %vm2038_vm3, %v5941_v6, 0.0 }
 0x515   : > { %4337 = vmatmul.msk.bf16.vlgmr.msra.gmra.mxu3 %vm2038_vm3, %v6538_v25  ;;  %2175 = vmax.xlane.f32.xlu1 %v2174_v24  ;;  %v2700_v13 = vmul.f32 %v4549_v11, %v5700_v58  ;;  %v2984_v50 = vunpack.c.l.b16 %v2757_v10  ;;  %v6542_v24 = vld [vmem:[#allocation8_spill] sm:$0xff]  ;;  %v2186_v10 = vsel %vm2038_vm3, %v5961_v63, -inf }
 0x516   : > { %3050 = vmatpush.bf16.msra.mxu3 %v6539_v35  ;;  %v3011_v26 = vpack.c.b16 %v3010_v41, %v3009_v57  ;;  %v2485_v0 = vpop.xlane.xlu1 %2484  ;;  %v2985_v43 = vunpack.c.l.b16 %v2758_v34 }
 0x517   : > { %4552 = vrcp.f32 %v2485_v0  ;;  %v2764_v58 = vpack.c.bf16 %v2700_v13, %v2700_v13 }
 0x518   : > { %v2143_v56 = vpop.xlane.xlu2 %2142  ;;  %4340 = vmatmul.msk.bf16.vlgmr.msra.gmra.mxu2 %vm2038_vm3, %v3011_v26  ;;  %4554 = vpow2.f32 %v2361_v36  ;;  %v2986_v44 = vpack.c.b16 %v2985_v43, %v2984_v50 }
 0x519   : > { %v5945_v15 = vpop.eup %4550  ;;  %v2265_v14 = vsub.f32 %v5756_v59, %v2143_v56  ;;  %3125 = vmatpush.bf16.msra.mxu2 %v6541_v17  ;;  %v5956_v59 = vpop.f32.mrf.mxu3 }
 0x51a   : > { %v2519_v37 = vsel %vm2038_vm3, %v5945_v15, 0.0  ;;  %v2177_v8 = vsel %vm2038_vm3, %v5956_v59, -inf }
 0x51b   : > { %v2363_v53 = vmul.f32 1.442695, %v2265_v14  ;;  %2511 = vadd.xlane.f32.xlu2 %v2510_v60  ;;  %2520 = vadd.xlane.f32.xlu0 %v2519_v37  ;;  %v5976_v0 = vpop.f32.mrf.mxu2  ;;  %v6543_v14 = vld [vmem:[#allocation11_spill] sm:$0xff]  ;;  %v6544_v37 = vld [vmem:[#allocation30_spill] sm:$0xff] }
 0x51d   : > { %v4553_v21 = vpop.eup %4552  ;;  %4556 = vpow2.f32 %v2363_v53  ;;  %2514 = vadd.xlane.f32.xlu1 %v2513_v51 }
 0x51e   : > { %v2699_v52 = vmul.f32 %v4553_v21, %v5754_v54  ;;  %v2149_v12 = vpop.xlane.xlu1 %2148  ;;  %v5959_v42 = vpop.eup %4554  ;;  %4558 = vrcp.f32 %v5898_v18  ;;  %v3060_v54 = vunpack.c.l.b16 %v2764_v58 }
 0x51f   : > { %v2522_v57 = vsel %vm2038_vm3, %v5959_v42, 0.0  ;;  %v2267_v53 = vsub.f32 %v6544_v37, %v2149_v12 }
 0x520   : > { %v2763_v16 = vpack.c.bf16 %v2699_v52, %v2699_v52  ;;  %v2482_v32 = vpop.xlane.xlu2 %2481 }
 0x521   : > { %4560 = vrcp.f32 %v2482_v32  ;;  %v5974_v26 = vpop.f32.mrf.mxu3  ;;  %v2367_v50 = vmul.f32 1.442695, %v2267_v53 }
 0x522   : > { %v3059_v62 = vunpack.c.l.b16 %v2763_v16  ;;  %v6545_v16 = vld [vmem:[#allocation31_spill] sm:$0xff] }
 0x523   : > { %v5966_v41 = vpop.eup %4556  ;;  %2523 = vadd.xlane.f32.xlu0 %v2522_v57  ;;  %v5992_v43 = vpop.f32.mrf.mxu2 }
 0x524   : > { %v2525_v25 = vsel %vm2038_vm3, %v5966_v41, 0.0  ;;  %v4559_v18 = vpop.eup %4558  ;;  %v3061_v36 = vpack.c.b16 %v3060_v54, %v3059_v62  ;;  %v2183_v62 = vsel %vm2038_vm3, %v5935_v22, -inf }
 0x525   : > { %4339 = vmatmul.msk.bf16.vlgmr.msrb.gmra.mxu3 %vm2038_vm3, %v2986_v44  ;;  %2526 = vadd.xlane.f32.xlu2 %v2525_v25  ;;  %v2697_v11 = vmul.f32 %v4559_v18, %v5646_v5  ;;  %v2195_v5 = vsel %vm2038_vm3, %v5976_v0, -inf  ;;  %v6546_v44 = vld [vmem:[#allocation9_spill] sm:$0xff] }
 0x526   : > { %3100 = vmatpush.bf16.msrb.mxu3 %v6542_v24  ;;  %2178 = vmax.xlane.f32.xlu1 %v2177_v8  ;;  %v2152_v35 = vpop.xlane.xlu1 %2151 }
 0x527   : > { %v4561_v55 = vpop.eup %4560  ;;  %v2761_v60 = vpack.c.bf16 %v2697_v11, %v2697_v11  ;;  %v2268_v32 = vsub.f32 %v6545_v16, %v2152_v35 }
 0x528   : > { %v2698_v27 = vmul.f32 %v4561_v55, %v5766_v4  ;;  %v2146_v46 = vpop.xlane.xlu2 %2145  ;;  %4342 = vmatmul.msk.bf16.vlgmr.msrb.gmra.mxu2 %vm2038_vm3, %v3061_v36  ;;  %v2180_v4 = vsel %vm2038_vm3, %v5974_v26, -inf }
 0x529   : > { %v2266_v56 = vsub.f32 %v5776_v49, %v2146_v46  ;;  %3175 = vmatpush.bf16.msrb.mxu2 %v6543_v14  ;;  %v5990_v51 = vpop.f32.mrf.mxu3  ;;  %v3034_v21 = vunpack.c.l.b16 %v2761_v60  ;;  %v2369_v18 = vmul.f32 1.442695, %v2268_v32 }
 0x52a   : > { %v2762_v17 = vpack.c.bf16 %v2698_v27, %v2698_v27  ;;  %v2189_v58 = vsel %vm2038_vm3, %v5990_v51, -inf }
 0x52b   : > { %2187 = vmax.xlane.f32.xlu0 %v2186_v10  ;;  %v2365_v34 = vmul.f32 1.442695, %v2266_v56  ;;  %v6003_v8 = vpop.f32.mrf.mxu2 }
 0x52c   : > { %v3035_v13 = vunpack.c.l.b16 %v2762_v17 }
 0x52d   : > { %2196 = vmax.xlane.f32.xlu2 %v2195_v5  ;;  %4562 = vpow2.f32 %v2365_v34 }
 0x52e   : > { %2181 = vmax.xlane.f32.xlu1 %v2180_v4  ;;  %v2155_v49 = vpop.xlane.xlu1 %2154  ;;  %v3036_v12 = vpack.c.b16 %v3035_v13, %v3034_v21 }
 0x52f   : > { %v2269_v36 = vsub.f32 %v5789_v31, %v2155_v49 }
 0x530   : > { %v2491_v52 = vpop.xlane.xlu2 %2490 }
 0x531   : > { %4564 = vrcp.f32 %v2491_v52  ;;  %v6011_v27 = vpop.f32.mrf.mxu3  ;;  %v2371_v56 = vmul.f32 1.442695, %v2269_v36  ;;  %v6547_v52 = vld [vmem:[#allocation10_spill] sm:$0xff]  ;;  %v2198_v36 = vsel %vm2038_vm3, %v5992_v43, -inf }
 0x532   : > { %4566 = vpow2.f32 %v2367_v50  ;;  %v2192_v4 = vsel %vm2038_vm3, %v6011_v27, -inf }
 0x533   : > { %2190 = vmax.xlane.f32.xlu0 %v2189_v58  ;;  %v6001_v57 = vpop.eup %4562  ;;  %v6021_v13 = vpop.f32.mrf.mxu2 }
 0x534   : > { %v2528_v11 = vsel %vm2038_vm3, %v6001_v57, 0.0 }
 0x535   : > { %4341 = vmatmul.msk.bf16.vlgmr.msra.gmra.mxu3 %vm2038_vm3, %v3036_v12 }
 0x536   : > { %3150 = vmatpush.bf16.msra.mxu3 %v6546_v44  ;;  %2184 = vmax.xlane.f32.xlu1 %v2183_v62  ;;  %v2494_v54 = vpop.xlane.xlu1 %2493 }
 0x537   : > { %v4565_v25 = vpop.eup %4564  ;;  %4568 = vrcp.f32 %v2494_v54 }
 0x538   : > { %v2497_v24 = vpop.xlane.xlu2 %2496  ;;  %v6006_v35 = vpop.eup %4566  ;;  %v2701_v55 = vmul.f32 %v4565_v25, %v5793_v45  ;;  %4570 = vpow2.f32 %v2369_v18 }
 0x539   : > { %v2531_v14 = vsel %vm2038_vm3, %v6006_v35, 0.0  ;;  %4572 = vpow2.f32 %v2371_v56  ;;  %v6023_v21 = vpop.f32.mrf.mxu3 }
 0x53a   : > { %v2765_v17 = vpack.c.bf16 %v2701_v55, %v2701_v55  ;;  %4574 = vrcp.f32 %v2497_v24 }
 0x53b   : > { %2529 = vadd.xlane.f32.xlu0 %v2528_v11 }
 0x53c   : > { %v3084_v34 = vunpack.c.l.b16 %v2765_v17 }
 0x53d   : > { %v4569_v46 = vpop.eup %4568 }
 0x53e   : > { %v2702_v10 = vmul.f32 %v4569_v46, %v5800_v61  ;;  %2532 = vadd.xlane.f32.xlu1 %v2531_v14  ;;  %v2158_v31 = vpop.xlane.xlu1 %2157  ;;  %v6017_v53 = vpop.eup %4570 }
 0x53f   : > { %v2534_v50 = vsel %vm2038_vm3, %v6017_v53, 0.0  ;;  %v2270_v18 = vsub.f32 %v5824_v39, %v2158_v31  ;;  %v2207_v31 = vsel %vm2038_vm3, %v6003_v8, -inf }
 0x540   : > { %v2766_v60 = vpack.c.bf16 %v2702_v10, %v2702_v10  ;;  %v2161_v37 = vpop.xlane.xlu2 %2160 }
 0x541   : > { %v2271_v45 = vsub.f32 %v5820_v28, %v2161_v37  ;;  %v6028_v28 = vpop.eup %4572  ;;  %v6044_v11 = vpop.f32.mrf.mxu3  ;;  %v2373_v56 = vmul.f32 1.442695, %v2270_v18 }
 0x542   : > { %v3085_v5 = vunpack.c.l.b16 %v2766_v60  ;;  %v4575_v16 = vpop.eup %4574  ;;  %v2537_v32 = vsel %vm2038_vm3, %v6028_v28, 0.0  ;;  %v2201_v60 = vsel %vm2038_vm3, %v6023_v21, -inf }
 0x543   : > { %v2375_v49 = vmul.f32 1.442695, %v2271_v45  ;;  %2193 = vmax.xlane.f32.xlu0 %v2192_v4  ;;  %v2703_v25 = vmul.f32 %v4575_v16, %v5804_v7 }
 0x544   : > { %v3086_v61 = vpack.c.b16 %v3085_v5, %v3084_v34  ;;  %v6548_v34 = vld [vmem:[#allocation12_spill] sm:$0xff] }
 0x545   : > { %4576 = vpow2.f32 %v2375_v49 }
 0x546   : > { %2535 = vadd.xlane.f32.xlu1 %v2534_v50  ;;  %4343 = vmatmul.msk.bf16.vlgmr.msrb.gmra.mxu3 %vm2038_vm3, %v3086_v61  ;;  %v2164_v12 = vpop.xlane.xlu1 %2163 }
 0x547   : > { %3200 = vmatpush.bf16.msrb.mxu3 %v6547_v52  ;;  %v2272_v62 = vsub.f32 %v5837_v19, %v2164_v12  ;;  %v2767_v19 = vpack.c.bf16 %v2703_v25, %v2703_v25  ;;  %v2210_v12 = vsel %vm2038_vm3, %v6021_v13, -inf }
 0x548   : > { %v2500_v58 = vpop.xlane.xlu2 %2499 }
 0x549   : > { %4578 = vrcp.f32 %v2500_v58  ;;  %v2377_v46 = vmul.f32 1.442695, %v2272_v62  ;;  %v3109_v39 = vunpack.c.l.b16 %v2767_v19  ;;  %v2204_v58 = vsel %vm2038_vm3, %v6044_v11, -inf }
 0x54b   : > { %v6033_v44 = vpop.eup %4576  ;;  %v6036_v54 = vpop.f32.mrf.mxu2  ;;  %2538 = vadd.xlane.f32.xlu0 %v2537_v32  ;;  %4580 = vpow2.f32 %v2377_v46 }
 0x54c   : > { %v2543_v24 = vsel %vm2038_vm3, %v6033_v44, 0.0  ;;  %4582 = vpow2.f32 %v2373_v56 }
 0x54d   : > { %2544 = vadd.xlane.f32.xlu2 %v2543_v24  ;;  %v4774_v24 = vmov 16.0  }
 0x54e   : > { %2199 = vmax.xlane.f32.xlu1 %v2198_v36  ;;  %4584 = vrcp.f32 %v4774_v24 }
 0x54f   : > { %v4579_v55 = vpop.eup %4578 }
 0x550   : > { %v2704_v14 = vmul.f32 %v4579_v55, %v5839_v2 }
 0x551   : > { %v6056_v2 = vpop.eup %4580 }
 0x552   : > { %v2768_v17 = vpack.c.bf16 %v2704_v14, %v2704_v14  ;;  %v6059_v5 = vpop.eup %4582  ;;  %v2546_v49 = vsel %vm2038_vm3, %v6056_v2, 0.0 }
 0x553   : > { %v6047_v7 = vpop.f32.mrf.mxu2  ;;  %v2540_v61 = vsel %vm2038_vm3, %v6059_v5, 0.0 }
 0x554   : > { %v3110_v10 = vunpack.c.l.b16 %v2768_v17 }
 0x555   : > { %2208 = vmax.xlane.f32.xlu2 %v2207_v31 }
 0x556   : > { %v3111_v37 = vpack.c.b16 %v3110_v10, %v3109_v39  ;;  %2202 = vmax.xlane.f32.xlu1 %v2201_v60  ;;  %v6083_v10 = vpop.eup %4584 }
 0x557   : > { %vm3900_vm4 = vweird.f32 %v6083_v10 }
 0x558   : > { %v6053_v45 = vpop.f32.mrf.mxu3  ;;  %4344 = vmatmul.msk.bf16.vlgmr.msra.gmra.mxu2 %vm2038_vm3, %v3111_v37 }
 0x559   : > { %3225 = vmatpush.bf16.msra.mxu2 %v6548_v34  ;;  %v2213_v62 = vsel %vm2038_vm3, %v6053_v45, -inf }
 0x55b   : > { %v2827_v4 = vpop.f32.mrf.mxu2 }
 0x55c   : > { %v3607_v36 = vsel %vm844_vm2, %v2827_v4, 0.0  ;;  %v3896_v4 = vmul.f32 16.0, %v6083_v10 }
 0x55d   : > { %2547 = vadd.xlane.f32.xlu2 %v2546_v49 }
 0x55e   : > { %2541 = vadd.xlane.f32.xlu1 %v2540_v61 }
 0x560   : > { %v6065_v50 = vpop.f32.mrf.mxu3 }
 0x561   : > { %v2216_v14 = vsel %vm2038_vm3, %v6065_v50, -inf }
 0x563   : > { %v2829_v52 = vpop.f32.mrf.mxu2 }
 0x564   : > { %v3608_v18 = vsel %vm844_vm2, %v2829_v52, 0.0 }
 0x565   : > { %2211 = vmax.xlane.f32.xlu2 %v2210_v12  ;;  %v3609_v55 = vadd.f32 %v3608_v18, %v3607_v36  ;;  %v3897_v12 = vsub.f32 1.0, %v3896_v4 }
 0x566   : > { %2205 = vmax.xlane.f32.xlu1 %v2204_v58 }
 0x567   : > { %v3610_v31 = vrot.slane %v3609_v55, 4 }
 0x568   : > { %v6071_v16 = vpop.f32.mrf.mxu3 }
 0x569   : > { %v3611_v49 = vadd.f32 %v3610_v31, %v3609_v55  ;;  %v3898_v55 = vmul.f32 %v6083_v10, %v3897_v12 }
 0x56b   : > { %v2877_v32 = vpop.f32.mrf.mxu2  ;;  %v3612_v18 = vrot.slane %v3611_v49, 2 }
 0x56c   : > { %v3625_v19 = vsel %vm844_vm2, %v2877_v32, 0.0 }
 0x56d   : > { %2214 = vmax.xlane.f32.xlu2 %v2213_v62  ;;  %v3613_v31 = vadd.f32 %v3612_v18, %v3611_v49 }
 0x570   : > { %v6075_v25 = vpop.f32.mrf.mxu3 }
 0x573   : > { %v2879_v46 = vpop.f32.mrf.mxu2 }
 0x574   : > { %v3626_v56 = vsel %vm844_vm2, %v2879_v46, 0.0 }
 0x575   : > { %v3627_v17 = vadd.f32 %v3626_v56, %v3625_v19  ;;  %2217 = vmax.xlane.f32.xlu2 %v2216_v14 }
 0x576   : > { %v2503_v39 = vpop.xlane.xlu2 %2502 }
 0x577   : > { %v3628_v37 = vrot.slane %v3627_v17, 4  ;;  %4586 = vrcp.f32 %v2503_v39 }
 0x578   : > { %v2852_v60 = vpop.f32.mrf.mxu3  ;;  %v2509_v34 = vpop.xlane.xlu1 %2508 }
 0x579   : > { %v3629_v52 = vadd.f32 %v3628_v37, %v3627_v17  ;;  %v3616_v19 = vsel %vm844_vm2, %v2852_v60, 0.0 }
 0x57b   : > { %v2927_v61 = vpop.f32.mrf.mxu2  ;;  %v3630_v46 = vrot.slane %v3629_v52, 2 }
 0x57d   : > { %v4587_v62 = vpop.eup %4586  ;;  %v3631_v23 = vadd.f32 %v3630_v46, %v3629_v52  ;;  %v3643_v52 = vsel %vm844_vm2, %v2927_v61, 0.0 }
 0x57e   : > { %v2167_v58 = vpop.xlane.xlu2 %2166  ;;  %v2506_v32 = vpop.xlane.xlu0 %2505  ;;  %v2705_v17 = vmul.f32 %v4587_v62, %v5881_v47 }
 0x57f   : > { %v2273_v24 = vsub.f32 %v5895_v33, %v2167_v58  ;;  %4588 = vrcp.f32 %v2506_v32  ;;  %v3899_v32 = vadd.f32 %v6083_v10, %v3898_v55  ;;  %v3632_v62 = vrot.slane %v3631_v23, 1 }
 0x580   : > { %v2854_v36 = vpop.f32.mrf.mxu3  ;;  %v2173_v14 = vpop.xlane.xlu1 %2172  ;;  %v2769_v3 = vpack.c.bf16 %v2705_v17, %v2705_v17 }
 0x581   : > { %v3617_v56 = vsel %vm844_vm2, %v2854_v36, 0.0  ;;  %v2379_v39 = vmul.f32 1.442695, %v2273_v24  ;;  %v2275_v18 = vsub.f32 %v5887_v29, %v2173_v14  ;;  %v6105_v29 = vsel %vm3900_vm4, %v6083_v10, %v3899_v32 }
 0x582   : > { %v3618_v20 = vadd.f32 %v3617_v56, %v3616_v19  ;;  %v3614_v56 = vrot.slane %v3613_v31, 1 }
 0x583   : > { %4590 = vpow2.f32 %v2379_v39  ;;  %v2929_v4 = vpop.f32.mrf.mxu2 }
 0x584   : > { %v3619_v37 = vrot.slane %v3618_v20, 4  ;;  %v3644_v36 = vsel %vm844_vm2, %v2929_v4, 0.0  ;;  %4592 = vrcp.f32 %v2509_v34  ;;  %v3633_v34 = vadd.f32 %v3632_v62, %v3631_v23  ;;  %v6549_v23 = vld [vmem:[#allocation13_spill] sm:$0xff] }
 0x585   : > { %v4589_v33 = vpop.eup %4588  ;;  %v3645_v55 = vadd.f32 %v3644_v36, %v3643_v52 }
 0x586   : > { %v3620_v58 = vadd.f32 %v3619_v37, %v3618_v20  ;;  %v2706_v60 = vmul.f32 %v4589_v33, %v5903_v48  ;;  %v2170_v24 = vpop.xlane.xlu2 %2169  ;;  %v2518_v19 = vpop.xlane.xlu0 %2517  ;;  %v3134_v37 = vunpack.c.l.b16 %v2769_v3  ;;  %v3615_v33 = vadd.f32 %v3614_v56, %v3613_v31 }
 0x587   : > { %v2274_v49 = vsub.f32 %v5919_v30, %v2170_v24  ;;  %4594 = vrcp.f32 %v2518_v19  ;;  %v3646_v3 = vrot.slane %v3645_v55, 4  ;;  %v2219_v56 = vsel %vm2038_vm3, %v6036_v54, -inf }
 0x588   : > { %v3621_v47 = vrot.slane %v3620_v58, 2  ;;  %v2902_v12 = vpop.f32.mrf.mxu3  ;;  %v2770_v20 = vpack.c.bf16 %v2706_v60, %v2706_v60  ;;  %v2176_v46 = vpop.xlane.xlu1 %2175 }
 0x589   : > { %v6098_v39 = vpop.eup %4590  ;;  %v2381_v17 = vmul.f32 1.442695, %v2274_v49  ;;  %v2276_v36 = vsub.f32 %v5915_v40, %v2176_v46  ;;  %v3902_v49 = vmul.f32 %v6105_v29, %v3615_v33  ;;  %v3904_v40 = vmul.f32 %v6105_v29, %v3633_v34 }
 0x58a   : > { %v3622_v48 = vadd.f32 %v3621_v47, %v3620_v58  ;;  %v3135_v4 = vunpack.c.l.b16 %v2770_v20  ;;  %v2549_v30 = vsel %vm2038_vm3, %v6098_v39, 0.0  ;;  %v2383_v58 = vmul.f32 1.442695, %v2275_v18  ;;  %v4593_v47 = vpop.eup %4592 }
 0x58b   : > { %4596 = vpow2.f32 %v2381_v17  ;;  %v2977_v61 = vpop.f32.mrf.mxu2  ;;  %2550 = vadd.xlane.f32.xlu0 %v2549_v30  ;;  %v3634_v52 = vsel %vm844_vm2, %v2902_v12, 0.0  ;;  %v3647_v17 = vadd.f32 %v3646_v3, %v3645_v55  ;;  %v2385_v30 = vmul.f32 1.442695, %v2276_v36 }
 0x58c   : > { %v3623_v24 = vrot.slane %v3622_v48, 1  ;;  %v3136_v14 = vpack.c.b16 %v3135_v4, %v3134_v37  ;;  %v2707_v4 = vmul.f32 %v4593_v47, %v5885_v9 }
 0x58d   : > { %v4595_v62 = vpop.eup %4594  ;;  %v3648_v3 = vrot.slane %v3647_v17, 2 }
 0x58e   : > { %v3624_v60 = vadd.f32 %v3623_v24, %v3622_v48  ;;  %v2512_v19 = vpop.xlane.xlu2 %2511  ;;  %4345 = vmatmul.msk.bf16.vlgmr.msra.gmra.mxu3 %vm2038_vm3, %v3136_v14  ;;  %v2521_v31 = vpop.xlane.xlu0 %2520  ;;  %v2710_v14 = vmul.f32 %v4595_v62, %v5917_v38  ;;  %v2771_v47 = vpack.c.bf16 %v2707_v4, %v2707_v4 }
 0x58f   : > { %4598 = vrcp.f32 %v2512_v19  ;;  %3250 = vmatpush.bf16.msra.mxu3 %v6549_v23 }
 0x590   : > { %v3903_v10 = vmul.f32 %v6105_v29, %v3624_v60  ;;  %v2904_v32 = vpop.f32.mrf.mxu3  ;;  %4600 = vpow2.f32 %v2383_v58  ;;  %v2515_v18 = vpop.xlane.xlu1 %2514  ;;  %v3661_v58 = vsel %vm844_vm2, %v2977_v61, 0.0  ;;  %v2774_v38 = vpack.c.bf16 %v2710_v14, %v2710_v14 }
 0x591   : > { %v3635_v20 = vsel %vm844_vm2, %v2904_v32, 0.0  ;;  %v6117_v46 = vpop.eup %4596  ;;  %4602 = vrcp.f32 %v2515_v18 }
 0x592   : > { %v3943_v48 = vsel %vm3942_vm5, %v3903_v10, %v3902_v49  ;;  %v3636_v37 = vadd.f32 %v3635_v20, %v3634_v52  ;;  %v2552_v33 = vsel %vm2038_vm3, %v6117_v46, 0.0  ;;  %4604 = vpow2.f32 %v2385_v30 }
 0x593   : > { %v6124_v24 = vsel %vm3944_vm6, %v3904_v40, %v3943_v48  ;;  %v2979_v34 = vpop.f32.mrf.mxu2  ;;  %2553 = vadd.xlane.f32.xlu1 %v2552_v33  ;;  %2220 = vmax.xlane.f32.xlu0 %v2219_v56  ;;  %v3649_v52 = vadd.f32 %v3648_v3, %v3647_v17  ;;  %v3159_v48 = vunpack.c.l.b16 %v2771_v47 }
 0x594   : > { %v3637_v12 = vrot.slane %v3636_v37, 4  ;;  %v3662_v55 = vsel %vm844_vm2, %v2979_v34, 0.0 }
 0x595   : > { %v4599_v60 = vpop.eup %4598  ;;  %v3663_v36 = vadd.f32 %v3662_v55, %v3661_v58  ;;  %v3650_v55 = vrot.slane %v3649_v52, 1 }
 0x596   : > { %v3638_v9 = vadd.f32 %v3637_v12, %v3636_v37  ;;  %v6129_v19 = vpop.eup %4600  ;;  %v2708_v49 = vmul.f32 %v4599_v60, %v5938_v1  ;;  %v2524_v10 = vpop.xlane.xlu0 %2523  ;;  %v3185_v12 = vunpack.c.l.b16 %v2774_v38 }
 0x597   : > { %v4603_v23 = vpop.eup %4602  ;;  %4606 = vrcp.f32 %v2524_v10  ;;  %v3664_v40 = vrot.slane %v3663_v36, 4  ;;  %v2555_v1 = vsel %vm2038_vm3, %v6129_v19, 0.0 }
 0x598   : > { %v3639_v32 = vrot.slane %v3638_v9, 2  ;;  %v2952_v56 = vpop.f32.mrf.mxu3  ;;  %v2772_v62 = vpack.c.bf16 %v2708_v49, %v2708_v49  ;;  %v2709_v61 = vmul.f32 %v4603_v23, %v5941_v6  ;;  %4608 = vrcp.f32 %v2521_v31  ;;  %v6135_v33 = vpop.eup %4604 }
 0x599   : > { %v2179_v18 = vpop.xlane.xlu1 %2178  ;;  %v3665_v58 = vadd.f32 %v3664_v40, %v3663_v36  ;;  %v3652_v23 = vsel %vm844_vm2, %v2952_v56, 0.0  ;;  %v3651_v36 = vadd.f32 %v3650_v55, %v3649_v52  ;;  %v6551_v40 = vld [vmem:[#allocation14_spill] sm:$0xff] }
 0x59a   : > { %v3640_v20 = vadd.f32 %v3639_v32, %v3638_v9  ;;  %v3160_v37 = vunpack.c.l.b16 %v2772_v62  ;;  %v2773_v4 = vpack.c.bf16 %v2709_v61, %v2709_v61  ;;  %v6550_v9 = vld [vmem:[#allocation15_spill] sm:$0xff]  ;;  %v2277_v38 = vsub.f32 %v5956_v59, %v2179_v18  ;;  %v2527_v18 = vpop.xlane.xlu2 %2526  ;;  %v6552_v55 = vld [vmem:[#allocation18_spill] sm:$0xff] }
 0x59b   : > { %2556 = vadd.xlane.f32.xlu1 %v2555_v1  ;;  %v3666_v49 = vrot.slane %v3665_v58, 2  ;;  %v3906_v59 = vmul.f32 %v6105_v29, %v3651_v36 }
 0x59c   : > { %v3641_v30 = vrot.slane %v3640_v20, 1  ;;  %v3161_v34 = vpack.c.b16 %v3160_v37, %v3159_v48  ;;  %v3184_v14 = vunpack.c.l.b16 %v2773_v4 }
 0x59d   : > { %v4607_v6 = vpop.eup %4606  ;;  %v3667_v4 = vadd.f32 %v3666_v49, %v3665_v58  ;;  %v2222_v49 = vsel %vm2038_vm3, %v6047_v7, -inf }
 0x59e   : > { %v3642_v17 = vadd.f32 %v3641_v30, %v3640_v20  ;;  %v3186_v31 = vpack.c.b16 %v3185_v12, %v3184_v14  ;;  %4346 = vmatmul.msk.bf16.vlgmr.msrb.gmra.mxu2 %vm2038_vm3, %v3161_v34  ;;  %v6138_v60 = vpop.xlane.xlu0 %2187  ;;  %v4609_v3 = vpop.eup %4608  ;;  %v2712_v10 = vmul.f32 %v4607_v6, %v5959_v42  ;;  %v2558_v42 = vsel %vm2038_vm3, %v6135_v33, 0.0 }
 0x59f   : > { %3275 = vmatpush.bf16.msrb.mxu2 %v6550_v9  ;;  %v2711_v20 = vmul.f32 %v4609_v3, %v5945_v15  ;;  %v2387_v30 = vmul.f32 1.442695, %v2277_v38 }
 0x5a0   : > { %v2954_v47 = vpop.f32.mrf.mxu3  ;;  %4347 = vmatmul.msk.bf16.vlgmr.msrb.gmra.mxu3 %vm2038_vm3, %v3186_v31  ;;  %v3905_v48 = vmul.f32 %v6105_v29, %v3642_v17  ;;  %v2776_v52 = vpack.c.bf16 %v2712_v10, %v2712_v10  ;;  %v3668_v17 = vrot.slane %v3667_v4, 1 }
 0x5a1   : > { %v3653_v32 = vsel %vm844_vm2, %v2954_v47, 0.0  ;;  %v2182_v61 = vpop.xlane.xlu1 %2181  ;;  %3300 = vmatpush.bf16.msrb.mxu3 %v6551_v40  ;;  %v2775_v15 = vpack.c.bf16 %v2711_v20, %v2711_v20 }
 0x5a2   : > { %v3654_v62 = vadd.f32 %v3653_v32, %v3652_v23  ;;  %v2278_v37 = vsub.f32 %v5974_v26, %v2182_v61  ;;  %v3947_v26 = vsel %vm3946_vm7, %v3905_v48, %v6124_v24  ;;  %v3210_v31 = vunpack.c.l.b16 %v2776_v52  ;;  %v6553_v48 = vld [vmem:[#allocation16_spill] sm:$0xff] }
 0x5a3   : > { %2559 = vadd.xlane.f32.xlu1 %v2558_v42  ;;  %v3949_v58 = vsel %vm3948_vm8, %v3906_v59, %v3947_v26  ;;  %v3209_v47 = vunpack.c.l.b16 %v2775_v15  ;;  %v3669_v23 = vadd.f32 %v3668_v17, %v3667_v4 }
 0x5a4   : > { %v3655_v56 = vrot.slane %v3654_v62, 4  ;;  %v2389_v1 = vmul.f32 1.442695, %v2278_v37 }
 0x5a5   : > { %v3211_v32 = vpack.c.b16 %v3210_v31, %v3209_v47  ;;  %v3908_v4 = vmul.f32 %v6105_v29, %v3669_v23  ;;  %v6180_v31 = vpop.xlane.xlu2 %2196 }
 0x5a6   : > { %v3656_v12 = vadd.f32 %v3655_v56, %v3654_v62  ;;  %4610 = vpow2.f32 %v2389_v1  ;;  %v2191_v34 = vpop.xlane.xlu0 %2190 }
 0x5a7   : > { %3512 = vrot.lane.b32.xlu0 %v6552_v55, %s4772_s26  ;;  %4612 = vrcp.f32 %v2527_v18 }
 0x5a8   : > { %v3657_v14 = vrot.slane %v3656_v12, 2  ;;  %v3002_v6 = vpop.f32.mrf.mxu3  ;;  %4614 = vpow2.f32 %v2387_v30 }
 0x5a9   : > { %v6158_v9 = vpop.xlane.xlu1 %2184  ;;  %v3670_v42 = vsel %vm844_vm2, %v3002_v6, 0.0 }
 0x5aa   : > { %v3658_v3 = vadd.f32 %v3657_v14, %v3656_v12 }
 0x5ab   : > { %2223 = vmax.xlane.f32.xlu1 %v2222_v49 }
 0x5ac   : > { %v3659_v10 = vrot.slane %v3658_v3, 1  ;;  %v6162_v24 = vpop.eup %4610 }
 0x5ad   : > { %v2564_v38 = vsel %vm2038_vm3, %v6162_v24, 0.0  ;;  %v4613_v62 = vpop.eup %4612 }
 0x5ae   : > { %v3660_v36 = vadd.f32 %v3659_v10, %v3658_v3  ;;  %2565 = vadd.xlane.f32.xlu2 %v2564_v38  ;;  %4348 = vmatmul.msk.bf16.vlgmr.msra.gmra.mxu2 %vm2038_vm3, %v3211_v32  ;;  %v2530_v61 = vpop.xlane.xlu0 %2529  ;;  %v6167_v40 = vpop.eup %4614  ;;  %v2713_v18 = vmul.f32 %v4613_v62, %v5966_v41  ;;  %v2225_v32 = vsel %vm2038_vm3, %v6071_v16, -inf }
 0x5af   : > { %3325 = vmatpush.bf16.msra.mxu2 %v6553_v48  ;;  %4616 = vrcp.f32 %v2530_v61  ;;  %v2561_v30 = vsel %vm2038_vm3, %v6167_v40, 0.0 }
 0x5b0   : > { %v3907_v20 = vmul.f32 %v6105_v29, %v3660_v36  ;;  %v3004_v37 = vpop.f32.mrf.mxu3  ;;  %v2777_v6 = vpack.c.bf16 %v2713_v18, %v2713_v18 }
 0x5b1   : > { %v3671_v56 = vsel %vm844_vm2, %v3004_v37, 0.0  ;;  %v2533_v1 = vpop.xlane.xlu1 %2532 }
 0x5b2   : > { %v3672_v52 = vadd.f32 %v3671_v56, %v3670_v42  ;;  %v3951_v59 = vsel %vm3950_vm9, %v3907_v20, %v3949_v58  ;;  %4618 = vrcp.f32 %v2533_v1  ;;  %v2281_v58 = vsub.f32 %v5990_v51, %v2191_v34  ;;  %v6554_v20 = vld [vmem:[#allocation19_spill] sm:$0xff] }
 0x5b3   : > { %v3953_v12 = vsel %vm3952_vm10, %v3908_v4, %v3951_v59  ;;  %2562 = vadd.xlane.f32.xlu1 %v2561_v30  ;;  %v3234_v10 = vunpack.c.l.b16 %v2777_v6  ;;  %v2279_v51 = vsub.f32 %v5935_v22, %v6158_v9  ;;  %v2280_v59 = vsub.f32 %v5961_v63, %v6138_v60 }
 0x5b4   : > { %v3673_v15 = vrot.slane %v3672_v52, 4  ;;  %v2395_v62 = vmul.f32 1.442695, %v2281_v58 }
 0x5b5   : > { %v4617_v26 = vpop.eup %4616  ;;  %v2391_v22 = vmul.f32 1.442695, %v2279_v51  ;;  %v2393_v6 = vmul.f32 1.442695, %v2280_v59 }
 0x5b6   : > { %v3674_v14 = vadd.f32 %v3673_v15, %v3672_v52  ;;  %v2714_v55 = vmul.f32 %v4617_v26, %v6001_v57  ;;  %v2194_v34 = vpop.xlane.xlu0 %2193  ;;  %v6555_v15 = vld [vmem:[#allocation17_spill] sm:$0xff] }
 0x5b8   : > { %v3675_v17 = vrot.slane %v3674_v14, 2  ;;  %v2778_v3 = vpack.c.bf16 %v2714_v55, %v2714_v55  ;;  %v4619_v49 = vpop.eup %4618 }
 0x5b9   : > { %v2536_v47 = vpop.xlane.xlu1 %2535  ;;  %v2715_v61 = vmul.f32 %v4619_v49, %v6006_v35  ;;  %v2228_v35 = vsel %vm2038_vm3, %v6075_v25, -inf }
 0x5ba   : > { %v3676_v41 = vadd.f32 %v3675_v17, %v3674_v14  ;;  %v3235_v23 = vunpack.c.l.b16 %v2778_v3  ;;  %4620 = vrcp.f32 %v2536_v47  ;;  %v6556_v3 = vld [vmem:[#allocation23_spill] sm:$0xff] }
 0x5bb   : > { %2226 = vmax.xlane.f32.xlu1 %v2225_v32  ;;  %4622 = vpow2.f32 %v2395_v62  ;;  %v2779_v56 = vpack.c.bf16 %v2715_v61, %v2715_v61 }
 0x5bc   : > { %v3677_v36 = vrot.slane %v3676_v41, 1  ;;  %v3236_v38 = vpack.c.b16 %v3235_v23, %v3234_v10  ;;  %4624 = vpow2.f32 %v2391_v22  ;;  %v2283_v22 = vsub.f32 %v5976_v0, %v6180_v31  ;;  %v6557_v31 = vld [vmem:[#allocation25_spill] sm:$0xff] }
 0x5bd   : > { %v3259_v18 = vunpack.c.l.b16 %v2779_v56 }
 0x5be   : > { %v3678_v57 = vadd.f32 %v3677_v36, %v3676_v41  ;;  %4349 = vmatmul.msk.bf16.vlgmr.msra.gmra.mxu3 %vm2038_vm3, %v3236_v38  ;;  %v2282_v41 = vsub.f32 %v6011_v27, %v2194_v34 }
 0x5bf   : > { %3350 = vmatpush.bf16.msra.mxu3 %v6554_v20 }
 0x5c0   : > { %v3909_v48 = vmul.f32 %v6105_v29, %v3678_v57  ;;  %v4621_v37 = vpop.eup %4620  ;;  %v2545_v42 = vpop.xlane.xlu2 %2544  ;;  %v2397_v38 = vmul.f32 1.442695, %v2282_v41 }
 0x5c1   : > { %v2716_v4 = vmul.f32 %v4621_v37, %v6017_v53  ;;  %v2200_v52 = vpop.xlane.xlu1 %2199  ;;  %v6201_v26 = vpop.eup %4622  ;;  %4626 = vrcp.f32 %v2545_v42 }
 0x5c2   : > { %v6195_v1 = vsel %vm3954_vm11, %v3909_v48, %v3953_v12  ;;  %v2539_v12 = vpop.xlane.xlu0 %2538  ;;  %v2573_v63 = vsel %vm2038_vm3, %v6201_v26, 0.0  ;;  %v6210_v58 = vpop.eup %4624  ;;  %v2284_v48 = vsub.f32 %v5992_v43, %v2200_v52 }
 0x5c3   : > { %v2780_v9 = vpack.c.bf16 %v2716_v4, %v2716_v4  ;;  %2229 = vmax.xlane.f32.xlu1 %v2228_v35  ;;  %4628 = vrcp.f32 %v2539_v12  ;;  %v2567_v49 = vsel %vm2038_vm3, %v6210_v58, 0.0 }
 0x5c4   : > { %4630 = vpow2.f32 %v2393_v6  ;;  %v2399_v6 = vmul.f32 1.442695, %v2283_v22 }
 0x5c5   : > { %v3260_v30 = vunpack.c.l.b16 %v2780_v9 }
 0x5c6   : > { %3487 = vrot.lane.b32.xlu2 %v6555_v15, %s4772_s26 }
 0x5c7   : > { %v3261_v53 = vpack.c.b16 %v3260_v30, %v3259_v18  ;;  %v2401_v18 = vmul.f32 1.442695, %v2284_v48 }
 0x5c8   : > { %v6203_v14 = vpop.xlane.xlu2 %2208 }
 0x5c9   : > { %v2203_v55 = vpop.xlane.xlu1 %2202  ;;  %4350 = vmatmul.msk.bf16.vlgmr.msrb.gmra.mxu2 %vm2038_vm3, %v3261_v53 }
 0x5ca   : > { %v2285_v17 = vsub.f32 %v6023_v21, %v2203_v55  ;;  %3375 = vmatpush.bf16.msrb.mxu2 %v6556_v3  ;;  %v4627_v21 = vpop.eup %4626 }
 0x5cb   : > { %2574 = vadd.xlane.f32.xlu1 %v2573_v63  ;;  %v4629_v23 = vpop.eup %4628  ;;  %v2719_v62 = vmul.f32 %v4627_v21, %v6033_v44 }
 0x5cc   : > { %v2403_v60 = vmul.f32 1.442695, %v2285_v17  ;;  %v6215_v32 = vpop.eup %4630  ;;  %v2717_v57 = vmul.f32 %v4629_v23, %v6028_v28  ;;  %v6558_v17 = vld [vmem:[#allocation24_spill] sm:$0xff] }
 0x5cd   : > { %v2570_v51 = vsel %vm2038_vm3, %v6215_v32, 0.0  ;;  %v2783_v20 = vpack.c.bf16 %v2719_v62, %v2719_v62 }
 0x5ce   : > { %4632 = vpow2.f32 %v2403_v60  ;;  %v2781_v56 = vpack.c.bf16 %v2717_v57, %v2717_v57 }
 0x5cf   : > { %v3309_v59 = vunpack.c.l.b16 %v2783_v20 }
 0x5d0   : > { %v2548_v47 = vpop.xlane.xlu2 %2547  ;;  %v3284_v43 = vunpack.c.l.b16 %v2781_v56 }
 0x5d1   : > { %4634 = vrcp.f32 %v2548_v47  ;;  %v2542_v10 = vpop.xlane.xlu1 %2541  ;;  %2568 = vadd.xlane.f32.xlu0 %v2567_v49 }
 0x5d2   : > { %4636 = vrcp.f32 %v2542_v10 }
 0x5d3   : > { %4638 = vpow2.f32 %v2397_v38 }
 0x5d4   : > { %v6217_v36 = vpop.eup %4632 }
 0x5d5   : > { %v2585_v27 = vsel %vm2038_vm3, %v6217_v36, 0.0 }
 0x5d6   : > { %2586 = vadd.xlane.f32.xlu1 %v2585_v27 }
 0x5d7   : > { %v4635_v61 = vpop.eup %4634 }
 0x5d8   : > { %v4637_v34 = vpop.eup %4636  ;;  %v2720_v37 = vmul.f32 %v4635_v61, %v6056_v2  ;;  %v2212_v42 = vpop.xlane.xlu2 %2211 }
 0x5d9   : > { %v2718_v44 = vmul.f32 %v4637_v34, %v6059_v5  ;;  %v2206_v28 = vpop.xlane.xlu1 %2205  ;;  %2571 = vadd.xlane.f32.xlu0 %v2570_v51  ;;  %v6231_v2 = vpop.eup %4638  ;;  %v2288_v60 = vsub.f32 %v6021_v13, %v2212_v42 }
 0x5da   : > { %v2784_v4 = vpack.c.bf16 %v2720_v37, %v2720_v37  ;;  %v2286_v35 = vsub.f32 %v6044_v11, %v2206_v28  ;;  %v2287_v11 = vsub.f32 %v6003_v8, %v6203_v14  ;;  %v2576_v55 = vsel %vm2038_vm3, %v6231_v2, 0.0  ;;  %v6270_v34 = vpop.f32.mrf.mxu3 }
 0x5db   : > { %v2782_v9 = vpack.c.bf16 %v2718_v44, %v2718_v44  ;;  %v2409_v38 = vmul.f32 1.442695, %v2288_v60 }
 0x5dc   : > { %v3310_v30 = vunpack.c.l.b16 %v2784_v4  ;;  %v2405_v15 = vmul.f32 1.442695, %v2286_v35  ;;  %v2407_v8 = vmul.f32 1.442695, %v2287_v11 }
 0x5dd   : > { %v3285_v52 = vunpack.c.l.b16 %v2782_v9 }
 0x5de   : > { %v3311_v53 = vpack.c.b16 %v3310_v30, %v3309_v59  ;;  %4640 = vpow2.f32 %v2405_v15  ;;  %v6559_v15 = vld [vmem:[#allocation20_spill] sm:$0xff] }
 0x5df   : > { %v3286_v5 = vpack.c.b16 %v3285_v52, %v3284_v43  ;;  %4642 = vpow2.f32 %v2401_v18 }
 0x5e0   : > { %v2215_v12 = vpop.xlane.xlu2 %2214  ;;  %4352 = vmatmul.msk.bf16.vlgmr.msra.gmra.mxu2 %vm2038_vm3, %v3311_v53  ;;  %4644 = vpow2.f32 %v2399_v6 }
 0x5e1   : > { %v2289_v0 = vsub.f32 %v6053_v45, %v2215_v12  ;;  %4351 = vmatmul.msk.bf16.vlgmr.msrb.gmra.mxu3 %vm2038_vm3, %v3286_v5  ;;  %3425 = vmatpush.bf16.msra.mxu2 %v6557_v31  ;;  %v6560_v31 = vld [vmem:[#allocation28_spill] sm:$0xff] }
 0x5e2   : > { %3400 = vmatpush.bf16.msrb.mxu3 %v6558_v17  ;;  %2577 = vadd.xlane.f32.xlu0 %v2576_v55  ;;  %v3054_v56 = vpop.f32.mrf.mxu3 }
 0x5e3   : > { %v2411_v3 = vmul.f32 1.442695, %v2289_v0 }
 0x5e4   : > { %v6242_v63 = vpop.eup %4640 }
 0x5e5   : > { %4646 = vpow2.f32 %v2411_v3  ;;  %v2588_v14 = vsel %vm2038_vm3, %v6242_v63, 0.0  ;;  %v6246_v45 = vpop.eup %4642 }
 0x5e6   : > { %2589 = vadd.xlane.f32.xlu1 %v2588_v14  ;;  %4648 = vpow2.f32 %v2407_v8  ;;  %v2582_v49 = vsel %vm2038_vm3, %v6246_v45, 0.0  ;;  %v6252_v21 = vpop.eup %4644 }
 0x5e7   : > { %v2579_v13 = vsel %vm2038_vm3, %v6252_v21, 0.0 }
 0x5e8   : > { %v2218_v41 = vpop.xlane.xlu2 %2217 }
 0x5e9   : > { %v2290_v47 = vsub.f32 %v6065_v50, %v2218_v41  ;;  %v6262_v50 = vpop.f32.mrf.mxu2 }
 0x5ea   : > { %2583 = vadd.xlane.f32.xlu0 %v2582_v49  ;;  %v6280_v35 = vpop.f32.mrf.mxu3 }
 0x5eb   : > { %v6254_v10 = vpop.eup %4646  ;;  %v2413_v23 = vmul.f32 1.442695, %v2290_v47 }
 0x5ec   : > { %v2597_v62 = vsel %vm2038_vm3, %v6254_v10, 0.0  ;;  %v6258_v57 = vpop.eup %4648 }
 0x5ed   : > { %4650 = vpow2.f32 %v2413_v23  ;;  %v2591_v27 = vsel %vm2038_vm3, %v6258_v57, 0.0 }
 0x5ee   : > { %2598 = vadd.xlane.f32.xlu1 %v2597_v62  ;;  %4652 = vpow2.f32 %v2409_v38 }
 0x5ef   : > { %2580 = vadd.xlane.f32.xlu2 %v2579_v13 }
 0x5f1   : > { %v6276_v37 = vpop.f32.mrf.mxu2 }
 0x5f2   : > { %2592 = vadd.xlane.f32.xlu0 %v2591_v27  ;;  %v3104_v53 = vpop.f32.mrf.mxu3 }
 0x5f3   : > { %v6266_v61 = vpop.eup %4650 }
 0x5f4   : > { %v2600_v51 = vsel %vm2038_vm3, %v6266_v61, 0.0  ;;  %v6272_v20 = vpop.eup %4652 }
 0x5f5   : > { %v2594_v48 = vsel %vm2038_vm3, %v6272_v20, 0.0 }
 0x5f7   : > { %2601 = vadd.xlane.f32.xlu2 %v2600_v51 }
 0x5f9   : > { %v6278_v44 = vpop.f32.mrf.mxu2 }
 0x5fa   : > { %2595 = vadd.xlane.f32.xlu0 %v2594_v48 }
 0x5fe   : > { %v2551_v42 = vpop.xlane.xlu0 %2550 }
 0x5ff   : > { %4654 = vrcp.f32 %v2551_v42 }
 0x601   : > { %v6283_v59 = vpop.f32.mrf.mxu2 }
 0x605   : > { %v4655_v4 = vpop.eup %4654 }
 0x606   : > { %v2554_v28 = vpop.xlane.xlu1 %2553  ;;  %v2721_v22 = vmul.f32 %v4655_v4, %v6098_v39  ;;  %v2221_v13 = vpop.xlane.xlu0 %2220 }
 0x607   : > { %4656 = vrcp.f32 %v2554_v28 }
 0x608   : > { %v2785_v18 = vpack.c.bf16 %v2721_v22, %v2721_v22 }
 0x609   : > { %v6288_v12 = vpop.f32.mrf.mxu2 }
 0x60a   : > { %v3334_v5 = vunpack.c.l.b16 %v2785_v18 }
 0x60d   : > { %v4657_v9 = vpop.eup %4656 }
 0x60e   : > { %v2722_v30 = vmul.f32 %v4657_v9, %v6117_v46  ;;  %3537 = vrot.lane.b32.xlu0 %v6559_v15, %s4772_s26  ;;  %v2557_v43 = vpop.xlane.xlu1 %2556 }
 0x60f   : > { %4658 = vrcp.f32 %v2557_v43 }
 0x610   : > { %v2786_v52 = vpack.c.bf16 %v2722_v30, %v2722_v30 }
 0x611   : > { %v6292_v46 = vpop.f32.mrf.mxu3  ;;  %v3129_v41 = vpop.f32.mrf.mxu2 }
 0x612   : > { %v3335_v6 = vunpack.c.l.b16 %v2786_v52 }
 0x614   : > { %v3336_v11 = vpack.c.b16 %v3335_v6, %v3334_v5  ;;  %v3680_v5 = vsel %vm844_vm2, %v6276_v37, 0.0  ;;  %v3698_v37 = vsel %vm844_vm2, %v6283_v59, 0.0 }
 0x615   : > { %v4659_v39 = vpop.eup %4658 }
 0x616   : > { %v2560_v0 = vpop.xlane.xlu1 %2559  ;;  %4353 = vmatmul.msk.bf16.vlgmr.msra.gmra.mxu3 %vm2038_vm3, %v3336_v11  ;;  %v2723_v55 = vmul.f32 %v4659_v39, %v6129_v19  ;;  %v2291_v19 = vsub.f32 %v6036_v54, %v2221_v13  ;;  %v3689_v54 = vsel %vm844_vm2, %v3054_v56, 0.0 }
 0x617   : > { %4660 = vrcp.f32 %v2560_v0  ;;  %3450 = vmatpush.bf16.msra.mxu3 %v6560_v31  ;;  %v3679_v0 = vsel %vm844_vm2, %v6262_v50, 0.0  ;;  %v3706_v50 = vsel %vm844_vm2, %v6280_v35, 0.0 }
 0x618   : > { %v2787_v3 = vpack.c.bf16 %v2723_v55, %v2723_v55  ;;  %v2415_v4 = vmul.f32 1.442695, %v2291_v19  ;;  %v3681_v56 = vadd.f32 %v3680_v5, %v3679_v0  ;;  %v3707_v55 = vsel %vm844_vm2, %v3104_v53, 0.0 }
 0x619   : > { %v3154_v27 = vpop.f32.mrf.mxu3 }
 0x61a   : > { %v3359_v38 = vunpack.c.l.b16 %v2787_v3 }
 0x61d   : > { %v4661_v17 = vpop.eup %4660 }
 0x61e   : > { %v2724_v8 = vmul.f32 %v4661_v17, %v6135_v33  ;;  %v2224_v14 = vpop.xlane.xlu1 %2223  ;;  %v6561_v33 = vld [vmem:[#allocation29_spill] sm:$0xff] }
 0x61f   : > { %v2292_v60 = vsub.f32 %v6047_v7, %v2224_v14  ;;  %v3725_v14 = vsel %vm844_vm2, %v3154_v27, 0.0 }
 0x620   : > { %v2788_v47 = vpack.c.bf16 %v2724_v8, %v2724_v8 }
 0x621   : > { %v2417_v49 = vmul.f32 1.442695, %v2292_v60  ;;  %v2566_v23 = vpop.xlane.xlu2 %2565  ;;  %v3177_v42 = vpop.f32.mrf.mxu2 }
 0x622   : > { %v3360_v62 = vunpack.c.l.b16 %v2788_v47  ;;  %4662 = vrcp.f32 %v2566_v23  ;;  %v3708_v47 = vadd.f32 %v3707_v55, %v3706_v50  ;;  %v3682_v23 = vrot.slane %v3681_v56, 4 }
 0x623   : > { %4664 = vpow2.f32 %v2417_v49  ;;  %v3202_v18 = vpop.f32.mrf.mxu3  ;;  %v3715_v49 = vsel %vm844_vm2, %v6288_v12, 0.0  ;;  %v3733_v27 = vsel %vm844_vm2, %v3177_v42, 0.0 }
 0x624   : > { %v3361_v51 = vpack.c.b16 %v3360_v62, %v3359_v38  ;;  %v3683_v42 = vadd.f32 %v3682_v23, %v3681_v56 }
 0x626   : > { %v2563_v48 = vpop.xlane.xlu1 %2562  ;;  %4354 = vmatmul.msk.bf16.vlgmr.msrb.gmra.mxu2 %vm2038_vm3, %v3361_v51 }
 0x627   : > { %4666 = vrcp.f32 %v2563_v48  ;;  %3475 = vmatpush.bf16.msrb.mxu2 %v6561_v33 }
 0x628   : > { %v4663_v7 = vpop.eup %4662  ;;  %4668 = vpow2.f32 %v2415_v4  ;;  %v3709_v4 = vrot.slane %v3708_v47, 4 }
 0x629   : > { %v6300_v28 = vpop.eup %4664  ;;  %v2726_v22 = vmul.f32 %v4663_v7, %v6162_v24  ;;  %v3688_v24 = vsel %vm844_vm2, %v6270_v34, 0.0  ;;  %v3179_v3 = vpop.f32.mrf.mxu2  ;;  %v3697_v34 = vsel %vm844_vm2, %v6278_v44, 0.0  ;;  %v3724_v44 = vsel %vm844_vm2, %v6292_v46, 0.0 }
 0x62a   : > { %v2606_v9 = vsel %vm2038_vm3, %v6300_v28, 0.0  ;;  %v3690_v39 = vadd.f32 %v3689_v54, %v3688_v24  ;;  %v3734_v59 = vsel %vm844_vm2, %v3179_v3, 0.0  ;;  %v3699_v38 = vadd.f32 %v3698_v37, %v3697_v34  ;;  %v3488_v13 = vpop.permute.xlu2 %3487 }
 0x62b   : > { %2607 = vadd.xlane.f32.xlu2 %v2606_v9  ;;  %v2790_v15 = vpack.c.bf16 %v2726_v22, %v2726_v22  ;;  %v3726_v35 = vadd.f32 %v3725_v14, %v3724_v44  ;;  %v3735_v48 = vadd.f32 %v3734_v59, %v3733_v27  ;;  %v3742_v54 = vsel %vm844_vm2, %v3202_v18, 0.0 }
 0x62c   : > { %v3691_v60 = vrot.slane %v3690_v39, 4  ;;  %v3700_v9 = vrot.slane %v3699_v38, 4  ;;  %v3710_v24 = vadd.f32 %v3709_v4, %v3708_v47 }
 0x62d   : > { %v4667_v30 = vpop.eup %4666  ;;  %v3385_v17 = vunpack.c.l.b16 %v2790_v15  ;;  %v3727_v15 = vrot.slane %v3726_v35, 4  ;;  %v3736_v5 = vrot.slane %v3735_v48, 4 }
 0x62e   : > { %v2725_v43 = vmul.f32 %v4667_v30, %v6167_v40  ;;  %v2227_v52 = vpop.xlane.xlu1 %2226  ;;  %v6318_v8 = vpop.eup %4668  ;;  %v3692_v46 = vadd.f32 %v3691_v60, %v3690_v39  ;;  %v3684_v39 = vrot.slane %v3683_v42, 2  ;;  %v3711_v3 = vrot.slane %v3710_v24, 2 }
 0x62f   : > { %v2293_v6 = vsub.f32 %v6071_v16, %v2227_v52  ;;  %v3716_v16 = vsel %vm844_vm2, %v3129_v41, 0.0  ;;  %v3204_v41 = vpop.f32.mrf.mxu3  ;;  %v2603_v12 = vsel %vm2038_vm3, %v6318_v8, 0.0  ;;  %v6341_v52 = vpop.permute.xlu0 %3512 }
 0x630   : > { %v2789_v11 = vpack.c.bf16 %v2725_v43, %v2725_v43  ;;  %v3717_v62 = vadd.f32 %v3716_v16, %v3715_v49  ;;  %v3743_v33 = vsel %vm844_vm2, %v3204_v41, 0.0  ;;  %v3685_v34 = vadd.f32 %v3684_v39, %v3683_v42 }
 0x631   : > { %v2419_v31 = vmul.f32 1.442695, %v2293_v6  ;;  %v3744_v43 = vadd.f32 %v3743_v33, %v3742_v54  ;;  %v3693_v6 = vrot.slane %v3692_v46, 2  ;;  %v3712_v49 = vadd.f32 %v3711_v3, %v3710_v24 }
 0x632   : > { %v3384_v40 = vunpack.c.l.b16 %v2789_v11  ;;  %v3718_v30 = vrot.slane %v3717_v62, 4  ;;  %v3701_v11 = vadd.f32 %v3700_v9, %v3699_v38  ;;  %v3686_v23 = vrot.slane %v3685_v34, 1 }
 0x633   : > { %4670 = vpow2.f32 %v2419_v31  ;;  %v3728_v31 = vadd.f32 %v3727_v15, %v3726_v35  ;;  %v3745_v55 = vrot.slane %v3744_v43, 4 }
 0x634   : > { %v3386_v53 = vpack.c.b16 %v3385_v17, %v3384_v40  ;;  %v3719_v0 = vadd.f32 %v3718_v30, %v3717_v62  ;;  %v3737_v17 = vadd.f32 %v3736_v5, %v3735_v48  ;;  %v3694_v40 = vadd.f32 %v3693_v6, %v3692_v46 }
 0x635   : > { %v3702_v56 = vrot.slane %v3701_v11, 2  ;;  %v3729_v50 = vrot.slane %v3728_v31, 2  ;;  %v3746_v14 = vadd.f32 %v3745_v55, %v3744_v43 }
 0x636   : > { %v2230_v51 = vpop.xlane.xlu1 %2229  ;;  %4355 = vmatmul.msk.bf16.vlgmr.msrb.gmra.mxu3 %vm2038_vm3, %v3386_v53  ;;  %v3720_v37 = vrot.slane %v3719_v0, 2  ;;  %v3738_v53 = vrot.slane %v3737_v17, 2  ;;  %v3695_v47 = vrot.slane %v3694_v40, 1 }
 0x637   : > { %v2294_v19 = vsub.f32 %v6075_v25, %v2230_v51  ;;  %3500 = vmatpush.bf16.msrb.mxu3 %v3488_v13  ;;  %v3703_v59 = vadd.f32 %v3702_v56, %v3701_v11  ;;  %v3730_v38 = vadd.f32 %v3729_v50, %v3728_v31  ;;  %v3747_v62 = vrot.slane %v3746_v14, 2 }
 0x638   : > { %2604 = vadd.xlane.f32.xlu0 %v2603_v12  ;;  %v3721_v41 = vadd.f32 %v3720_v37, %v3719_v0  ;;  %v3739_v44 = vadd.f32 %v3738_v53, %v3737_v17  ;;  %v3696_v13 = vadd.f32 %v3695_v47, %v3694_v40  ;;  %v3713_v51 = vrot.slane %v3712_v49, 1 }
 0x639   : > { %v6336_v7 = vpop.eup %4670  ;;  %v2421_v22 = vmul.f32 1.442695, %v2294_v19  ;;  %v3704_v35 = vrot.slane %v3703_v59, 1  ;;  %v3687_v12 = vadd.f32 %v3686_v23, %v3685_v34  ;;  %v3731_v48 = vrot.slane %v3730_v38, 1 }
 0x63a   : > { %v2609_v25 = vsel %vm2038_vm3, %v6336_v7, 0.0  ;;  %v3722_v27 = vrot.slane %v3721_v41, 1  ;;  %v3748_v33 = vadd.f32 %v3747_v62, %v3746_v14  ;;  %v3740_v46 = vrot.slane %v3739_v44, 1 }
 0x63b   : > { %4672 = vpow2.f32 %v2421_v22  ;;  %2610 = vadd.xlane.f32.xlu1 %v2609_v25  ;;  %v3911_v9 = vmul.f32 %v6105_v29, %v3696_v13  ;;  %v3714_v30 = vadd.f32 %v3713_v51, %v3712_v49  ;;  %v3705_v54 = vadd.f32 %v3704_v35, %v3703_v59 }
 0x63c   : > { %v3723_v25 = vadd.f32 %v3722_v27, %v3721_v41  ;;  %v3910_v42 = vmul.f32 %v6105_v29, %v3687_v12  ;;  %v3732_v15 = vadd.f32 %v3731_v48, %v3730_v38  ;;  %v3749_v43 = vrot.slane %v3748_v33, 1 }
 0x63d   : > { %v3741_v5 = vadd.f32 %v3740_v46, %v3739_v44  ;;  %v3913_v11 = vmul.f32 %v6105_v29, %v3714_v30  ;;  %v3912_v0 = vmul.f32 %v6105_v29, %v3705_v54  ;;  %v6563_v44 = vld [vmem:[#allocation22_spill] sm:$0xff] }
 0x63e   : > { %v2575_v19 = vpop.xlane.xlu1 %2574  ;;  %v3965_v24 = vsel %vm3942_vm5, %v3911_v9, %v3910_v42  ;;  %v3914_v39 = vmul.f32 %v6105_v29, %v3723_v25  ;;  %v3915_v17 = vmul.f32 %v6105_v29, %v3732_v15  ;;  %v3750_v40 = vadd.f32 %v3749_v43, %v3748_v33 }
 0x63f   : > { %v3916_v3 = vmul.f32 %v6105_v29, %v3741_v5 }
 0x640   : > { %v3917_v47 = vmul.f32 %v6105_v29, %v3750_v40 }
 0x641   : > { %v6343_v18 = vpop.eup %4672 }
 0x642   : > { %v2612_v16 = vsel %vm2038_vm3, %v6343_v18, 0.0 }
 0x643   : > { %2613 = vadd.xlane.f32.xlu2 %v2612_v16  ;;  %v3966_v16 = vsel %vm3944_vm6, %v3912_v0, %v3965_v24 }
 0x644   : > { %v2569_v60 = vpop.xlane.xlu0 %2568  ;;  %v3967_v50 = vsel %vm3946_vm7, %v3913_v11, %v3966_v16 }
 0x645   : > { %4674 = vrcp.f32 %v2569_v60  ;;  %v3968_v60 = vsel %vm3948_vm8, %v3914_v39, %v3967_v50 }
 0x646   : > { %v3969_v49 = vsel %vm3950_vm9, %v3915_v17, %v3968_v60 }
 0x649   : > { %v2587_v31 = vpop.xlane.xlu1 %2586 }
 0x64b   : > { %v4675_v22 = vpop.eup %4674 }
 0x64c   : > { %v2572_v4 = vpop.xlane.xlu0 %2571  ;;  %v2727_v6 = vmul.f32 %v4675_v22, %v6210_v58  ;;  %v6562_v58 = vld [vmem:[#allocation21_spill] sm:$0xff] }
 0x64d   : > { %4676 = vrcp.f32 %v2572_v4 }
 0x64e   : > { %4678 = vrcp.f32 %v2575_v19  ;;  %v2791_v56 = vpack.c.bf16 %v2727_v6, %v2727_v6 }
 0x650   : > { %v3409_v59 = vunpack.c.l.b16 %v2791_v56 }
 0x653   : > { %v4677_v55 = vpop.eup %4676 }
 0x654   : > { %v2728_v37 = vmul.f32 %v4677_v55, %v6215_v32  ;;  %3562 = vrot.lane.b32.xlu1 %v6562_v58, %s4772_s26  ;;  %v4679_v14 = vpop.eup %4678  ;;  %v3970_v32 = vsel %vm3952_vm10, %v3916_v3, %v3969_v49  ;;  %v3252_v49 = vpop.f32.mrf.mxu3 }
 0x655   : > { %v2578_v34 = vpop.xlane.xlu0 %2577  ;;  %v2729_v23 = vmul.f32 %v4679_v14, %v6201_v26  ;;  %v3971_v13 = vsel %vm3954_vm11, %v3917_v47, %v3970_v32 }
 0x656   : > { %v2792_v53 = vpack.c.bf16 %v2728_v37, %v2728_v37  ;;  %4680 = vrcp.f32 %v2578_v34 }
 0x657   : > { %v2793_v35 = vpack.c.bf16 %v2729_v23, %v2729_v23 }
 0x658   : > { %v3410_v41 = vunpack.c.l.b16 %v2792_v53 }
 0x659   : > { %v2590_v62 = vpop.xlane.xlu1 %2589  ;;  %v3434_v12 = vunpack.c.l.b16 %v2793_v35 }
 0x65a   : > { %v3411_v38 = vpack.c.b16 %v3410_v41, %v3409_v59  ;;  %4682 = vrcp.f32 %v2590_v62 }
 0x65b   : > { %3587 = vrot.lane.b32.xlu2 %v6563_v44, %s4772_s26 }
 0x65c   : > { %v4681_v51 = vpop.eup %4680  ;;  %3972 = vrot.lane.b32.xlu1 %v3971_v13, %s4775_s10  ;;  %4356 = vmatmul.msk.bf16.vlgmr.msra.gmra.mxu2 %vm2038_vm3, %v3411_v38 }
 0x65d   : > { %v2730_v27 = vmul.f32 %v4681_v51, %v6231_v2  ;;  %3525 = vmatpush.bf16.msra.mxu2 %v6341_v52  ;;  %v2584_v19 = vpop.xlane.xlu0 %2583 }
 0x65e   : > { %4684 = vrcp.f32 %v2584_v19 }
 0x65f   : > { %v2794_v26 = vpack.c.bf16 %v2730_v27, %v2730_v27  ;;  %4686 = vrcp.f32 %v2587_v31 }
 0x660   : > { %v4683_v46 = vpop.eup %4682 }
 0x661   : > { %v3435_v48 = vunpack.c.l.b16 %v2794_v26  ;;  %v2734_v54 = vmul.f32 %v4683_v46, %v6242_v63  ;;  %v2599_v11 = vpop.xlane.xlu1 %2598  ;;  %v3760_v46 = vsel %vm844_vm2, %v3252_v49, 0.0 }
 0x662   : > { %v2581_v33 = vpop.xlane.xlu2 %2580 }
 0x663   : > { %v3436_v4 = vpack.c.b16 %v3435_v48, %v3434_v12  ;;  %4688 = vrcp.f32 %v2581_v33  ;;  %v2798_v5 = vpack.c.bf16 %v2734_v54, %v2734_v54 }
 0x664   : > { %v4685_v22 = vpop.eup %4684 }
 0x665   : > { %4357 = vmatmul.msk.bf16.vlgmr.msra.gmra.mxu3 %vm2038_vm3, %v3436_v4  ;;  %v2593_v9 = vpop.xlane.xlu0 %2592  ;;  %v4687_v30 = vpop.eup %4686  ;;  %v2732_v2 = vmul.f32 %v4685_v22, %v6246_v45  ;;  %v3485_v45 = vunpack.c.l.b16 %v2798_v5 }
 0x666   : > { %v2733_v25 = vmul.f32 %v4687_v30, %v6217_v36  ;;  %4690 = vrcp.f32 %v2593_v9 }
 0x667   : > { %v2796_v42 = vpack.c.bf16 %v2732_v2, %v2732_v2 }
 0x668   : > { %v2797_v24 = vpack.c.bf16 %v2733_v25, %v2733_v25 }
 0x669   : > { %v4689_v52 = vpop.eup %4688  ;;  %v3460_v39 = vunpack.c.l.b16 %v2796_v42 }
 0x66a   : > { %v2731_v15 = vmul.f32 %v4689_v52, %v6252_v21  ;;  %v2602_v43 = vpop.xlane.xlu2 %2601  ;;  %v3484_v55 = vunpack.c.l.b16 %v2797_v24  ;;  %v3227_v21 = vpop.f32.mrf.mxu2 }
 0x66b   : > { %4692 = vrcp.f32 %v2602_v43  ;;  %v3751_v33 = vsel %vm844_vm2, %v3227_v21, 0.0 }
 0x66c   : > { %v2795_v6 = vpack.c.bf16 %v2731_v15, %v2731_v15  ;;  %v4691_v17 = vpop.eup %4690  ;;  %v3486_v40 = vpack.c.b16 %v3485_v45, %v3484_v55 }
 0x66d   : > { %v2596_v0 = vpop.xlane.xlu0 %2595  ;;  %v2735_v58 = vmul.f32 %v4691_v17, %v6258_v57 }
 0x66e   : > { %v3459_v31 = vunpack.c.l.b16 %v2795_v6  ;;  %4694 = vrcp.f32 %v2596_v0 }
 0x66f   : > { %4696 = vrcp.f32 %v2599_v11  ;;  %v2799_v14 = vpack.c.bf16 %v2735_v58, %v2735_v58 }
 0x670   : > { %v3461_v63 = vpack.c.b16 %v3460_v39, %v3459_v31 }
 0x671   : > { %v4693_v36 = vpop.eup %4692  ;;  %v3509_v41 = vunpack.c.l.b16 %v2799_v14 }
 0x672   : > { %4358 = vmatmul.msk.bf16.vlgmr.msrb.gmra.mxu2 %vm2038_vm3, %v3461_v63  ;;  %v2738_v16 = vmul.f32 %v4693_v36, %v6266_v61  ;;  %v3229_v47 = vpop.f32.mrf.mxu2  ;;  %v3254_v61 = vpop.f32.mrf.mxu3 }
 0x673   : > { %v3752_v19 = vsel %vm844_vm2, %v3229_v47, 0.0  ;;  %v3761_v26 = vsel %vm844_vm2, %v3254_v61, 0.0 }
 0x674   : > { %v4695_v3 = vpop.eup %4694  ;;  %v2802_v53 = vpack.c.bf16 %v2738_v16, %v2738_v16  ;;  %v3753_v22 = vadd.f32 %v3752_v19, %v3751_v33  ;;  %v3762_v9 = vadd.f32 %v3761_v26, %v3760_v46 }
 0x675   : > { %v2736_v56 = vmul.f32 %v4695_v3, %v6272_v20  ;;  %4359 = vmatmul.msk.bf16.vlgmr.msrb.gmra.mxu3 %vm2038_vm3, %v3486_v40  ;;  %v4697_v37 = vpop.eup %4696 }
 0x676   : > { %v2737_v50 = vmul.f32 %v4697_v37, %v6254_v10  ;;  %v3535_v32 = vunpack.c.l.b16 %v2802_v53  ;;  %v3754_v6 = vrot.slane %v3753_v22, 4  ;;  %v3763_v24 = vrot.slane %v3762_v9, 4 }
 0x677   : > { %v2800_v34 = vpack.c.bf16 %v2736_v56, %v2736_v56 }
 0x678   : > { %v2801_v59 = vpack.c.bf16 %v2737_v50, %v2737_v50  ;;  %v3755_v40 = vadd.f32 %v3754_v6, %v3753_v22  ;;  %v3764_v3 = vadd.f32 %v3763_v24, %v3762_v9 }
 0x679   : > { %v3510_v60 = vunpack.c.l.b16 %v2800_v34 }
 0x67a   : > { %v3534_v38 = vunpack.c.l.b16 %v2801_v59  ;;  %v3277_v62 = vpop.f32.mrf.mxu2  ;;  %v3302_v44 = vpop.f32.mrf.mxu3  ;;  %v3765_v47 = vrot.slane %v3764_v3, 2 }
 0x67b   : > { %v3511_v23 = vpack.c.b16 %v3510_v60, %v3509_v41  ;;  %v3769_v30 = vsel %vm844_vm2, %v3277_v62, 0.0  ;;  %v3778_v52 = vsel %vm844_vm2, %v3302_v44, 0.0  ;;  %v3756_v60 = vrot.slane %v3755_v40, 2 }
 0x67c   : > { %v3536_v57 = vpack.c.b16 %v3535_v32, %v3534_v38 }
 0x67d   : > { %v3757_v61 = vadd.f32 %v3756_v60, %v3755_v40 }
 0x680   : > { %v3538_v20 = vpop.permute.xlu0 %3537 }
 0x681   : > { %3550 = vmatpush.bf16.msra.mxu3 %v3538_v20 }
 0x682   : > { %4360 = vmatmul.msk.bf16.vlgmr.msra.gmra.mxu2 %vm2038_vm3, %v3511_v23  ;;  %v3279_v10 = vpop.f32.mrf.mxu2  ;;  %v3304_v51 = vpop.f32.mrf.mxu3 }
 0x683   : > { %v3770_v12 = vsel %vm844_vm2, %v3279_v10, 0.0  ;;  %v3779_v4 = vsel %vm844_vm2, %v3304_v51, 0.0  ;;  %v3766_v10 = vadd.f32 %v3765_v47, %v3764_v3 }
 0x684   : > { %v3771_v54 = vadd.f32 %v3770_v12, %v3769_v30  ;;  %v3780_v25 = vadd.f32 %v3779_v4, %v3778_v52 }
 0x685   : > { %4361 = vmatmul.msk.bf16.vlgmr.msra.gmra.mxu3 %vm2038_vm3, %v3536_v57  ;;  %v3767_v4 = vrot.slane %v3766_v10, 1 }
 0x686   : > { %v3772_v0 = vrot.slane %v3771_v54, 4  ;;  %v3781_v63 = vrot.slane %v3780_v25, 4 }
 0x688   : > { %v3773_v37 = vadd.f32 %v3772_v0, %v3771_v54  ;;  %v3782_v16 = vadd.f32 %v3781_v63, %v3780_v25 }
 0x68a   : > { %v3327_v13 = vpop.f32.mrf.mxu2  ;;  %v3774_v49 = vrot.slane %v3773_v37, 2  ;;  %v3783_v32 = vrot.slane %v3782_v16, 2 }
 0x68b   : > { %v3787_v11 = vsel %vm844_vm2, %v3327_v13, 0.0 }
 0x68c   : > { %v3775_v44 = vadd.f32 %v3774_v49, %v3773_v37 }
 0x68e   : > { %v3776_v22 = vrot.slane %v3775_v44, 1 }
 0x690   : > { %v3777_v24 = vadd.f32 %v3776_v22, %v3775_v44 }
 0x692   : > { %v3329_v35 = vpop.f32.mrf.mxu2 }
 0x693   : > { %v3788_v42 = vsel %vm844_vm2, %v3329_v35, 0.0 }
 0x694   : > { %v3789_v39 = vadd.f32 %v3788_v42, %v3787_v11 }
 0x696   : > { %v3790_v58 = vrot.slane %v3789_v39, 4 }
 0x698   : > { %v3791_v59 = vadd.f32 %v3790_v58, %v3789_v39 }
 0x699   : > { %v3352_v27 = vpop.f32.mrf.mxu3 }
 0x69a   : > { %v3796_v31 = vsel %vm844_vm2, %v3352_v27, 0.0  ;;  %v3792_v13 = vrot.slane %v3791_v59, 2  ;;  %v3784_v27 = vadd.f32 %v3783_v32, %v3782_v16 }
 0x69c   : > { %v3793_v9 = vadd.f32 %v3792_v13, %v3791_v59  ;;  %v3785_v54 = vrot.slane %v3784_v27, 1 }
 0x69e   : > { %v2608_v15 = vpop.xlane.xlu2 %2607  ;;  %v3794_v11 = vrot.slane %v3793_v9, 1 }
 0x6a0   : > { %v3795_v37 = vadd.f32 %v3794_v11, %v3793_v9 }
 0x6a1   : > { %v3354_v2 = vpop.f32.mrf.mxu3 }
 0x6a2   : > { %v3797_v43 = vsel %vm844_vm2, %v3354_v2, 0.0  ;;  %v3922_v59 = vmul.f32 %v6105_v29, %v3795_v37 }
 0x6a3   : > { %v3798_v55 = vadd.f32 %v3797_v43, %v3796_v31 }
 0x6a5   : > { %v3799_v34 = vrot.slane %v3798_v55, 4 }
 0x6a7   : > { %v3800_v23 = vadd.f32 %v3799_v34, %v3798_v55 }
 0x6a9   : > { %v3377_v48 = vpop.f32.mrf.mxu2  ;;  %v3801_v26 = vrot.slane %v3800_v23, 2 }
 0x6aa   : > { %v3805_v36 = vsel %vm844_vm2, %v3377_v48, 0.0 }
 0x6ab   : > { %v2605_v45 = vpop.xlane.xlu0 %2604 }
 0x6ae   : > { %v2611_v5 = vpop.xlane.xlu1 %2610 }
 0x6af   : > { %4698 = vrcp.f32 %v2611_v5 }
 0x6b0   : > { %4700 = vrcp.f32 %v2605_v45  ;;  %v3786_v45 = vadd.f32 %v3785_v54, %v3784_v27 }
 0x6b1   : > { %v3379_v17 = vpop.f32.mrf.mxu2  ;;  %4702 = vrcp.f32 %v2608_v15 }
 0x6b2   : > { %v3806_v21 = vsel %vm844_vm2, %v3379_v17, 0.0  ;;  %v3921_v34 = vmul.f32 %v6105_v29, %v3786_v45 }
 0x6b3   : > { %v3807_v56 = vadd.f32 %v3806_v21, %v3805_v36 }
 0x6b5   : > { %v4699_v50 = vpop.eup %4698  ;;  %v3808_v14 = vrot.slane %v3807_v56, 4 }
 0x6b6   : > { %v2614_v53 = vpop.xlane.xlu2 %2613  ;;  %v4701_v41 = vpop.eup %4700  ;;  %v2741_v20 = vmul.f32 %v4699_v50, %v6336_v7  ;;  %v3758_v7 = vrot.slane %v3757_v61, 1 }
 0x6b7   : > { %4704 = vrcp.f32 %v2614_v53  ;;  %v4703_v57 = vpop.eup %4702  ;;  %v3809_v62 = vadd.f32 %v3808_v14, %v3807_v56  ;;  %v2739_v51 = vmul.f32 %v4701_v41, %v6318_v8  ;;  %v3802_v8 = vadd.f32 %v3801_v26, %v3800_v23 }
 0x6b8   : > { %v2740_v19 = vmul.f32 %v4703_v57, %v6300_v28  ;;  %v2805_v12 = vpack.c.bf16 %v2741_v20, %v2741_v20  ;;  %v3759_v31 = vadd.f32 %v3758_v7, %v3757_v61  ;;  %v3920_v56 = vmul.f32 %v6105_v29, %v3777_v24 }
 0x6b9   : > { %v3402_v38 = vpop.f32.mrf.mxu3  ;;  %v3810_v48 = vrot.slane %v3809_v62, 2  ;;  %v2803_v30 = vpack.c.bf16 %v2739_v51, %v2739_v51  ;;  %v3803_v63 = vrot.slane %v3802_v8, 1 }
 0x6ba   : > { %v2804_v52 = vpack.c.bf16 %v2740_v19, %v2740_v19  ;;  %v3584_v25 = vunpack.c.l.b16 %v2805_v12  ;;  %v3814_v43 = vsel %vm844_vm2, %v3402_v38, 0.0  ;;  %v3918_v16 = vmul.f32 %v6105_v29, %v3759_v31 }
 0x6bb   : > { %v3811_v15 = vadd.f32 %v3810_v48, %v3809_v62  ;;  %v3559_v0 = vunpack.c.l.b16 %v2803_v30  ;;  %v3804_v50 = vadd.f32 %v3803_v63, %v3802_v8 }
 0x6bc   : > { %v3560_v17 = vunpack.c.l.b16 %v2804_v52 }
 0x6bd   : > { %v4705_v35 = vpop.eup %4704  ;;  %v3812_v36 = vrot.slane %v3811_v15, 1  ;;  %v3923_v41 = vmul.f32 %v6105_v29, %v3804_v50 }
 0x6be   : > { %v2742_v33 = vmul.f32 %v4705_v35, %v6343_v18  ;;  %v3588_v46 = vpop.permute.xlu2 %3587  ;;  %v3768_v18 = vadd.f32 %v3767_v4, %v3766_v10  ;;  %v3561_v58 = vpack.c.b16 %v3560_v17, %v3559_v0 }
 0x6bf   : > { %3600 = vmatpush.bf16.msrb.mxu3 %v3588_v46  ;;  %v3813_v53 = vadd.f32 %v3812_v36, %v3811_v15 }
 0x6c0   : > { %v2806_v2 = vpack.c.bf16 %v2742_v33, %v2742_v33  ;;  %v3919_v40 = vmul.f32 %v6105_v29, %v3768_v18 }
 0x6c1   : > { %v3404_v42 = vpop.f32.mrf.mxu3  ;;  %v3924_v20 = vmul.f32 %v6105_v29, %v3813_v53 }
 0x6c2   : > { %v3585_v28 = vunpack.c.l.b16 %v2806_v2  ;;  %v3815_v5 = vsel %vm844_vm2, %v3404_v42, 0.0  ;;  %v3983_v60 = vsel %vm3942_vm5, %v3919_v40, %v3918_v16 }
 0x6c3   : > { %v3816_v6 = vadd.f32 %v3815_v5, %v3814_v43  ;;  %v3984_v49 = vsel %vm3944_vm6, %v3920_v56, %v3983_v60 }
 0x6c4   : > { %v3586_v39 = vpack.c.b16 %v3585_v28, %v3584_v25  ;;  %v3985_v23 = vsel %vm3946_vm7, %v3921_v34, %v3984_v49 }
 0x6c5   : > { %v3817_v55 = vrot.slane %v3816_v6, 4  ;;  %v3986_v57 = vsel %vm3948_vm8, %v3922_v59, %v3985_v23 }
 0x6c6   : > { %v3563_v21 = vpop.permute.xlu1 %3562  ;;  %4363 = vmatmul.msk.bf16.vlgmr.msrb.gmra.mxu3 %vm2038_vm3, %v3586_v39  ;;  %v3987_v61 = vsel %vm3950_vm9, %v3923_v41, %v3986_v57 }
 0x6c7   : > { %v3818_v3 = vadd.f32 %v3817_v55, %v3816_v6  ;;  %3575 = vmatpush.bf16.msrb.mxu2 %v3563_v21  ;;  %v3988_v10 = vsel %vm3952_vm10, %v3924_v20, %v3987_v61 }
 0x6c9   : > { %v3819_v14 = vrot.slane %v3818_v3, 2 }
 0x6ca   : > { %4362 = vmatmul.msk.bf16.vlgmr.msrb.gmra.mxu2 %vm2038_vm3, %v3561_v58 }
 0x6cb   : > { %v3820_v47 = vadd.f32 %v3819_v14, %v3818_v3 }
 0x6cd   : > { %v3821_v32 = vrot.slane %v3820_v47, 1 }
 0x6cf   : > { %v3822_v38 = vadd.f32 %v3821_v32, %v3820_v47 }
 0x6d1   : > { %v3925_v62 = vmul.f32 %v6105_v29, %v3822_v38 }
 0x6d3   : > { %v3989_v44 = vsel %vm3954_vm11, %v3925_v62, %v3988_v10 }
 0x6d4   : > { %3990 = vrot.lane.b32.xlu0 %v3989_v44, %s4772_s26  ;;  %s4722_s26 = sshra.s32 %s4033_s25, 4  ;;  %s4723_s26 = int_to_ptr.hbm [resolvable:$true] %s4722_s26 }
 0x6d5   : > { %p4729_p0 = scmp.lt.s32.totalorder %s4723_s26, %s6494_s5 }
 0x6df   : > { %v3427_v51 = vpop.f32.mrf.mxu2 }
 0x6e0   : > { %v3823_v42 = vsel %vm844_vm2, %v3427_v51, 0.0 }
 0x6e7   : > { %v3429_v27 = vpop.f32.mrf.mxu2 }
 0x6e8   : > { %v3452_v13 = vpop.f32.mrf.mxu3  ;;  %v3824_v30 = vsel %vm844_vm2, %v3429_v27, 0.0 }
 0x6e9   : > { %v3832_v2 = vsel %vm844_vm2, %v3452_v13, 0.0  ;;  %v3825_v5 = vadd.f32 %v3824_v30, %v3823_v42 }
 0x6eb   : > { %v3826_v45 = vrot.slane %v3825_v5, 4 }
 0x6ed   : > { %v3827_v3 = vadd.f32 %v3826_v45, %v3825_v5 }
 0x6ef   : > { %v3828_v14 = vrot.slane %v3827_v3, 2 }
 0x6f0   : > { %v3454_v35 = vpop.f32.mrf.mxu3 }
 0x6f1   : > { %v3833_v7 = vsel %vm844_vm2, %v3454_v35, 0.0  ;;  %v3829_v38 = vadd.f32 %v3828_v14, %v3827_v3 }
 0x6f2   : > { %v3834_v52 = vadd.f32 %v3833_v7, %v3832_v2 }
 0x6f4   : > { %v3835_v0 = vrot.slane %v3834_v52, 4 }
 0x6f5   : > { %v3477_v19 = vpop.f32.mrf.mxu2 }
 0x6f6   : > { %v3841_v8 = vsel %vm844_vm2, %v3477_v19, 0.0  ;;  %v3836_v36 = vadd.f32 %v3835_v0, %v3834_v52 }
 0x6f8   : > { %v3502_v26 = vpop.f32.mrf.mxu3  ;;  %v3837_v16 = vrot.slane %v3836_v36, 2 }
 0x6f9   : > { %v3850_v15 = vsel %vm844_vm2, %v3502_v26, 0.0 }
 0x6fa   : > { %v3838_v49 = vadd.f32 %v3837_v16, %v3836_v36 }
 0x6fc   : > { %v3839_v44 = vrot.slane %v3838_v49, 1 }
 0x6fd   : > { %v3479_v12 = vpop.f32.mrf.mxu2 }
 0x6fe   : > { %v3842_v22 = vsel %vm844_vm2, %v3479_v12, 0.0  ;;  %v3830_v12 = vrot.slane %v3829_v38, 1 }
 0x6ff   : > { %v3843_v28 = vadd.f32 %v3842_v22, %v3841_v8 }
 0x700   : > { %v3504_v48 = vpop.f32.mrf.mxu3 }
 0x701   : > { %v3851_v54 = vsel %vm844_vm2, %v3504_v48, 0.0  ;;  %v3844_v31 = vrot.slane %v3843_v28, 4 }
 0x702   : > { %v3852_v18 = vadd.f32 %v3851_v54, %v3850_v15  ;;  %v3831_v54 = vadd.f32 %v3830_v12, %v3829_v38 }
 0x703   : > { %v3845_v40 = vadd.f32 %v3844_v31, %v3843_v28 }
 0x704   : > { %v3853_v63 = vrot.slane %v3852_v18, 4 }
 0x705   : > { %v3527_v33 = vpop.f32.mrf.mxu2  ;;  %v3846_v50 = vrot.slane %v3845_v40, 2 }
 0x706   : > { %v3859_v6 = vsel %vm844_vm2, %v3527_v33, 0.0  ;;  %v3854_v56 = vadd.f32 %v3853_v63, %v3852_v18  ;;  %v3926_v18 = vmul.f32 %v6105_v29, %v3831_v54 }
 0x707   : > { %v3847_v23 = vadd.f32 %v3846_v50, %v3845_v40 }
 0x708   : > { %v3552_v46 = vpop.f32.mrf.mxu3  ;;  %v3855_v53 = vrot.slane %v3854_v56, 2 }
 0x709   : > { %v3868_v24 = vsel %vm844_vm2, %v3552_v46, 0.0  ;;  %v3848_v27 = vrot.slane %v3847_v23, 1 }
 0x70a   : > { %v3856_v57 = vadd.f32 %v3855_v53, %v3854_v56 }
 0x70c   : > { %v3857_v48 = vrot.slane %v3856_v57, 1 }
 0x70d   : > { %v3529_v4 = vpop.f32.mrf.mxu2 }
 0x70e   : > { %v3860_v25 = vsel %vm844_vm2, %v3529_v4, 0.0  ;;  %v3840_v4 = vadd.f32 %v3839_v44, %v3838_v49  ;;  %v3858_v52 = vadd.f32 %v3857_v48, %v3856_v57 }
 0x70f   : > { %v3861_v11 = vadd.f32 %v3860_v25, %v3859_v6 }
 0x710   : > { %v3554_v9 = vpop.f32.mrf.mxu3  ;;  %v3927_v42 = vmul.f32 %v6105_v29, %v3840_v4  ;;  %v3929_v6 = vmul.f32 %v6105_v29, %v3858_v52 }
 0x711   : > { %v3869_v43 = vsel %vm844_vm2, %v3554_v9, 0.0  ;;  %v3862_v55 = vrot.slane %v3861_v11, 4  ;;  %v3849_v9 = vadd.f32 %v3848_v27, %v3847_v23 }
 0x712   : > { %v3870_v39 = vadd.f32 %v3869_v43, %v3868_v24  ;;  %v4001_v0 = vsel %vm3942_vm5, %v3927_v42, %v3926_v18 }
 0x713   : > { %v3863_v37 = vadd.f32 %v3862_v55, %v3861_v11  ;;  %v3928_v43 = vmul.f32 %v6105_v29, %v3849_v9 }
 0x714   : > { %v3871_v21 = vrot.slane %v3870_v39, 4 }
 0x715   : > { %v3864_v60 = vrot.slane %v3863_v37, 2  ;;  %v4002_v45 = vsel %vm3944_vm6, %v3928_v43, %v4001_v0 }
 0x716   : > { %v3872_v34 = vadd.f32 %v3871_v21, %v3870_v39  ;;  %v4003_v55 = vsel %vm3946_vm7, %v3929_v6, %v4002_v45 }
 0x717   : > { %v3865_v62 = vadd.f32 %v3864_v60, %v3863_v37  ;;  %v3973_v37 = vpop.permute.xlu1 %3972 }
 0x718   : > { %v3873_v59 = vrot.slane %v3872_v34, 2 }
 0x719   : > { %v3866_v33 = vrot.slane %v3865_v62, 1 }
 0x71a   : > { %v3874_v13 = vadd.f32 %v3873_v59, %v3872_v34 }
 0x71b   : > { %v3867_v8 = vadd.f32 %v3866_v33, %v3865_v62 }
 0x71c   : > { %v3875_v22 = vrot.slane %v3874_v13, 1 }
 0x71d   : > { %v3930_v24 = vmul.f32 %v6105_v29, %v3867_v8 }
 0x71e   : > { %v3876_v15 = vadd.f32 %v3875_v22, %v3874_v13 }
 0x71f   : > { %v4004_v36 = vsel %vm3948_vm8, %v3930_v24, %v4003_v55 }
 0x720   : > { %v3931_v39 = vmul.f32 %v6105_v29, %v3876_v15 }
 0x722   : > { %v4005_v40 = vsel %vm3950_vm9, %v3931_v39, %v4004_v36 }
 0x749   : > { %v3602_v17 = vpop.f32.mrf.mxu3 }
 0x74a   : > { %v3886_v41 = vsel %vm844_vm2, %v3602_v17, 0.0 }
 0x74d   : > { %v3577_v58 = vpop.f32.mrf.mxu2 }
 0x74e   : > { %v3877_v51 = vsel %vm844_vm2, %v3577_v58, 0.0  ;;  %v3991_v58 = vpop.permute.xlu0 %3990 }
 0x751   : > { %v3604_v47 = vpop.f32.mrf.mxu3 }
 0x752   : > { %v3887_v32 = vsel %vm844_vm2, %v3604_v47, 0.0 }
 0x753   : > { %v3888_v20 = vadd.f32 %v3887_v32, %v3886_v41 }
 0x755   : > { %v3889_v61 = vrot.slane %v3888_v20, 4  ;;  %v3579_v10 = vpop.f32.mrf.mxu2 }
 0x756   : > { %v3878_v35 = vsel %vm844_vm2, %v3579_v10, 0.0 }
 0x757   : > { %v3890_v19 = vadd.f32 %v3889_v61, %v3888_v20  ;;  %v3879_v26 = vadd.f32 %v3878_v35, %v3877_v51 }
 0x759   : > { %v3891_v46 = vrot.slane %v3890_v19, 2  ;;  %v3880_v7 = vrot.slane %v3879_v26, 4 }
 0x75b   : > { %v3892_v30 = vadd.f32 %v3891_v46, %v3890_v19  ;;  %v3881_v2 = vadd.f32 %v3880_v7, %v3879_v26 }
 0x75d   : > { %v3882_v25 = vrot.slane %v3881_v2, 2  ;;  %v3893_v28 = vrot.slane %v3892_v30, 1 }
 0x75f   : > { %v3883_v5 = vadd.f32 %v3882_v25, %v3881_v2  ;;  %v3894_v31 = vadd.f32 %v3893_v28, %v3892_v30 }
 0x761   : > { %v3884_v11 = vrot.slane %v3883_v5, 1  ;;  %v3933_v21 = vmul.f32 %v6105_v29, %v3894_v31 }
 0x763   : > { %v3885_v63 = vadd.f32 %v3884_v11, %v3883_v5 }
 0x765   : > { %v3932_v17 = vmul.f32 %v6105_v29, %v3885_v63  ;;  %v4011_v29 = vsel %vm844_vm2, %v6195_v1, %v3973_v37 }
 0x766   : > { %v4013_v16 = vsel %vm4012_vm12, %v4011_v29, %v3991_v58 }
 0x767   : > { %v4006_v3 = vsel %vm3952_vm10, %v3932_v17, %v4005_v40 }
 0x768   : > { %v4007_v56 = vsel %vm3954_vm11, %v3933_v21, %v4006_v3 }
 0x769   : > { %4008 = vrot.lane.b32.xlu2 %v4007_v56, %s4773_s30  ;;  %s4724_s30 = scalar_lea.hbm %s4723_s26, 8 }
 0x76a   : > { %p4725_p11 = scmp.ne.s32.totalorder %s4723_s26, %s4724_s30  ;;  %p4730_p1 = scmp.lt.s32.totalorder %s4728_s8, %s4724_s30 }
 0x76c   : > { %p4726_p12 = pnand %p4725_p11, %p4844_p5  ;;  %p4731_p2 = por %p4730_p1, %p4729_p0 }
 0x76e   : > { %p4727_p13 = pneg %p4726_p12 }
 0x770   : > { %p4732_p3 = pnand %p4731_p2, %p4727_p13 }
 0x7c3   : > { %v4009_v34 = vpop.permute.xlu2 %4008 }
 0x7c4   : > { %v4015_v50 = vsel %vm4014_vm13, %v4013_v16, %v4009_v34 }
 0x7c5   : > { %4016 = vst [vmem:[%s220_s17] sm:$0xff] %v4015_v50 }
 0x7c6   : > { %4735 = shalt.err (!%p4732_p3)
}
 0x7c7   : > { %4403 = dma.vmem_to_hbm [thread:$0]  (%p4844_p5), %s4031_s23, 128, %s4033_s25, %s4018_s22  }
 0x7c8 PF: > { %p4409_p4 = scmp.ge.s32.totalorder %s4770_s21, 2  ;;  %s4044_s11 = sand.u32 1, %s4758_s18  }
 0x7c9   : > { %s4045_s12 = scalar_lea.sflag [#allocation3], %s4044_s11 }
 0x7ca   : > { %p4406_p7 = pnand %p4409_p4, %p4848_p6 }
 0x7cc   : > { %p4407_p8 = pneg %p4406_p7 }
 0x7ce   : > { %4753 = dma.done.wait (%p4407_p8), %s4045_s12, 128  }
 0x7cf   : > { %4755 = vsyncadd (%p4407_p8), %s4045_s12, 4294967168  ;;  %p15_p9 = scmp.ge.s32.totalorder %s4831_s24, 4   ;;  %s6564_s18 = smov %s4762_s19 }
 0x7d0   : > { %s6565_s19 = smov %s4766_s20  ;;  %s6566_s20 = smov %s4842_s27 }
 0x7d1   : > { %s6567_s21 = smov %s4831_s24  ;;  %17 = sbr.rel (!%p15_p9) target bundleno = 3 (0x3), region = 75 }
 0x7d6   :  { %4051 = vsyncpa [#allocation3], 1 }
 0x7d7   :  { %4053 = vsyncpa [#allocation3 + $0x1], 1 }

</bundles_post_ra>
